<compile_context>
chip_gen: v7x
topology: tpu7x:2x2x1
jax: 0.10.0
libtpu: 0.0.40
codegen_flags: <defaults>
</compile_context>

<pallas_src>
import functools

import jax
import jax.numpy as jnp
from jax import lax
from jax.experimental import pallas as pl
from jax.experimental.pallas import tpu as pltpu

_NEG_BIG = -1e30               # finite "-inf": avoids (-inf)-(-inf) -> NaN paths
_VMEM_LIMIT = 32 * 1024 * 1024  # explicit scoped-VMEM budget (safe on v5e/v6e/v7x)


# ----------------------------------------------------------------------------
# Tile selection helpers
# ----------------------------------------------------------------------------
def _tile_rows(dim, pref):
    # Sublane axis of x / out blocks. Edge blocks are masked on store, so any
    # multiple-of-8 tile works with a cdiv grid; the full dim is always legal.
    return dim if dim <= pref else pref


def _tile_lanes(dim, pref):
    # Lane axis of w / out blocks. Prefer a dividing multiple of 256 (fills the
    # v6e/v7x 256-wide MXU), then 128; otherwise fall back to `pref` with a
    # cdiv grid + masked edge tiles.
    if dim <= pref:
        return dim
    for align in (256, 128):
        t = (pref // align) * align
        while t >= align:
            if dim % t == 0:
                return t
            t -= align
    return pref


def _tile_contract(dim, pref):
    # Contraction (K) axis: the tile MUST divide K exactly (garbage in a masked
    # edge tile would be summed into the accumulator).
    if dim <= pref:
        return dim
    for align in (256, 128):
        t = (pref // align) * align
        while t >= align:
            if dim % t == 0:
                return t
            t -= align
    return dim  # last resort: whole K resident (VMEM-heavy but correct)


# ----------------------------------------------------------------------------
# Tiled linear:  y = x @ w + b    (x: (M, K), w: (K, Nout), b: (Nout,))
# ----------------------------------------------------------------------------
def _linear_kernel(x_ref, w_ref, b_ref, o_ref):
    # Single K pass: no accumulator scratch, no k grid axis.
    o_ref[...] = (jnp.dot(x_ref[...], w_ref[...],
                          preferred_element_type=jnp.float32)
                  + b_ref[...]).astype(o_ref.dtype)


def _linear_kernel_kacc(x_ref, w_ref, b_ref, o_ref, acc_ref):
    @pl.when(pl.program_id(2) == 0)
    def _():
        acc_ref[...] = jnp.zeros_like(acc_ref)

    acc_ref[...] += jnp.dot(x_ref[...], w_ref[...],
                            preferred_element_type=jnp.float32)

    @pl.when(pl.program_id(2) == pl.num_programs(2) - 1)
    def _():
        o_ref[...] = (acc_ref[...] + b_ref[...]).astype(o_ref.dtype)


def pallas_linear(x2d, w, b, *, tm_pref=512, tn_pref=1024, tk_pref=2048):
    """y = x2d @ w + b with x2d: (M, K), w: (K, Nout), b: (Nout,)."""
    M, K = x2d.shape
    Nout = w.shape[1]

    tm = _tile_rows(M, tm_pref)
    tn = _tile_lanes(Nout, tn_pref)
    tk = _tile_contract(K, tk_pref)
    b2 = b.reshape(1, Nout)

    if tk == K:
        return pl.pallas_call(
            _linear_kernel,
            out_shape=jax.ShapeDtypeStruct((M, Nout), x2d.dtype),
            grid=(pl.cdiv(M, tm), pl.cdiv(Nout, tn)),
            in_specs=[
                pl.BlockSpec((tm, K), lambda i, j: (i, 0)),
                pl.BlockSpec((K, tn), lambda i, j: (0, j)),
                pl.BlockSpec((1, tn), lambda i, j: (0, j)),
            ],
            out_specs=pl.BlockSpec((tm, tn), lambda i, j: (i, j)),
            compiler_params=pltpu.CompilerParams(
                dimension_semantics=("parallel", "parallel"),
                vmem_limit_bytes=_VMEM_LIMIT),
        )(x2d, w, b2)

    return pl.pallas_call(
        _linear_kernel_kacc,
        out_shape=jax.ShapeDtypeStruct((M, Nout), x2d.dtype),
        grid=(pl.cdiv(M, tm), pl.cdiv(Nout, tn), K // tk),
        in_specs=[
            pl.BlockSpec((tm, tk), lambda i, j, k: (i, k)),
            pl.BlockSpec((tk, tn), lambda i, j, k: (k, j)),
            pl.BlockSpec((1, tn), lambda i, j, k: (0, j)),
        ],
        out_specs=pl.BlockSpec((tm, tn), lambda i, j, k: (i, j)),
        scratch_shapes=[pltpu.VMEM((tm, tn), jnp.float32)],
        compiler_params=pltpu.CompilerParams(
            dimension_semantics=("parallel", "parallel", "arbitrary"),
            vmem_limit_bytes=_VMEM_LIMIT),
    )(x2d, w, b2)


# ----------------------------------------------------------------------------
# Attention core
# ----------------------------------------------------------------------------
def _head_group(num_heads, head_dim):
    # Process heads in groups whose combined width is (where possible) a
    # multiple of 128 lanes, so context chunks written to o_ref are
    # lane-tile-aligned unmasked stores.
    g = max(1, 128 // max(head_dim, 1))
    g = min(g, num_heads)
    while num_heads % g:
        g -= 1
    return g


def _attn_body(q, k, v, keep, o_ref, *, num_heads, scale, group):
    """q: (tq, C), k/v: (N, C), keep: (tq, N) int8; writes o_ref (tq, C)."""
    C = q.shape[-1]
    D = C // num_heads

    mask_zero = keep == 0                                             # (tq, N)
    # Rows with no kept position must output exactly 0 (reference semantics of
    # masked_fill(attn, 0) applied to an all -inf softmax row).
    row_gate = jnp.max(keep.astype(jnp.float32), axis=-1, keepdims=True)  # {0,1}

    if scale != 1.0:  # normally folded into the qkv weights (fold_scale_into_qkv)
        q = q * jnp.asarray(scale, dtype=q.dtype)

    for h0 in range(0, num_heads, group):        # static unroll over head groups
        parts = []
        for h in range(h0, h0 + group):
            sl = slice(h * D, (h + 1) * D)
            # q_h @ k_h^T without materializing a transpose: contract last dims.
            s = lax.dot_general(q[:, sl], k[:, sl],
                                dimension_numbers=(((1,), (1,)), ((), ())),
                                preferred_element_type=jnp.float32)
            s = jnp.where(mask_zero, _NEG_BIG, s)
            s_max = jnp.max(s, axis=-1, keepdims=True)
            p = jnp.exp(s - s_max)       # masked entries underflow to exactly 0
            denom = jnp.sum(p, axis=-1, keepdims=True)
            ctx_h = jnp.dot(p.astype(v.dtype), v[:, sl],
                            preferred_element_type=jnp.float32)
            # Softmax normalization deferred to the (tq, D) context; divide on EUP.
            ctx_h = ctx_h * (row_gate * pl.reciprocal(denom, approx=True))
            parts.append(ctx_h)
        chunk = parts[0] if group == 1 else jnp.concatenate(parts, axis=-1)
        # 128-lane-aligned (or full-width) write straight into the output block.
        o_ref[:, h0 * D:(h0 + group) * D] = chunk.astype(o_ref.dtype)


def _attn_kernel_split(q_ref, k_ref, v_ref, keep_ref, o_ref, *,
                       num_heads, scale, group):
    _attn_body(q_ref[...], k_ref[...], v_ref[...], keep_ref[...], o_ref,
               num_heads=num_heads, scale=scale, group=group)


def _attn_kernel_slab(qrows_ref, kv_ref, keep_ref, o_ref, *,
                      num_heads, scale, group):
    C = o_ref.shape[-1]
    slab = kv_ref[...]
    _attn_body(qrows_ref[:, 0:C], slab[:, C:2 * C], slab[:, 2 * C:3 * C],
               keep_ref[...], o_ref, num_heads=num_heads, scale=scale, group=group)


def pallas_attention_core(qkv, keep_i8, num_heads, scale, out_dtype, *, tq=128):
    """qkv: (B, N, 3C) with columns [q | k | v]; keep_i8: (B, N, N) int8 keep mask."""
    B, N, three_c = qkv.shape
    C = three_c // 3
    D = C // num_heads
    group = _head_group(num_heads, D)

    tq = min(tq, N)
    if tq != N:
        tq = max(8, (tq // 8) * 8)      # sublane alignment for partial-N tiles
    grid = (B, pl.cdiv(N, tq))
    cparams = pltpu.CompilerParams(
        dimension_semantics=("parallel", "parallel"),
        vmem_limit_bytes=_VMEM_LIMIT)

    if C % 128 == 0:
        # q / k / v as three column-blocks of the same qkv array: only the tq q
        # rows are DMA'd per step, and the (N, C) k/v slabs stay resident
        # across the qi axis (their index_map ignores qi).
        kern = functools.partial(_attn_kernel_split, num_heads=num_heads,
                                 scale=scale, group=group)
        return pl.pallas_call(
            kern,
            out_shape=jax.ShapeDtypeStruct((B, N, C), out_dtype),
            grid=grid,
            in_specs=[
                pl.BlockSpec((None, tq, C), lambda b, i: (b, i, 0)),   # q rows
                pl.BlockSpec((None, N, C), lambda b, i: (b, 0, 1)),    # k slab
                pl.BlockSpec((None, N, C), lambda b, i: (b, 0, 2)),    # v slab
                pl.BlockSpec((None, tq, N), lambda b, i: (b, i, 0)),   # keep mask
            ],
            out_specs=pl.BlockSpec((None, tq, C), lambda b, i: (b, i, 0)),
            compiler_params=cparams,
        )(qkv, qkv, qkv, keep_i8)

    # Fallback for C not 128-aligned (lane-tile rules forbid C-wide column
    # blocks): ship whole 3C-wide rows and slice q/k/v inside the kernel.
    kern = functools.partial(_attn_kernel_slab, num_heads=num_heads,
                             scale=scale, group=group)
    return pl.pallas_call(
        kern,
        out_shape=jax.ShapeDtypeStruct((B, N, C), out_dtype),
        grid=grid,
        in_specs=[
            pl.BlockSpec((None, tq, three_c), lambda b, i: (b, i, 0)),  # q rows
            pl.BlockSpec((None, N, three_c), lambda b, i: (b, 0, 0)),   # k/v slab
            pl.BlockSpec((None, tq, N), lambda b, i: (b, i, 0)),        # keep mask
        ],
        out_specs=pl.BlockSpec((None, tq, C), lambda b, i: (b, i, 0)),
        compiler_params=cparams,
    )(qkv, qkv, keep_i8)


# ----------------------------------------------------------------------------
# Parameter prep + full Attention.forward
# ----------------------------------------------------------------------------
def fold_scale_into_qkv(params, num_heads):
    """One-time parameter transform: bake the 1/sqrt(D) softmax scale into the
    q columns of the qkv projection so the kernel does no per-call scaling."""
    C = params["proj_w"].shape[0]
    D = C // num_heads
    scale = float(D) ** -0.5
    out = dict(params)
    out["qkv_w"] = params["qkv_w"].at[:, :C].multiply(scale)
    out["qkv_b"] = params["qkv_b"].at[:C].multiply(scale)
    return out


def attention_forward(x, mask, params, num_heads, *, scale=1.0, tq=128):
    """Forward pass of the IA-RED Attention module.

    Linear weights are stored (in_features, out_features). The 1/sqrt(D) scale
    is expected to be pre-folded into the qkv weights (fold_scale_into_qkv);
    pass `scale=` explicitly if it is not.
    attn_drop / proj_drop are identity (inference).
    """
    B, N, C = x.shape

    qkv = pallas_linear(x.reshape(B * N, C), params["qkv_w"], params["qkv_b"])
    qkv = qkv.reshape(B, N, 3 * C)                        # free reshape only

    keep_i8 = (mask != 0).astype(jnp.int8)                # 4x less mask DMA than f32
    ctx = pallas_attention_core(qkv, keep_i8, num_heads, scale, x.dtype, tq=tq)

    out = pallas_linear(ctx.reshape(B * N, C), params["proj_w"], params["proj_b"])
    return out.reshape(B, N, C)


# ----------------------------------------------------------------------------
# Pure-JAX reference (mirrors the PyTorch module)
# ----------------------------------------------------------------------------
def attention_reference(x, mask, params, num_heads):
    B, N, C = x.shape
    D = C // num_heads
    scale = float(D) ** -0.5
    qkv = x.reshape(B * N, C) @ params["qkv_w"] + params["qkv_b"]
    qkv = qkv.reshape(B, N, 3, num_heads, D).transpose(2, 0, 3, 1, 4)
    q, k, v = qkv[0], qkv[1], qkv[2]
    attn = jnp.einsum("bhnd,bhmd->bhnm", q, k) * scale
    m = mask[:, None, :, :]
    attn = jnp.where(m == 0, -jnp.inf, attn)
    attn = jax.nn.softmax(attn, axis=-1)
    attn = jnp.where(m == 0, 0.0, attn)
    out = jnp.einsum("bhnm,bhmd->bhnd", attn, v)
    out = out.transpose(0, 2, 1, 3).reshape(B, N, C)
    out = out.reshape(B * N, C) @ params["proj_w"] + params["proj_b"]
    return out.reshape(B, N, C)


if __name__ == "__main__":
    root = jax.random.PRNGKey(0)

    # --- direct check of the K-tiled (accumulating) linear + masked M edge ---
    ka, kb, kc = jax.random.split(jax.random.fold_in(root, 1), 3)
    xa = jax.random.normal(ka, (600, 512), dtype=jnp.float32)   # M=600: partial edge tile
    wa = 0.05 * jax.random.normal(kb, (512, 384), dtype=jnp.float32)
    ba = 0.05 * jax.random.normal(kc, (384,), dtype=jnp.float32)
    ya = jax.block_until_ready(pallas_linear(xa, wa, ba, tk_pref=256))
    assert jnp.allclose(ya, xa @ wa + ba, atol=2e-3, rtol=2e-3), "K-tiled linear mismatch"

    # --- full Attention.forward at two small configs --------------------------
    #  A: C=32 (not 128-aligned)  -> whole-slab attention path, single q tile
    #  B: C=128, D=64, tq=8       -> column-split q/k/v path, head pairing,
    #                                 multiple q tiles per batch element
    configs = [
        dict(B=2, N=8, C=32, H=4, tq=128),
        dict(B=2, N=16, C=128, H=2, tq=8),
    ]
    for cfg in configs:
        B, N, C, H, tq = cfg["B"], cfg["N"], cfg["C"], cfg["H"], cfg["tq"]
        kx, kqw, kqb, kpw, kpb = jax.random.split(jax.random.fold_in(root, 100 + C), 5)
        x = jax.random.normal(kx, (B, N, C), dtype=jnp.float32)
        params = {
            "qkv_w": 0.05 * jax.random.normal(kqw, (C, 3 * C), dtype=jnp.float32),
            "qkv_b": 0.05 * jax.random.normal(kqb, (3 * C,), dtype=jnp.float32),
            "proj_w": 0.05 * jax.random.normal(kpw, (C, C), dtype=jnp.float32),
            "proj_b": 0.05 * jax.random.normal(kpb, (C,), dtype=jnp.float32),
        }
        # Causal 0/1 keep mask (every row keeps at least one position).
        mask = jnp.tril(jnp.ones((N, N), dtype=jnp.float32))[None].repeat(B, axis=0)

        folded = fold_scale_into_qkv(params, H)   # one-time scale fold (in f32)

        # float32 path vs pure-JAX reference
        out = jax.block_until_ready(attention_forward(x, mask, folded, H, tq=tq))
        ref = attention_reference(x, mask, params, H)
        assert out.shape == (B, N, C)
        assert jnp.allclose(out, ref, atol=2e-3, rtol=2e-3), f"f32 mismatch {cfg}"

        # bf16 MXU path (f32 accumulation inside the kernels)
        x_bf = x.astype(jnp.bfloat16)
        folded_bf = {name: p.astype(jnp.bfloat16) for name, p in folded.items()}
        out_bf = jax.block_until_ready(attention_forward(x_bf, mask, folded_bf, H, tq=tq))
        assert out_bf.shape == (B, N, C) and out_bf.dtype == jnp.bfloat16
        assert jnp.allclose(out_bf.astype(jnp.float32), ref, atol=5e-2, rtol=5e-2), \
            f"bf16 mismatch {cfg}"

    print("KERNEL_OK")
</pallas_src>

<mosaic_0001>
module attributes {stable_mosaic.version = 11 : i64} {
  func.func @_linear_kernel_kacc(%arg0: i32, %arg1: i32, %arg2: i32, %arg3: memref<512x256xf32, #tpu.memory_space<vmem>>, %arg4: memref<256x384xf32, #tpu.memory_space<vmem>>, %arg5: memref<1x384xf32, #tpu.memory_space<vmem>>, %arg6: memref<512x384xf32, #tpu.memory_space<vmem>>, %arg7: memref<512x384xf32, #tpu.memory_space<vmem>>) attributes {dimension_semantics = [#tpu.dimension_semantics<parallel>, #tpu.dimension_semantics<parallel>, #tpu.dimension_semantics<arbitrary>], iteration_bounds = array<i64: 2, 1, 2>, scalar_prefetch = 0 : i64, scratch_operands = 1 : i64, tpu.core_type = #tpu.core_type<tc>, window_params = [{transform_indices = @transform_0, window_bounds = array<i64: 512, 256>}, {transform_indices = @transform_1, window_bounds = array<i64: 256, 384>}, {transform_indices = @transform_2, window_bounds = array<i64: 1, 384>}, {transform_indices = @transform_3, window_bounds = array<i64: 512, 384>}]} {
    %c0_i32 = arith.constant 0 : i32
    %0 = arith.cmpi eq, %arg2, %c0_i32 : i32
    %1 = arith.extui %0 : i1 to i32
    %c0_i32_0 = arith.constant 0 : i32
    %2 = arith.cmpi ne, %1, %c0_i32_0 : i32
    scf.if %2 {
      %cst_9 = arith.constant 0.000000e+00 : f32
      %12 = vector.broadcast %cst_9 : f32 to vector<512x384xf32>
      %c0_10 = arith.constant 0 : index
      %c0_11 = arith.constant 0 : index
      %13 = vector.load %arg7[%c0_10, %c0_11] : memref<512x384xf32, #tpu.memory_space<vmem>>, vector<512x384xf32>
      tpu.vector_store %arg7[%c0_10, %c0_11], %12 {strides = array<i32>} : memref<512x384xf32, #tpu.memory_space<vmem>>, vector<512x384xf32>,
    } else {
    }
    %c0 = arith.constant 0 : index
    %c0_1 = arith.constant 0 : index
    %3 = vector.load %arg7[%c0, %c0_1] : memref<512x384xf32, #tpu.memory_space<vmem>>, vector<512x384xf32>
    %c0_2 = arith.constant 0 : index
    %c0_3 = arith.constant 0 : index
    %4 = vector.load %arg3[%c0_2, %c0_3] : memref<512x256xf32, #tpu.memory_space<vmem>>, vector<512x256xf32>
    %c0_4 = arith.constant 0 : index
    %c0_5 = arith.constant 0 : index
    %5 = vector.load %arg4[%c0_4, %c0_5] : memref<256x384xf32, #tpu.memory_space<vmem>>, vector<256x384xf32>
    %cst = arith.constant dense<0.000000e+00> : vector<512x384xf32>
    %6 = tpu.matmul %4, %5, %cst {dimension_numbers = #tpu.dot_dimension_numbers<[1], [0], [0], [1], [0, 0, 1, 1], [], []>} : vector<512x256xf32>, vector<256x384xf32>, vector<512x384xf32> -> vector<512x384xf32>
    %7 = arith.addf %3, %6 : vector<512x384xf32>
    %c0_6 = arith.constant 0 : index
    %c0_7 = arith.constant 0 : index
    %8 = vector.load %arg7[%c0_6, %c0_7] : memref<512x384xf32, #tpu.memory_space<vmem>>, vector<512x384xf32>
    tpu.vector_store %arg7[%c0_6, %c0_7], %7 {strides = array<i32>} : memref<512x384xf32, #tpu.memory_space<vmem>>, vector<512x384xf32>,
    %c1_i32 = arith.constant 1 : i32
    %9 = arith.cmpi eq, %arg2, %c1_i32 : i32
    %10 = arith.extui %9 : i1 to i32
    %c0_i32_8 = arith.constant 0 : i32
    %11 = arith.cmpi ne, %10, %c0_i32_8 : i32
    scf.if %11 {
      %c0_9 = arith.constant 0 : index
      %c0_10 = arith.constant 0 : index
      %12 = vector.load %arg7[%c0_9, %c0_10] : memref<512x384xf32, #tpu.memory_space<vmem>>, vector<512x384xf32>
      %c0_11 = arith.constant 0 : index
      %c0_12 = arith.constant 0 : index
      %13 = vector.load %arg5[%c0_11, %c0_12] : memref<1x384xf32, #tpu.memory_space<vmem>>, vector<1x384xf32>
      %14 = vector.broadcast %13 : vector<1x384xf32> to vector<512x384xf32>
      %15 = arith.addf %12, %14 : vector<512x384xf32>
      %c0_13 = arith.constant 0 : index
      %c0_14 = arith.constant 0 : index
      %16 = vector.load %arg6[%c0_13, %c0_14] : memref<512x384xf32, #tpu.memory_space<vmem>>, vector<512x384xf32>
      tpu.vector_store %arg6[%c0_13, %c0_14], %15 {strides = array<i32>} : memref<512x384xf32, #tpu.memory_space<vmem>>, vector<512x384xf32>,
    } else {
    }
    return
  }
  func.func @transform_0(%arg0: i32, %arg1: i32, %arg2: i32) -> (i32, i32) {
    %c0_i32 = arith.constant 0 : i32
    return %arg0, %arg2 : i32, i32
  }
  func.func @transform_1(%arg0: i32, %arg1: i32, %arg2: i32) -> (i32, i32) {
    %c0_i32 = arith.constant 0 : i32
    return %arg2, %arg1 : i32, i32
  }
  func.func @transform_2(%arg0: i32, %arg1: i32, %arg2: i32) -> (i32, i32) {
    %c0_i32 = arith.constant 0 : i32
    %c0_i32_0 = arith.constant 0 : i32
    return %c0_i32, %arg1 : i32, i32
  }
  func.func @transform_3(%arg0: i32, %arg1: i32, %arg2: i32) -> (i32, i32) {
    %c0_i32 = arith.constant 0 : i32
    return %arg0, %arg1 : i32, i32
  }
}

</mosaic_0001>

<bundles_post_ra>
// kernel: tpu_custom_call.1
= control target key start
LH: loop header
LB: loop body
LE: loop exit
PB: predicated region body
PF: predicated region fallthrough
CT: control target
= control target key end

     0   :  { %s4651_s0 = inlined_call_operand.hbm [shape: f32[600,512], index: 0, kind: input, shape index: {}]   ;;  %s4652_s1 = inlined_call_operand.hbm [shape: f32[512,384], index: 1, kind: input, shape index: {}]   ;;  %s4653_s2 = inlined_call_operand.hbm [shape: f32[1,384], index: 2, kind: input, shape index: {}]   ;;  %s4654_s3 = inlined_call_operand.hbm [shape: f32[600,384], index: 3, kind: output, shape index: {}]  }
   0x1   :  { %4667 = sst [smem:[#allocation23_spill]] %s4651_s0 }
   0x2   :  { %4668 = sst [smem:[#allocation24_spill]] %s4653_s2 }
   0x3   :  { %4669 = sst [smem:[#allocation25_spill]] %s4654_s3 }
   0x4   :  { %8 = vsyncpa [#allocation4], 0 }
   0x5   :  { %10 = vsyncpa [#allocation4 + $0x1], 0 }
   0x6   :  { %11 = vsyncpa [#allocation7], 0 }
   0x7   :  { %13 = vsyncpa [#allocation7 + $0x1], 0 }
   0x8   :  { %14 = vsyncpa [#allocation5], 0 }
   0x9   :  { %16 = vsyncpa [#allocation5 + $0x1], 0  ;;  %s3450_s12 = smov 0   ;;  %s3452_s13 = smov 0  }
   0xa   :  { %s3454_s14 = smov 0   ;;  %s3456_s15 = smov 0  }
   0xb   :  { %s3458_s16 = smov 0   ;;  %s3460_s17 = smov 0  }
   0xc   :  { %s3462_s18 = smov 0   ;;  %s3464_s19 = smov 0  }
   0xd   :  { %s3466_s20 = smov 0   ;;  %s3468_s21 = smov 0  }
   0xe   :  { %s3470_s22 = smov 0   ;;  %s3472_s23 = smov 0  }
   0xf   :  { %s3474_s24 = smov 0   ;;  %s3476_s25 = smov 0  }
  0x10 LB: > { %4670 = sst [smem:[#allocation14_spill]] %s3363_s12  ;;  %s3519_s26 = sadd.s32 4294967295, %s3415_s25   ;;  %s3415_s25 = sphi %s3476_s25, %s22_s25   ;;  %s3411_s24 = sphi %s3474_s24, %s4723_s24   ;;  %s3407_s23 = sphi %s3472_s23, %s4722_s23   ;;  %s3403_s22 = sphi %s3470_s22, %s4721_s22   ;;  %s3399_s21 = sphi %s3468_s21, %s4720_s21   ;;  %s3395_s20 = sphi %s3466_s20, %s4709_s20   ;;  %s3391_s19 = sphi %s3464_s19, %s4719_s19   ;;  %s3387_s18 = sphi %s3462_s18, %s4718_s18   ;;  %s3383_s17 = sphi %s3460_s17, %s4717_s17   ;;  %s3379_s16 = sphi %s3458_s16, %s4716_s16   ;;  %s3375_s15 = sphi %s3456_s15, %s4715_s15   ;;  %s3371_s14 = sphi %s3454_s14, %s4706_s14   ;;  %s3367_s13 = sphi %s3452_s13, %s4714_s13   ;;  %s3363_s12 = sphi %s3450_s12, %s4713_s12  }
  0x11   : > { %4671 = sst [smem:[#allocation15_spill]] %s3371_s14  ;;  %s34_s28 = sadd.s32 1, %s3407_s23 }
  0x12   : > { %4672 = sst [smem:[#allocation16_spill]] %s3395_s20  ;;  %s41_s29 = sadd.s32 1, %s3411_s24 }
  0x13   : > { %p35_p0 = scmp.ge.s32.totalorder %s34_s28, 2  ;;  %s50_s30 = sadd.s32 1, %s3395_s20 }
  0x14   : > { %p57_p1 = scmp.ne.s32.totalorder %s3395_s20, %s3391_s19  ;;  %p58_p2 = scmp.eq.s32.totalorder %s3415_s25, 0 }
  0x15   : > { %s4725_s28 = smov (%p35_p0, %s34_s28), 0  ;;  %s4727_s29 = smov (!%p35_p0, %s41_s29), %s3411_s24 }
  0x16   : > { %4673 = sst [smem:[#allocation17_spill]] %s4725_s28  ;;  %s46_s4 = ssub.s32 %s3407_s23, %s4725_s28 }
  0x17   : > { %p3535_p3 = por %p58_p2, %p57_p1  ;;  %p43_p4 = scmp.ge.s32.totalorder %s4727_s29, 2 }
  0x18   : > { %p63_p5 = scmp.ne.s32.totalorder %s3391_s19, %s3387_s18  ;;  %p4655_p6 = scmp.eq.s32.totalorder %s3519_s26, 0 }
  0x19   : > { %s4674_s5 = scalar_select %p3535_p3, 1, 0 }
  0x1a   : > { %p76_p7 = scmp.eq.s32.totalorder %s46_s4, 0  ;;  %s4729_s29 = smov (%p43_p4, %s4727_s29), 0 }
  0x1b   : > { %4675 = sst [smem:[#allocation18_spill]] %s4729_s29  ;;  %p3545_p8 = por %p4655_p6, %p63_p5 }
  0x1c   : > { %s78_s7 = sadd.s32 1, %s3383_s17  ;;  %s45_s8 = ssub.s32 %s3411_s24, %s4729_s29 }
  0x1d   : > { %s4676_s6 = scalar_select %p3545_p8, 1, 0 }
  0x1e   : > { %p85_p9 = scmp.ne.s32.totalorder %s3383_s17, %s3379_s16  ;;  %s47_s9 = sor.u32 %s46_s4, %s45_s8 }
  0x1f   : > { %p91_p10 = scmp.ne.s32.totalorder %s3379_s16, %s3375_s15  ;;  %p48_p11 = scmp.eq.s32.totalorder %s47_s9, 0 }
  0x20   : > { %p3558_p12 = por %p85_p9, %p58_p2  ;;  %p130_p0 = scmp.eq.s32.totalorder %s45_s8, 0 }
  0x21   : > { %s3563_s11 = scalar_select %p76_p7, %s3383_s17, %s78_s7  }
  0x22   : > { %s4677_s10 = scalar_select %p3558_p12, 1, 0 }
  0x23   : > { %4678 = sst [smem:[#allocation19_spill]] %s3563_s11  ;;  %p3570_p13 = por %p91_p10, %p4655_p6 }
  0x24   : > { %s3566_s18 = scalar_select %p48_p11, %s3395_s20, %s50_s30  }
  0x25   : > { %s4680_s27 = scalar_select %p3570_p13, 1, 0 }
  0x26   : > { %4679 = sst [smem:[#allocation20_spill]] %s3566_s18  ;;  %s132_s4 = sadd.s32 1, %s3371_s14 }
  0x27   : > { %p142_p1 = scmp.ne.s32.totalorder %s3371_s14, %s3367_s13  ;;  %p143_p4 = scmp.eq.s32.totalorder %s3519_s26, 3 }
  0x28   : > { %s3578_s15 = scalar_select %p130_p0, %s3371_s14, %s132_s4  }
  0x29   : > { %p148_p2 = scmp.ne.s32.totalorder %s3367_s13, %s3363_s12  ;;  %s4682_s9 = sadd.s32 4294967294, %s3415_s25  }
  0x2a   : > { %4681 = sst [smem:[#allocation21_spill]] %s3578_s15  ;;  %p149_p5 = scmp.eq.s32.totalorder %s4682_s9, 3 }
  0x2b   : > { %p2887_p9 = scmp.ge.s32.totalorder %s3415_s25, 1  ;;  %p3586_p7 = por %p143_p4, %p142_p1 }
  0x2c   : > { %p156_p11 = scmp.lt.s32.totalorder %s3415_s25, 5  ;;  %p3591_p10 = por %p149_p5, %p148_p2 }
  0x2d   : > { %s4683_s7 = scalar_select %p3586_p7, 1, 0 }
  0x2e   : > { %s4684_s30 = scalar_select %p3591_p10, 1, 0 }
  0x2f   : > { %p3595_p6 = pnand %p2887_p9, %p156_p11  ;;  %s3417_s4 = smov [#allocation8]  }
  0x30   : > { %4685 = sst [smem:[#allocation22_spill]] %s4684_s30  ;;  %s172_s29 = sshll.u32 %s3417_s4, 4  ;;  %s173_s29 = int_to_ptr.vmem [resolvable:$true] %s172_s29 }
  0x31   : > { %s4686_s8 = scalar_select %p3595_p6, 1, 0 }
  0x32   : > { %p3044_p0 = pneg %p3595_p6  ;;  %p4687_p13 = scmp.eq.s32.totalorder %s3519_s26, 0 }
  0x33   : > { %s4689_s2 = sld [smem:[#allocation24_spill]] }
  0x34   : > { %p3603_p1 = pnand %p3044_p0, %p4687_p13 }
  0x36   : > { %p3179_p2 = pneg %p3603_p1 }
  0x39   : > { %s3177_s11 = scalar_lea.hbm %s4689_s2, 48 }
  0x3a   : > { %p3178_p4 = scmp.ne.s32.totalorder %s4689_s2, %s3177_s11  ;;  %p3184_p13 = scmp.lt.u32.totalorder %s3177_s11, %s4689_s2 }
  0x3c   : > { %p3180_p5 = pnand %p3179_p2, %p3178_p4 }
  0x3e   : > { %p3181_p9 = pneg %p3180_p5 }
  0x40   : > { %p3186_p11 = pnand %p3184_p13, %p3181_p9 }
  0x42   : > { %3189 = shalt.err (!%p3186_p11)
}
  0x43   : > { %s3190_s12 = scalar_lea.vmem %s173_s29, 48  ;;  %s3197_s28 = scalar_lea.vmem %s173_s29, 64 }
  0x44   : > { %p3191_p0 = scmp.ne.s32.totalorder %s173_s29, %s3190_s12  ;;  %p3198_p8 = scmp.lt.s32.totalorder %s173_s29, %s173_s29 }
  0x45   : > { %p3199_p6 = scmp.lt.s32.totalorder %s3197_s28, %s3190_s12 }
  0x46   : > { %p3193_p10 = pnand %p3191_p0, %p3179_p2 }
  0x47   : > { %p3200_p12 = por %p3199_p6, %p3198_p8 }
  0x48   : > { %p3194_p7 = pneg %p3193_p10 }
  0x4a   : > { %p3201_p3 = pnand %p3200_p12, %p3194_p7 }
  0x4c   : > { %3204 = shalt.err (!%p3201_p3)
}
  0x4d   : > { %3047 = dma.hbm_to_vmem [thread:$0]  (!%p3603_p1), %s4689_s2, 48, %s173_s29, [#allocation7]  }
  0x4e   : > { %p2889_p4 = scmp.ge.s32.totalorder %s3415_s25, 4 }
  0x4f   : > { %p4690_p5 = scmp.ne.s32.totalorder (!%p2889_p4), %s4674_s5, 0 }
  0x50   : > { %179 = sbr.rel (%p2889_p4) target bundleno = 156 (0x9c), region = 20 }
  0x57   : > { %182 = sbr.rel (!%p4690_p5) target bundleno = 129 (0x81), region = 24  ;;  %s183_s11 = sand.u32 (%p4690_p5), 1, %s3395_s20  }
  0x58   : > { %s2891_s12 = sshll.u32 (%p4690_p5), %s3411_s24, 6  ;;  %s2890_s15 = sshll.u32 (%p4690_p5), %s183_s11, 10 }
  0x59   : > { %s2892_s30 = sshll.u32 (%p4690_p5), %s3407_s23, 1  ;;  %s190_s4 = ssub.s32 (%p4690_p5), 75, %s2891_s12 }
  0x5a   : > { %p191_p3 = scmp.lt.s32.totalorder (%p4690_p5), %s190_s4, 64  ;;  %s3632_s28 = scalar_lea.sflag (%p4690_p5), [#allocation4], %s183_s11 }
  0x5b   : > { %s187_s14 = scalar_lea.vmem (%p4690_p5), [#allocation3], %s2890_s15 }
  0x5e   : > { %s4731_s4 = smov (!%p191_p3, %s190_s4), 64 }
  0x5f   : > { %s3629_s9 = sshll.u32 %s4731_s4, 8 }
  0x60   : > { %s196_s29 = ssub.s32 16384, %s3629_s9 }
  0x61   : > { %197 = vsyncadd %s3632_s28, %s196_s29  ;;  %p2895_p6 = scmp.ne.s32.totalorder %s3629_s9, 0  ;;  %s2918_s5 = sshll.u32 %s3411_s24, 8 }
  0x62   : > { %s200_s18 = sadd.s32 %s2918_s5, %s2892_s30  ;;  %s204_s2 = sshll.u32 %s187_s14, 4  ;;  %s3637_s2 = int_to_ptr.vmem [resolvable:$true] %s204_s2 }
  0x63   : > { %s2897_s12 = sshll.u32 %s200_s18, 7  ;;  %s4691_s0 = sld [smem:[#allocation23_spill]] }
  0x69   : > { %s3642_s3 = scalar_lea.hbm %s4691_s0, %s2897_s12  ;;  %s3209_s29 = scalar_lea.hbm %s4691_s0, 38400 }
  0x6a   : > { %s3205_s11 = scalar_lea.hbm %s3642_s3, %s3629_s9  ;;  %p3210_p10 = scmp.lt.u32.totalorder %s3642_s3, %s4691_s0 }
  0x6b   : > { %p3206_p8 = scmp.ne.s32.totalorder %s3642_s3, %s3205_s11  ;;  %p3211_p1 = scmp.lt.u32.totalorder %s3209_s29, %s3205_s11 }
  0x6c   : > { %p3213_p9 = scmp.lt.u32.totalorder %s3205_s11, %s3642_s3 }
  0x6d   : > { %p3207_p12 = pnand %p3206_p8, %p2895_p6  ;;  %p3212_p2 = por %p3211_p1, %p3210_p10 }
  0x6f   : > { %p3208_p7 = pneg %p3207_p12  ;;  %p3214_p13 = por %p3213_p9, %p3212_p2 }
  0x71   : > { %p3215_p11 = pnand %p3214_p13, %p3208_p7 }
  0x73   : > { %3218 = shalt.err (!%p3215_p11)
}
  0x74   : > { %s3219_s20 = scalar_lea.vmem %s3637_s2, %s3629_s9  ;;  %s3418_s18 = smov [#allocation3]  }
  0x75   : > { %p3220_p0 = scmp.ne.s32.totalorder %s3637_s2, %s3219_s20  ;;  %s3223_s12 = sshll.u32 %s3418_s18, 4  ;;  %s3224_s12 = int_to_ptr.vmem [resolvable:$false] %s3223_s12 }
  0x76   : > { %s3225_s4 = scalar_lea.vmem %s3224_s12, 32768  ;;  %p3226_p3 = scmp.lt.s32.totalorder %s3637_s2, %s3224_s12 }
  0x77   : > { %p3221_p4 = pnand %p3220_p0, %p2895_p6  ;;  %p3227_p8 = scmp.lt.s32.totalorder %s3225_s4, %s3219_s20 }
  0x79   : > { %p3222_p5 = pneg %p3221_p4  ;;  %p3228_p12 = por %p3227_p8, %p3226_p3 }
  0x7b   : > { %p3229_p10 = pnand %p3228_p12, %p3222_p5 }
  0x7d   : > { %3232 = shalt.err (!%p3229_p10)
}
  0x7e   : > { %s3419_s11 = smov 512   ;;  %s3420_s15 = smov 256  }
  0x7f   : > { %s3421_s30 = smov 16  }
  0x80   : > { %210 = dma.hbm_to_vmem [thread:$0]  (%p2895_p6), %s3642_s3, %s3629_s9, %s3637_s2, %s3632_s28, %s3419_s11, %s3420_s15, %s3421_s30  }
  0x81 PF: > { %s214_s29 = sand.u32 1, %s3415_s25   ;;  %s216_s14 = sand.u32 1, %s3383_s17  }
  0x82   : > { %s3031_s5 = smul.u32 768, %s216_s14  ;;  %s3679_s3 = scalar_lea.sflag [#allocation7], %s214_s29 }
  0x83   : > { %s3032_s20 = smul.u32 12288, %s3407_s23  ;;  %p4692_p7 = scmp.ne.s32.totalorder %s4677_s10, 0 }
  0x84   : > { %s218_s0 = scalar_lea.vmem [#allocation6], %s3031_s5  ;;  %s3237_s15 = scalar_lea.hbm %s4652_s1, 24576 }
  0x85   : > { %s3675_s4 = scalar_lea.hbm %s4652_s1, %s3032_s20  ;;  %s228_s2 = sshll.u32 %s218_s0, 4  ;;  %s3677_s2 = int_to_ptr.vmem [resolvable:$true] %s228_s2 }
  0x86   : > { %s3233_s9 = scalar_lea.hbm %s3675_s4, 12288  ;;  %p3238_p9 = scmp.lt.u32.totalorder %s3675_s4, %s4652_s1 }
  0x87   : > { %p3234_p6 = scmp.ne.s32.totalorder %s3675_s4, %s3233_s9  ;;  %p3239_p13 = scmp.lt.u32.totalorder %s3237_s15, %s3233_s9 }
  0x88   : > { %p3241_p0 = scmp.lt.u32.totalorder %s3233_s9, %s3675_s4 }
  0x89   : > { %p3235_p1 = pnand %p3234_p6, %p4692_p7  ;;  %p3240_p11 = por %p3239_p13, %p3238_p9 }
  0x8b   : > { %p3236_p2 = pneg %p3235_p1  ;;  %p3242_p4 = por %p3241_p0, %p3240_p11 }
  0x8d   : > { %p3243_p5 = pnand %p3242_p4, %p3236_p2 }
  0x8f   : > { %3246 = shalt.err (!%p3243_p5)
}
  0x90   : > { %s3247_s0 = scalar_lea.vmem %s3677_s2, 12288  ;;  %s3422_s29 = smov [#allocation6]  }
  0x91   : > { %p3248_p3 = scmp.ne.s32.totalorder %s3677_s2, %s3247_s0  ;;  %s3251_s5 = sshll.u32 %s3422_s29, 4  ;;  %s3252_s5 = int_to_ptr.vmem [resolvable:$false] %s3251_s5 }
  0x92   : > { %s3253_s20 = scalar_lea.vmem %s3252_s5, 24576  ;;  %p3254_p10 = scmp.lt.s32.totalorder %s3677_s2, %s3252_s5 }
  0x93   : > { %p3249_p8 = pnand %p3248_p3, %p4692_p7  ;;  %p3255_p6 = scmp.lt.s32.totalorder %s3253_s20, %s3247_s0 }
  0x95   : > { %p3250_p12 = pneg %p3249_p8  ;;  %p3256_p1 = por %p3255_p6, %p3254_p10 }
  0x97   : > { %p3257_p9 = pnand %p3256_p1, %p3250_p12 }
  0x99   : > { %3260 = shalt.err (!%p3257_p9)
}
  0x9a   : > { %s3423_s18 = smov 384   ;;  %s3424_s12 = smov 24  }
  0x9b   : > { %3038 = dma.hbm_to_vmem [thread:$0]  (%p4692_p7), %s3675_s4, 12288, %s3677_s2, %s3679_s3, %s3423_s18, %s3423_s18, %s3424_s12  }
  0x9c PF: > { %p4693_p2 = scmp.ne.s32.totalorder %s4686_s8, 0 }
  0x9d   : > { %s242_s9 = sand.u32 (!%p4693_p2), 1, %s3391_s19   ;;  %p4694_p13 = scmp.ne.s32.totalorder (!%p4693_p2), %s4676_s6, 0 }
  0x9e   : > { %240 = sbr.rel (%p4693_p2) target bundleno = 936 (0x3a8), region = 32  ;;  %s2904_s28 = sshll.u32 (!%p4693_p2), %s242_s9, 10 }
  0x9f   : > { %s243_s11 = scalar_lea.sflag (!%p4693_p2), [#allocation4], %s242_s9  ;;  %s3706_s15 = scalar_lea.vmem (!%p4693_p2), [#allocation3], %s2904_s28 }
  0xa5   : > { %3346 = dma.done.wait (%p4694_p13), %s243_s11, 16384  }
  0xa6   : > { %3348 = vsyncadd (%p4694_p13), %s243_s11, 4294950912  ;;  %s251_s10 = sand.u32 1, %s3519_s26   ;;  %s253_s4 = sand.u32 1, %s3379_s16  }
  0xa7   : > { %s3033_s2 = smul.u32 768, %s253_s4  ;;  %s252_s8 = scalar_lea.sflag [#allocation7], %s251_s10 }
  0xa8   : > { %p4695_p7 = scmp.ne.s32.totalorder %s4680_s27, 0 }
  0xa9   : > { %s3714_s3 = scalar_lea.vmem [#allocation6], %s3033_s2 }
  0xaa   : > { %3350 = dma.done.wait (%p4695_p7), %s252_s8, 12288  }
  0xab   : > { %3352 = vsyncadd (%p4695_p7), %s252_s8, 4294955008  ;;  %p4696_p11 = scmp.eq.s32.totalorder %s3519_s26, 0 }
  0xad   : > { %3354 = dma.done.wait (%p4696_p11), [#allocation7], 48   ;;  %p4697_p0 = pmov %p4696_p11 }
  0xae   : > { %s284_s6 = sand.u32 1, %s3367_s13   ;;  %p2906_p4 = scmp.ne.s32.totalorder %s3399_s21, 0 }
  0xaf   : > { %3356 = vsyncadd (%p4697_p0), [#allocation7], 4294967248  ;;  %s3034_s30 = smul.u32 1536, %s284_s6  ;;  %v3425_v0 = vmov (!%p2906_p4), 0.0  }
  0xb0   : > { %307 = sbr.rel (%p2906_p4) target bundleno = 272 (0x110), region = 48  ;;  %308 = vst [vmem:[#allocation2] sm:$0xff] (!%p2906_p4), %v3425_v0  ;;  %309 = vst [vmem:[#allocation2 + $0x8] sm:$0xff] (!%p2906_p4), %v3425_v0 }
  0xb1   : > { %s3727_s14 = scalar_lea.vmem [#allocation9], %s3034_s30  ;;  %310 = vst [vmem:[#allocation2 + $0x10] sm:$0xff] (!%p2906_p4), %v3425_v0  ;;  %311 = vst [vmem:[#allocation2 + $0x18] sm:$0xff] (!%p2906_p4), %v3425_v0 }
  0xb2   : > { %312 = vst [vmem:[#allocation2 + $0x20] sm:$0xff] (!%p2906_p4), %v3425_v0  ;;  %313 = vst [vmem:[#allocation2 + $0x28] sm:$0xff] (!%p2906_p4), %v3425_v0 }
  0xb3   : > { %314 = vst [vmem:[#allocation2 + $0x30] sm:$0xff] (!%p2906_p4), %v3425_v0  ;;  %315 = vst [vmem:[#allocation2 + $0x38] sm:$0xff] (!%p2906_p4), %v3425_v0 }
  0xb4   : > { %316 = vst [vmem:[#allocation2 + $0x40] sm:$0xff] (!%p2906_p4), %v3425_v0  ;;  %317 = vst [vmem:[#allocation2 + $0x48] sm:$0xff] (!%p2906_p4), %v3425_v0 }
  0xb5   : > { %318 = vst [vmem:[#allocation2 + $0x50] sm:$0xff] (!%p2906_p4), %v3425_v0  ;;  %319 = vst [vmem:[#allocation2 + $0x58] sm:$0xff] (!%p2906_p4), %v3425_v0 }
  0xb6   : > { %320 = vst [vmem:[#allocation2 + $0x60] sm:$0xff] (!%p2906_p4), %v3425_v0  ;;  %321 = vst [vmem:[#allocation2 + $0x68] sm:$0xff] (!%p2906_p4), %v3425_v0 }
  0xb7   : > { %322 = vst [vmem:[#allocation2 + $0x70] sm:$0xff] %v3425_v0  ;;  %323 = vst [vmem:[#allocation2 + $0x78] sm:$0xff] %v3425_v0 }
  0xb8   : > { %324 = vst [vmem:[#allocation2 + $0x80] sm:$0xff] %v3425_v0  ;;  %325 = vst [vmem:[#allocation2 + $0x88] sm:$0xff] %v3425_v0 }
  0xb9   : > { %326 = vst [vmem:[#allocation2 + $0x90] sm:$0xff] %v3425_v0  ;;  %327 = vst [vmem:[#allocation2 + $0x98] sm:$0xff] %v3425_v0 }
  0xba   : > { %328 = vst [vmem:[#allocation2 + $0xa0] sm:$0xff] %v3425_v0  ;;  %329 = vst [vmem:[#allocation2 + $0xa8] sm:$0xff] %v3425_v0 }
  0xbb   : > { %330 = vst [vmem:[#allocation2 + $0xb0] sm:$0xff] %v3425_v0  ;;  %331 = vst [vmem:[#allocation2 + $0xb8] sm:$0xff] %v3425_v0 }
  0xbc   : > { %332 = vst [vmem:[#allocation2 + $0xc0] sm:$0xff] %v3425_v0  ;;  %333 = vst [vmem:[#allocation2 + $0xc8] sm:$0xff] %v3425_v0 }
  0xbd   : > { %334 = vst [vmem:[#allocation2 + $0xd0] sm:$0xff] %v3425_v0  ;;  %335 = vst [vmem:[#allocation2 + $0xd8] sm:$0xff] %v3425_v0 }
  0xbe   : > { %336 = vst [vmem:[#allocation2 + $0xe0] sm:$0xff] %v3425_v0  ;;  %337 = vst [vmem:[#allocation2 + $0xe8] sm:$0xff] %v3425_v0 }
  0xbf   : > { %338 = vst [vmem:[#allocation2 + $0xf0] sm:$0xff] %v3425_v0  ;;  %339 = vst [vmem:[#allocation2 + $0xf8] sm:$0xff] %v3425_v0 }
  0xc0   : > { %340 = vst [vmem:[#allocation2 + $0x100] sm:$0xff] %v3425_v0  ;;  %341 = vst [vmem:[#allocation2 + $0x108] sm:$0xff] %v3425_v0 }
  0xc1   : > { %342 = vst [vmem:[#allocation2 + $0x110] sm:$0xff] %v3425_v0  ;;  %343 = vst [vmem:[#allocation2 + $0x118] sm:$0xff] %v3425_v0 }
  0xc2   : > { %344 = vst [vmem:[#allocation2 + $0x120] sm:$0xff] %v3425_v0  ;;  %345 = vst [vmem:[#allocation2 + $0x128] sm:$0xff] %v3425_v0 }
  0xc3   : > { %346 = vst [vmem:[#allocation2 + $0x130] sm:$0xff] %v3425_v0  ;;  %347 = vst [vmem:[#allocation2 + $0x138] sm:$0xff] %v3425_v0 }
  0xc4   : > { %348 = vst [vmem:[#allocation2 + $0x140] sm:$0xff] %v3425_v0  ;;  %349 = vst [vmem:[#allocation2 + $0x148] sm:$0xff] %v3425_v0 }
  0xc5   : > { %350 = vst [vmem:[#allocation2 + $0x150] sm:$0xff] %v3425_v0  ;;  %351 = vst [vmem:[#allocation2 + $0x158] sm:$0xff] %v3425_v0 }
  0xc6   : > { %352 = vst [vmem:[#allocation2 + $0x160] sm:$0xff] %v3425_v0  ;;  %353 = vst [vmem:[#allocation2 + $0x168] sm:$0xff] %v3425_v0 }
  0xc7   : > { %354 = vst [vmem:[#allocation2 + $0x170] sm:$0xff] %v3425_v0  ;;  %355 = vst [vmem:[#allocation2 + $0x178] sm:$0xff] %v3425_v0 }
  0xc8   : > { %356 = vst [vmem:[#allocation2 + $0x180] sm:$0xff] %v3425_v0  ;;  %357 = vst [vmem:[#allocation2 + $0x188] sm:$0xff] %v3425_v0 }
  0xc9   : > { %358 = vst [vmem:[#allocation2 + $0x190] sm:$0xff] %v3425_v0  ;;  %359 = vst [vmem:[#allocation2 + $0x198] sm:$0xff] %v3425_v0 }
  0xca   : > { %360 = vst [vmem:[#allocation2 + $0x1a0] sm:$0xff] %v3425_v0  ;;  %361 = vst [vmem:[#allocation2 + $0x1a8] sm:$0xff] %v3425_v0 }
  0xcb   : > { %362 = vst [vmem:[#allocation2 + $0x1b0] sm:$0xff] %v3425_v0  ;;  %363 = vst [vmem:[#allocation2 + $0x1b8] sm:$0xff] %v3425_v0 }
  0xcc   : > { %364 = vst [vmem:[#allocation2 + $0x1c0] sm:$0xff] %v3425_v0  ;;  %365 = vst [vmem:[#allocation2 + $0x1c8] sm:$0xff] %v3425_v0 }
  0xcd   : > { %366 = vst [vmem:[#allocation2 + $0x1d0] sm:$0xff] %v3425_v0  ;;  %367 = vst [vmem:[#allocation2 + $0x1d8] sm:$0xff] %v3425_v0 }
  0xce   : > { %368 = vst [vmem:[#allocation2 + $0x1e0] sm:$0xff] %v3425_v0  ;;  %369 = vst [vmem:[#allocation2 + $0x1e8] sm:$0xff] %v3425_v0 }
  0xcf   : > { %370 = vst [vmem:[#allocation2 + $0x1f0] sm:$0xff] %v3425_v0  ;;  %371 = vst [vmem:[#allocation2 + $0x1f8] sm:$0xff] %v3425_v0 }
  0xd0   : > { %372 = vst [vmem:[#allocation2 + $0x200] sm:$0xff] %v3425_v0  ;;  %373 = vst [vmem:[#allocation2 + $0x208] sm:$0xff] %v3425_v0 }
  0xd1   : > { %374 = vst [vmem:[#allocation2 + $0x210] sm:$0xff] %v3425_v0  ;;  %375 = vst [vmem:[#allocation2 + $0x218] sm:$0xff] %v3425_v0 }
  0xd2   : > { %376 = vst [vmem:[#allocation2 + $0x220] sm:$0xff] %v3425_v0  ;;  %377 = vst [vmem:[#allocation2 + $0x228] sm:$0xff] %v3425_v0 }
  0xd3   : > { %378 = vst [vmem:[#allocation2 + $0x230] sm:$0xff] %v3425_v0  ;;  %379 = vst [vmem:[#allocation2 + $0x238] sm:$0xff] %v3425_v0 }
  0xd4   : > { %380 = vst [vmem:[#allocation2 + $0x240] sm:$0xff] %v3425_v0  ;;  %381 = vst [vmem:[#allocation2 + $0x248] sm:$0xff] %v3425_v0 }
  0xd5   : > { %382 = vst [vmem:[#allocation2 + $0x250] sm:$0xff] %v3425_v0  ;;  %383 = vst [vmem:[#allocation2 + $0x258] sm:$0xff] %v3425_v0 }
  0xd6   : > { %384 = vst [vmem:[#allocation2 + $0x260] sm:$0xff] %v3425_v0  ;;  %385 = vst [vmem:[#allocation2 + $0x268] sm:$0xff] %v3425_v0 }
  0xd7   : > { %386 = vst [vmem:[#allocation2 + $0x270] sm:$0xff] %v3425_v0  ;;  %387 = vst [vmem:[#allocation2 + $0x278] sm:$0xff] %v3425_v0 }
  0xd8   : > { %388 = vst [vmem:[#allocation2 + $0x280] sm:$0xff] %v3425_v0  ;;  %389 = vst [vmem:[#allocation2 + $0x288] sm:$0xff] %v3425_v0 }
  0xd9   : > { %390 = vst [vmem:[#allocation2 + $0x290] sm:$0xff] %v3425_v0  ;;  %391 = vst [vmem:[#allocation2 + $0x298] sm:$0xff] %v3425_v0 }
  0xda   : > { %392 = vst [vmem:[#allocation2 + $0x2a0] sm:$0xff] %v3425_v0  ;;  %393 = vst [vmem:[#allocation2 + $0x2a8] sm:$0xff] %v3425_v0 }
  0xdb   : > { %394 = vst [vmem:[#allocation2 + $0x2b0] sm:$0xff] %v3425_v0  ;;  %395 = vst [vmem:[#allocation2 + $0x2b8] sm:$0xff] %v3425_v0 }
  0xdc   : > { %396 = vst [vmem:[#allocation2 + $0x2c0] sm:$0xff] %v3425_v0  ;;  %397 = vst [vmem:[#allocation2 + $0x2c8] sm:$0xff] %v3425_v0 }
  0xdd   : > { %398 = vst [vmem:[#allocation2 + $0x2d0] sm:$0xff] %v3425_v0  ;;  %399 = vst [vmem:[#allocation2 + $0x2d8] sm:$0xff] %v3425_v0 }
  0xde   : > { %400 = vst [vmem:[#allocation2 + $0x2e0] sm:$0xff] %v3425_v0  ;;  %401 = vst [vmem:[#allocation2 + $0x2e8] sm:$0xff] %v3425_v0 }
  0xdf   : > { %402 = vst [vmem:[#allocation2 + $0x2f0] sm:$0xff] %v3425_v0  ;;  %403 = vst [vmem:[#allocation2 + $0x2f8] sm:$0xff] %v3425_v0 }
  0xe0   : > { %404 = vst [vmem:[#allocation2 + $0x300] sm:$0xff] %v3425_v0  ;;  %405 = vst [vmem:[#allocation2 + $0x308] sm:$0xff] %v3425_v0 }
  0xe1   : > { %406 = vst [vmem:[#allocation2 + $0x310] sm:$0xff] %v3425_v0  ;;  %407 = vst [vmem:[#allocation2 + $0x318] sm:$0xff] %v3425_v0 }
  0xe2   : > { %408 = vst [vmem:[#allocation2 + $0x320] sm:$0xff] %v3425_v0  ;;  %409 = vst [vmem:[#allocation2 + $0x328] sm:$0xff] %v3425_v0 }
  0xe3   : > { %410 = vst [vmem:[#allocation2 + $0x330] sm:$0xff] %v3425_v0  ;;  %411 = vst [vmem:[#allocation2 + $0x338] sm:$0xff] %v3425_v0 }
  0xe4   : > { %412 = vst [vmem:[#allocation2 + $0x340] sm:$0xff] %v3425_v0  ;;  %413 = vst [vmem:[#allocation2 + $0x348] sm:$0xff] %v3425_v0 }
  0xe5   : > { %414 = vst [vmem:[#allocation2 + $0x350] sm:$0xff] %v3425_v0  ;;  %415 = vst [vmem:[#allocation2 + $0x358] sm:$0xff] %v3425_v0 }
  0xe6   : > { %416 = vst [vmem:[#allocation2 + $0x360] sm:$0xff] %v3425_v0  ;;  %417 = vst [vmem:[#allocation2 + $0x368] sm:$0xff] %v3425_v0 }
  0xe7   : > { %418 = vst [vmem:[#allocation2 + $0x370] sm:$0xff] %v3425_v0  ;;  %419 = vst [vmem:[#allocation2 + $0x378] sm:$0xff] %v3425_v0 }
  0xe8   : > { %420 = vst [vmem:[#allocation2 + $0x380] sm:$0xff] %v3425_v0  ;;  %421 = vst [vmem:[#allocation2 + $0x388] sm:$0xff] %v3425_v0 }
  0xe9   : > { %422 = vst [vmem:[#allocation2 + $0x390] sm:$0xff] %v3425_v0  ;;  %423 = vst [vmem:[#allocation2 + $0x398] sm:$0xff] %v3425_v0 }
  0xea   : > { %424 = vst [vmem:[#allocation2 + $0x3a0] sm:$0xff] %v3425_v0  ;;  %425 = vst [vmem:[#allocation2 + $0x3a8] sm:$0xff] %v3425_v0 }
  0xeb   : > { %426 = vst [vmem:[#allocation2 + $0x3b0] sm:$0xff] %v3425_v0  ;;  %427 = vst [vmem:[#allocation2 + $0x3b8] sm:$0xff] %v3425_v0 }
  0xec   : > { %428 = vst [vmem:[#allocation2 + $0x3c0] sm:$0xff] %v3425_v0  ;;  %429 = vst [vmem:[#allocation2 + $0x3c8] sm:$0xff] %v3425_v0 }
  0xed   : > { %430 = vst [vmem:[#allocation2 + $0x3d0] sm:$0xff] %v3425_v0  ;;  %431 = vst [vmem:[#allocation2 + $0x3d8] sm:$0xff] %v3425_v0 }
  0xee   : > { %432 = vst [vmem:[#allocation2 + $0x3e0] sm:$0xff] %v3425_v0  ;;  %433 = vst [vmem:[#allocation2 + $0x3e8] sm:$0xff] %v3425_v0 }
  0xef   : > { %434 = vst [vmem:[#allocation2 + $0x3f0] sm:$0xff] %v3425_v0  ;;  %435 = vst [vmem:[#allocation2 + $0x3f8] sm:$0xff] %v3425_v0 }
  0xf0   : > { %436 = vst [vmem:[#allocation2 + $0x400] sm:$0xff] %v3425_v0  ;;  %437 = vst [vmem:[#allocation2 + $0x408] sm:$0xff] %v3425_v0 }
  0xf1   : > { %438 = vst [vmem:[#allocation2 + $0x410] sm:$0xff] %v3425_v0  ;;  %439 = vst [vmem:[#allocation2 + $0x418] sm:$0xff] %v3425_v0 }
  0xf2   : > { %440 = vst [vmem:[#allocation2 + $0x420] sm:$0xff] %v3425_v0  ;;  %441 = vst [vmem:[#allocation2 + $0x428] sm:$0xff] %v3425_v0 }
  0xf3   : > { %442 = vst [vmem:[#allocation2 + $0x430] sm:$0xff] %v3425_v0  ;;  %443 = vst [vmem:[#allocation2 + $0x438] sm:$0xff] %v3425_v0 }
  0xf4   : > { %444 = vst [vmem:[#allocation2 + $0x440] sm:$0xff] %v3425_v0  ;;  %445 = vst [vmem:[#allocation2 + $0x448] sm:$0xff] %v3425_v0 }
  0xf5   : > { %446 = vst [vmem:[#allocation2 + $0x450] sm:$0xff] %v3425_v0  ;;  %447 = vst [vmem:[#allocation2 + $0x458] sm:$0xff] %v3425_v0 }
  0xf6   : > { %448 = vst [vmem:[#allocation2 + $0x460] sm:$0xff] %v3425_v0  ;;  %449 = vst [vmem:[#allocation2 + $0x468] sm:$0xff] %v3425_v0 }
  0xf7   : > { %450 = vst [vmem:[#allocation2 + $0x470] sm:$0xff] %v3425_v0  ;;  %451 = vst [vmem:[#allocation2 + $0x478] sm:$0xff] %v3425_v0 }
  0xf8   : > { %452 = vst [vmem:[#allocation2 + $0x480] sm:$0xff] %v3425_v0  ;;  %453 = vst [vmem:[#allocation2 + $0x488] sm:$0xff] %v3425_v0 }
  0xf9   : > { %454 = vst [vmem:[#allocation2 + $0x490] sm:$0xff] %v3425_v0  ;;  %455 = vst [vmem:[#allocation2 + $0x498] sm:$0xff] %v3425_v0 }
  0xfa   : > { %456 = vst [vmem:[#allocation2 + $0x4a0] sm:$0xff] %v3425_v0  ;;  %457 = vst [vmem:[#allocation2 + $0x4a8] sm:$0xff] %v3425_v0 }
  0xfb   : > { %458 = vst [vmem:[#allocation2 + $0x4b0] sm:$0xff] %v3425_v0  ;;  %459 = vst [vmem:[#allocation2 + $0x4b8] sm:$0xff] %v3425_v0 }
  0xfc   : > { %460 = vst [vmem:[#allocation2 + $0x4c0] sm:$0xff] %v3425_v0  ;;  %461 = vst [vmem:[#allocation2 + $0x4c8] sm:$0xff] %v3425_v0 }
  0xfd   : > { %462 = vst [vmem:[#allocation2 + $0x4d0] sm:$0xff] %v3425_v0  ;;  %463 = vst [vmem:[#allocation2 + $0x4d8] sm:$0xff] %v3425_v0 }
  0xfe   : > { %464 = vst [vmem:[#allocation2 + $0x4e0] sm:$0xff] %v3425_v0  ;;  %465 = vst [vmem:[#allocation2 + $0x4e8] sm:$0xff] %v3425_v0 }
  0xff   : > { %466 = vst [vmem:[#allocation2 + $0x4f0] sm:$0xff] %v3425_v0  ;;  %467 = vst [vmem:[#allocation2 + $0x4f8] sm:$0xff] %v3425_v0 }
 0x100   : > { %468 = vst [vmem:[#allocation2 + $0x500] sm:$0xff] %v3425_v0  ;;  %469 = vst [vmem:[#allocation2 + $0x508] sm:$0xff] %v3425_v0 }
 0x101   : > { %470 = vst [vmem:[#allocation2 + $0x510] sm:$0xff] %v3425_v0  ;;  %471 = vst [vmem:[#allocation2 + $0x518] sm:$0xff] %v3425_v0 }
 0x102   : > { %472 = vst [vmem:[#allocation2 + $0x520] sm:$0xff] %v3425_v0  ;;  %473 = vst [vmem:[#allocation2 + $0x528] sm:$0xff] %v3425_v0 }
 0x103   : > { %474 = vst [vmem:[#allocation2 + $0x530] sm:$0xff] %v3425_v0  ;;  %475 = vst [vmem:[#allocation2 + $0x538] sm:$0xff] %v3425_v0 }
 0x104   : > { %476 = vst [vmem:[#allocation2 + $0x540] sm:$0xff] %v3425_v0  ;;  %477 = vst [vmem:[#allocation2 + $0x548] sm:$0xff] %v3425_v0 }
 0x105   : > { %478 = vst [vmem:[#allocation2 + $0x550] sm:$0xff] %v3425_v0  ;;  %479 = vst [vmem:[#allocation2 + $0x558] sm:$0xff] %v3425_v0 }
 0x106   : > { %480 = vst [vmem:[#allocation2 + $0x560] sm:$0xff] %v3425_v0  ;;  %481 = vst [vmem:[#allocation2 + $0x568] sm:$0xff] %v3425_v0 }
 0x107   : > { %482 = vst [vmem:[#allocation2 + $0x570] sm:$0xff] %v3425_v0  ;;  %483 = vst [vmem:[#allocation2 + $0x578] sm:$0xff] %v3425_v0 }
 0x108   : > { %484 = vst [vmem:[#allocation2 + $0x580] sm:$0xff] %v3425_v0  ;;  %485 = vst [vmem:[#allocation2 + $0x588] sm:$0xff] %v3425_v0 }
 0x109   : > { %486 = vst [vmem:[#allocation2 + $0x590] sm:$0xff] %v3425_v0  ;;  %487 = vst [vmem:[#allocation2 + $0x598] sm:$0xff] %v3425_v0 }
 0x10a   : > { %488 = vst [vmem:[#allocation2 + $0x5a0] sm:$0xff] %v3425_v0  ;;  %489 = vst [vmem:[#allocation2 + $0x5a8] sm:$0xff] %v3425_v0 }
 0x10b   : > { %490 = vst [vmem:[#allocation2 + $0x5b0] sm:$0xff] %v3425_v0  ;;  %491 = vst [vmem:[#allocation2 + $0x5b8] sm:$0xff] %v3425_v0 }
 0x10c   : > { %492 = vst [vmem:[#allocation2 + $0x5c0] sm:$0xff] %v3425_v0  ;;  %493 = vst [vmem:[#allocation2 + $0x5c8] sm:$0xff] %v3425_v0 }
 0x10d   : > { %494 = vst [vmem:[#allocation2 + $0x5d0] sm:$0xff] %v3425_v0  ;;  %495 = vst [vmem:[#allocation2 + $0x5d8] sm:$0xff] %v3425_v0 }
 0x10e   : > { %496 = vst [vmem:[#allocation2 + $0x5e0] sm:$0xff] %v3425_v0  ;;  %497 = vst [vmem:[#allocation2 + $0x5e8] sm:$0xff] %v3425_v0 }
 0x10f   : > { %498 = vst [vmem:[#allocation2 + $0x5f0] sm:$0xff] %v3425_v0  ;;  %499 = vst [vmem:[#allocation2 + $0x5f8] sm:$0xff] %v3425_v0 }
 0x110 PF: > { %v821_v1 = vld [vmem:[%s3714_s3 + $0x8] sm:$0xff]  ;;  %v824_v2 = vld [vmem:[%s3714_s3 + $0x20] sm:$0xff]  ;;  %v3426_v5 = vmov 0.0|0.0   ;;  %v823_v6 = vld [vmem:[%s3714_s3 + $0x18] sm:$0xff]  ;;  %p2907_p5 = scmp.ne.s32.totalorder %s3399_s21, 1 }
 0x111   : > { %v820_v3 = vld [vmem:[%s3714_s3] sm:$0xff]  ;;  %v2919_v4 = vpack.c.bf16 %v824_v2, %v821_v1  ;;  %2983 = vmatprep.subr.bf16.mxu1 %v3426_v5  ;;  %v822_v7 = vld [vmem:[%s3714_s3 + $0x10] sm:$0xff]  ;;  %v825_v8 = vld [vmem:[%s3714_s3 + $0x28] sm:$0xff] }
 0x112   : > { %v2921_v9 = vpack.c.bf16 %v823_v6, %v820_v3  ;;  %v2984_v10 = vpack.c.bf16 %v825_v8, %v822_v7  ;;  %v827_v11 = vld [vmem:[%s3714_s3 + $0x38] sm:$0xff]  ;;  %v830_v12 = vld [vmem:[%s3714_s3 + $0x50] sm:$0xff]  ;;  %v829_v15 = vld [vmem:[%s3714_s3 + $0x48] sm:$0xff] }
 0x113   : > { %v826_v13 = vld [vmem:[%s3714_s3 + $0x30] sm:$0xff]  ;;  %2920 = vmatprep.subr.bf16.mxu0 %v2919_v4  ;;  %v2923_v14 = vpack.c.bf16 %v830_v12, %v827_v11  ;;  %v828_v16 = vld [vmem:[%s3714_s3 + $0x40] sm:$0xff]  ;;  %v831_v17 = vld [vmem:[%s3714_s3 + $0x58] sm:$0xff] }
 0x114   : > { %2922 = vmatpush1.bf16.msra.mxu0 %v2921_v9  ;;  %2985 = vmatpush1.bf16.msra.mxu1 %v2984_v10  ;;  %v2925_v18 = vpack.c.bf16 %v829_v15, %v826_v13  ;;  %v2987_v19 = vpack.c.bf16 %v831_v17, %v828_v16  ;;  %v833_v20 = vld [vmem:[%s3714_s3 + $0x68] sm:$0xff]  ;;  %v836_v21 = vld [vmem:[%s3714_s3 + $0x80] sm:$0xff]  ;;  %v835_v24 = vld [vmem:[%s3714_s3 + $0x78] sm:$0xff] }
 0x115   : > { %v832_v22 = vld [vmem:[%s3714_s3 + $0x60] sm:$0xff]  ;;  %2924 = vmatprep.subr.bf16.mxu0 %v2923_v14  ;;  %2986 = vmatprep.subr.bf16.mxu1 %v3426_v5  ;;  %v2927_v23 = vpack.c.bf16 %v836_v21, %v833_v20  ;;  %v834_v25 = vld [vmem:[%s3714_s3 + $0x70] sm:$0xff]  ;;  %v837_v26 = vld [vmem:[%s3714_s3 + $0x88] sm:$0xff] }
 0x116   : > { %v839_v27 = vld [vmem:[%s3714_s3 + $0x98] sm:$0xff]  ;;  %v842_v28 = vld [vmem:[%s3714_s3 + $0xb0] sm:$0xff]  ;;  %v2929_v29 = vpack.c.bf16 %v835_v24, %v832_v22  ;;  %v2990_v30 = vpack.c.bf16 %v837_v26, %v834_v25  ;;  %v841_v33 = vld [vmem:[%s3714_s3 + $0xa8] sm:$0xff] }
 0x117   : > { %v838_v31 = vld [vmem:[%s3714_s3 + $0x90] sm:$0xff]  ;;  %v2931_v32 = vpack.c.bf16 %v842_v28, %v839_v27  ;;  %v840_v34 = vld [vmem:[%s3714_s3 + $0xa0] sm:$0xff]  ;;  %v843_v35 = vld [vmem:[%s3714_s3 + $0xb8] sm:$0xff] }
 0x118   : > { %2926 = vmatpush1.bf16.msra.mxu0 %v2925_v18  ;;  %2988 = vmatpush1.bf16.msra.mxu1 %v2987_v19  ;;  %v845_v36 = vld [vmem:[%s3714_s3 + $0xc8] sm:$0xff]  ;;  %v848_v37 = vld [vmem:[%s3714_s3 + $0xe0] sm:$0xff]  ;;  %v2933_v38 = vpack.c.bf16 %v841_v33, %v838_v31  ;;  %v2993_v39 = vpack.c.bf16 %v843_v35, %v840_v34  ;;  %v847_v42 = vld [vmem:[%s3714_s3 + $0xd8] sm:$0xff] }
 0x119   : > { %2928 = vmatprep.subr.bf16.mxu0 %v2927_v23  ;;  %2989 = vmatprep.subr.bf16.mxu1 %v3426_v5  ;;  %v844_v40 = vld [vmem:[%s3714_s3 + $0xc0] sm:$0xff]  ;;  %v2935_v41 = vpack.c.bf16 %v848_v37, %v845_v36  ;;  %v846_v43 = vld [vmem:[%s3714_s3 + $0xd0] sm:$0xff]  ;;  %v849_v44 = vld [vmem:[%s3714_s3 + $0xe8] sm:$0xff] }
 0x11a   : > { %v851_v45 = vld [vmem:[%s3714_s3 + $0xf8] sm:$0xff]  ;;  %v854_v46 = vld [vmem:[%s3714_s3 + $0x110] sm:$0xff]  ;;  %v2937_v47 = vpack.c.bf16 %v847_v42, %v844_v40  ;;  %v2996_v48 = vpack.c.bf16 %v849_v44, %v846_v43  ;;  %v853_v51 = vld [vmem:[%s3714_s3 + $0x108] sm:$0xff] }
 0x11b   : > { %v850_v49 = vld [vmem:[%s3714_s3 + $0xf0] sm:$0xff]  ;;  %v2939_v50 = vpack.c.bf16 %v854_v46, %v851_v45  ;;  %v852_v52 = vld [vmem:[%s3714_s3 + $0x100] sm:$0xff]  ;;  %v855_v53 = vld [vmem:[%s3714_s3 + $0x118] sm:$0xff] }
 0x11c   : > { %2930 = vmatpush1.bf16.msra.mxu0 %v2929_v29  ;;  %2991 = vmatpush1.bf16.msra.mxu1 %v2990_v30  ;;  %v857_v54 = vld [vmem:[%s3714_s3 + $0x128] sm:$0xff]  ;;  %v860_v55 = vld [vmem:[%s3714_s3 + $0x140] sm:$0xff]  ;;  %v2941_v56 = vpack.c.bf16 %v853_v51, %v850_v49  ;;  %v2999_v57 = vpack.c.bf16 %v855_v53, %v852_v52  ;;  %v859_v60 = vld [vmem:[%s3714_s3 + $0x138] sm:$0xff] }
 0x11d   : > { %2932 = vmatprep.subr.bf16.mxu0 %v2931_v32  ;;  %2992 = vmatprep.subr.bf16.mxu1 %v3426_v5  ;;  %v856_v58 = vld [vmem:[%s3714_s3 + $0x120] sm:$0xff]  ;;  %v2943_v59 = vpack.c.bf16 %v860_v55, %v857_v54  ;;  %v858_v61 = vld [vmem:[%s3714_s3 + $0x130] sm:$0xff]  ;;  %v861_v62 = vld [vmem:[%s3714_s3 + $0x148] sm:$0xff] }
 0x11e   : > { %v863_v63 = vld [vmem:[%s3714_s3 + $0x158] sm:$0xff]  ;;  %v866_v0 = vld [vmem:[%s3714_s3 + $0x170] sm:$0xff]  ;;  %v2945_v1 = vpack.c.bf16 %v859_v60, %v856_v58  ;;  %v3002_v2 = vpack.c.bf16 %v861_v62, %v858_v61  ;;  %v865_v6 = vld [vmem:[%s3714_s3 + $0x168] sm:$0xff] }
 0x11f   : > { %v862_v3 = vld [vmem:[%s3714_s3 + $0x150] sm:$0xff]  ;;  %v2947_v4 = vpack.c.bf16 %v866_v0, %v863_v63  ;;  %v864_v7 = vld [vmem:[%s3714_s3 + $0x160] sm:$0xff]  ;;  %v867_v8 = vld [vmem:[%s3714_s3 + $0x178] sm:$0xff] }
 0x120   : > { %2934 = vmatpush1.bf16.msra.mxu0 %v2933_v38  ;;  %2994 = vmatpush1.bf16.msra.mxu1 %v2993_v39  ;;  %v869_v9 = vld [vmem:[%s3714_s3 + $0x188] sm:$0xff]  ;;  %v872_v10 = vld [vmem:[%s3714_s3 + $0x1a0] sm:$0xff]  ;;  %v2949_v11 = vpack.c.bf16 %v865_v6, %v862_v3  ;;  %v3005_v12 = vpack.c.bf16 %v867_v8, %v864_v7  ;;  %v871_v15 = vld [vmem:[%s3714_s3 + $0x198] sm:$0xff] }
 0x121   : > { %2936 = vmatprep.subr.bf16.mxu0 %v2935_v41  ;;  %2995 = vmatprep.subr.bf16.mxu1 %v3426_v5  ;;  %v868_v13 = vld [vmem:[%s3714_s3 + $0x180] sm:$0xff]  ;;  %v2951_v14 = vpack.c.bf16 %v872_v10, %v869_v9  ;;  %v870_v16 = vld [vmem:[%s3714_s3 + $0x190] sm:$0xff]  ;;  %v873_v17 = vld [vmem:[%s3714_s3 + $0x1a8] sm:$0xff] }
 0x122   : > { %v875_v18 = vld [vmem:[%s3714_s3 + $0x1b8] sm:$0xff]  ;;  %v878_v19 = vld [vmem:[%s3714_s3 + $0x1d0] sm:$0xff]  ;;  %v2953_v20 = vpack.c.bf16 %v871_v15, %v868_v13  ;;  %v3008_v21 = vpack.c.bf16 %v873_v17, %v870_v16  ;;  %v693_v23 = vld [vmem:[%s3706_s15 + $0x8] sm:$0xff] }
 0x123   : > { %v874_v22 = vld [vmem:[%s3714_s3 + $0x1b0] sm:$0xff]  ;;  %v2955_v24 = vpack.c.bf16 %v878_v19, %v875_v18  ;;  %v877_v25 = vld [vmem:[%s3714_s3 + $0x1c8] sm:$0xff]  ;;  %v876_v26 = vld [vmem:[%s3714_s3 + $0x1c0] sm:$0xff]  ;;  %980 = vmatprep.mubr.f32.mxu0 %v693_v23  ;;  %1429 = vmatprep.mubr.f32.mxu1 %v693_v23 }
 0x124   : > { %2938 = vmatpush1.bf16.msra.mxu0 %v2937_v47  ;;  %2997 = vmatpush1.bf16.msra.mxu1 %v2996_v48  ;;  %v879_v27 = vld [vmem:[%s3714_s3 + $0x1d8] sm:$0xff]  ;;  %v881_v28 = vld [vmem:[%s3714_s3 + $0x1e8] sm:$0xff]  ;;  %v884_v29 = vld [vmem:[%s3714_s3 + $0x200] sm:$0xff]  ;;  %v2957_v30 = vpack.c.bf16 %v877_v25, %v874_v22 }
 0x125   : > { %2940 = vmatprep.subr.bf16.mxu0 %v2939_v50  ;;  %2998 = vmatprep.subr.bf16.mxu1 %v3426_v5  ;;  %v3011_v31 = vpack.c.bf16 %v879_v27, %v876_v26  ;;  %v880_v32 = vld [vmem:[%s3714_s3 + $0x1e0] sm:$0xff]  ;;  %v2959_v33 = vpack.c.bf16 %v884_v29, %v881_v28  ;;  %v883_v34 = vld [vmem:[%s3714_s3 + $0x1f8] sm:$0xff]  ;;  %v882_v35 = vld [vmem:[%s3714_s3 + $0x1f0] sm:$0xff] }
 0x126   : > { %v885_v36 = vld [vmem:[%s3714_s3 + $0x208] sm:$0xff]  ;;  %v887_v37 = vld [vmem:[%s3714_s3 + $0x218] sm:$0xff]  ;;  %v890_v38 = vld [vmem:[%s3714_s3 + $0x230] sm:$0xff]  ;;  %v2961_v39 = vpack.c.bf16 %v883_v34, %v880_v32 }
 0x127   : > { %v3014_v40 = vpack.c.bf16 %v885_v36, %v882_v35  ;;  %v886_v41 = vld [vmem:[%s3714_s3 + $0x210] sm:$0xff]  ;;  %v2963_v42 = vpack.c.bf16 %v890_v38, %v887_v37  ;;  %v889_v43 = vld [vmem:[%s3714_s3 + $0x228] sm:$0xff]  ;;  %v888_v44 = vld [vmem:[%s3714_s3 + $0x220] sm:$0xff] }
 0x128   : > { %2942 = vmatpush1.bf16.msra.mxu0 %v2941_v56  ;;  %3000 = vmatpush1.bf16.msra.mxu1 %v2999_v57  ;;  %v891_v45 = vld [vmem:[%s3714_s3 + $0x238] sm:$0xff]  ;;  %v893_v46 = vld [vmem:[%s3714_s3 + $0x248] sm:$0xff]  ;;  %v896_v47 = vld [vmem:[%s3714_s3 + $0x260] sm:$0xff]  ;;  %v2965_v48 = vpack.c.bf16 %v889_v43, %v886_v41 }
 0x129   : > { %2944 = vmatprep.subr.bf16.mxu0 %v2943_v59  ;;  %3001 = vmatprep.subr.bf16.mxu1 %v3426_v5  ;;  %v3017_v49 = vpack.c.bf16 %v891_v45, %v888_v44  ;;  %v892_v50 = vld [vmem:[%s3714_s3 + $0x240] sm:$0xff]  ;;  %v2967_v51 = vpack.c.bf16 %v896_v47, %v893_v46  ;;  %v895_v52 = vld [vmem:[%s3714_s3 + $0x258] sm:$0xff]  ;;  %v894_v53 = vld [vmem:[%s3714_s3 + $0x250] sm:$0xff] }
 0x12a   : > { %v897_v54 = vld [vmem:[%s3714_s3 + $0x268] sm:$0xff]  ;;  %v899_v55 = vld [vmem:[%s3714_s3 + $0x278] sm:$0xff]  ;;  %v902_v56 = vld [vmem:[%s3714_s3 + $0x290] sm:$0xff]  ;;  %v2969_v57 = vpack.c.bf16 %v895_v52, %v892_v50 }
 0x12b   : > { %v3020_v58 = vpack.c.bf16 %v897_v54, %v894_v53  ;;  %v898_v59 = vld [vmem:[%s3714_s3 + $0x270] sm:$0xff]  ;;  %v2971_v60 = vpack.c.bf16 %v902_v56, %v899_v55  ;;  %v901_v61 = vld [vmem:[%s3714_s3 + $0x288] sm:$0xff]  ;;  %v900_v62 = vld [vmem:[%s3714_s3 + $0x280] sm:$0xff] }
 0x12c   : > { %2946 = vmatpush1.bf16.msra.mxu0 %v2945_v1  ;;  %3003 = vmatpush1.bf16.msra.mxu1 %v3002_v2  ;;  %v903_v63 = vld [vmem:[%s3714_s3 + $0x298] sm:$0xff]  ;;  %v905_v0 = vld [vmem:[%s3714_s3 + $0x2a8] sm:$0xff]  ;;  %v908_v1 = vld [vmem:[%s3714_s3 + $0x2c0] sm:$0xff]  ;;  %v2973_v2 = vpack.c.bf16 %v901_v61, %v898_v59 }
 0x12d   : > { %2948 = vmatprep.subr.bf16.mxu0 %v2947_v4  ;;  %3004 = vmatprep.subr.bf16.mxu1 %v3426_v5  ;;  %v3023_v3 = vpack.c.bf16 %v903_v63, %v900_v62  ;;  %v904_v4 = vld [vmem:[%s3714_s3 + $0x2a0] sm:$0xff]  ;;  %v2975_v6 = vpack.c.bf16 %v908_v1, %v905_v0  ;;  %v907_v7 = vld [vmem:[%s3714_s3 + $0x2b8] sm:$0xff]  ;;  %v906_v8 = vld [vmem:[%s3714_s3 + $0x2b0] sm:$0xff] }
 0x12e   : > { %v909_v9 = vld [vmem:[%s3714_s3 + $0x2c8] sm:$0xff]  ;;  %v911_v10 = vld [vmem:[%s3714_s3 + $0x2d8] sm:$0xff]  ;;  %v912_v17 = vld [vmem:[%s3714_s3 + $0x2e0] sm:$0xff] }
 0x12f   : > { %v3026_v13 = vpack.c.bf16 %v909_v9, %v906_v8  ;;  %v913_v16 = vld [vmem:[%s3714_s3 + $0x2e8] sm:$0xff]  ;;  %v915_v18 = vld [vmem:[%s3714_s3 + $0x2f8] sm:$0xff]  ;;  %v694_v23 = vld [vmem:[%s3706_s15 + $0x10] sm:$0xff] }
 0x130   : > { %2950 = vmatpush1.bf16.msra.mxu0 %v2949_v11  ;;  %3006 = vmatpush1.bf16.msra.mxu1 %v3005_v12  ;;  %v914_v11 = vld [vmem:[%s3714_s3 + $0x2f0] sm:$0xff]  ;;  %v2977_v12 = vpack.c.bf16 %v907_v7, %v904_v4  ;;  %v695_v22 = vld [vmem:[%s3706_s15 + $0x18] sm:$0xff]  ;;  %v701_v27 = vld [vmem:[%s3706_s15 + $0x48] sm:$0xff] }
 0x131   : > { %2952 = vmatprep.subr.bf16.mxu0 %v2951_v14  ;;  %3007 = vmatprep.subr.bf16.mxu1 %v3426_v5  ;;  %v910_v14 = vld [vmem:[%s3714_s3 + $0x2d0] sm:$0xff]  ;;  %v2979_v15 = vpack.c.bf16 %v914_v11, %v911_v10  ;;  %v699_v25 = vld [vmem:[%s3706_s15 + $0x38] sm:$0xff]  ;;  %v700_v28 = vld [vmem:[%s3706_s15 + $0x40] sm:$0xff] }
 0x132   : > { %v2981_v19 = vpack.c.bf16 %v913_v16, %v910_v14  ;;  %v698_v26 = vld [vmem:[%s3706_s15 + $0x30] sm:$0xff]  ;;  %v703_v29 = vld [vmem:[%s3706_s15 + $0x58] sm:$0xff]  ;;  %v704_v32 = vld [vmem:[%s3706_s15 + $0x60] sm:$0xff] }
 0x133   : > { %v706_v34 = vld [vmem:[%s3706_s15 + $0x70] sm:$0xff]  ;;  %v709_v35 = vld [vmem:[%s3706_s15 + $0x88] sm:$0xff]  ;;  %v708_v36 = vld [vmem:[%s3706_s15 + $0x80] sm:$0xff] }
 0x134   : > { %2954 = vmatpush1.bf16.msra.mxu0 %v2953_v20  ;;  %3009 = vmatpush1.bf16.msra.mxu1 %v3008_v21  ;;  %v3029_v20 = vpack.c.bf16 %v915_v18, %v912_v17  ;;  %v692_v21 = vld [vmem:[%s3706_s15] sm:$0xff]  ;;  %v711_v37 = vld [vmem:[%s3706_s15 + $0x98] sm:$0xff]  ;;  %v710_v38 = vld [vmem:[%s3706_s15 + $0x90] sm:$0xff] }
 0x135   : > { %2956 = vmatprep.subr.bf16.mxu0 %v2955_v24  ;;  %3010 = vmatprep.subr.bf16.mxu1 %v3426_v5  ;;  %v697_v24 = vld [vmem:[%s3706_s15 + $0x28] sm:$0xff]  ;;  %v715_v41 = vld [vmem:[%s3706_s15 + $0xb8] sm:$0xff]  ;;  %v716_v44 = vld [vmem:[%s3706_s15 + $0xc0] sm:$0xff] }
 0x136   : > { %v717_v43 = vld [vmem:[%s3706_s15 + $0xc8] sm:$0xff]  ;;  %v719_v45 = vld [vmem:[%s3706_s15 + $0xd8] sm:$0xff]  ;;  %v718_v46 = vld [vmem:[%s3706_s15 + $0xd0] sm:$0xff] }
 0x137   : > { %v721_v47 = vld [vmem:[%s3706_s15 + $0xe8] sm:$0xff]  ;;  %v722_v50 = vld [vmem:[%s3706_s15 + $0xf0] sm:$0xff]  ;;  %v724_v52 = vld [vmem:[%s3706_s15 + $0x100] sm:$0xff] }
 0x138   : > { %2958 = vmatpush1.bf16.msra.mxu0 %v2957_v30  ;;  %3012 = vmatpush1.bf16.msra.mxu1 %v3011_v31  ;;  %v702_v30 = vld [vmem:[%s3706_s15 + $0x50] sm:$0xff]  ;;  %v705_v31 = vld [vmem:[%s3706_s15 + $0x68] sm:$0xff]  ;;  %v727_v53 = vld [vmem:[%s3706_s15 + $0x118] sm:$0xff] }
 0x139   : > { %2960 = vmatprep.subr.bf16.mxu0 %v2959_v33  ;;  %3013 = vmatprep.subr.bf16.mxu1 %v3426_v5  ;;  %v707_v33 = vld [vmem:[%s3706_s15 + $0x78] sm:$0xff]  ;;  %v726_v54 = vld [vmem:[%s3706_s15 + $0x110] sm:$0xff]  ;;  %v729_v55 = vld [vmem:[%s3706_s15 + $0x128] sm:$0xff] }
 0x13a   : > { %v728_v56 = vld [vmem:[%s3706_s15 + $0x120] sm:$0xff]  ;;  %v733_v59 = vld [vmem:[%s3706_s15 + $0x148] sm:$0xff]  ;;  %v735_v61 = vld [vmem:[%s3706_s15 + $0x158] sm:$0xff] }
 0x13b   : > { %v734_v62 = vld [vmem:[%s3706_s15 + $0x150] sm:$0xff]  ;;  %v737_v63 = vld [vmem:[%s3706_s15 + $0x168] sm:$0xff]  ;;  %v736_v0 = vld [vmem:[%s3706_s15 + $0x160] sm:$0xff] }
 0x13c   : > { %2962 = vmatpush1.bf16.msra.mxu0 %v2961_v39  ;;  %3015 = vmatpush1.bf16.msra.mxu1 %v3014_v40  ;;  %v713_v39 = vld [vmem:[%s3706_s15 + $0xa8] sm:$0xff]  ;;  %v712_v40 = vld [vmem:[%s3706_s15 + $0xa0] sm:$0xff]  ;;  %v739_v1 = vld [vmem:[%s3706_s15 + $0x178] sm:$0xff] }
 0x13d   : > { %2964 = vmatprep.subr.bf16.mxu0 %v2963_v42  ;;  %3016 = vmatprep.subr.bf16.mxu1 %v3426_v5  ;;  %v714_v42 = vld [vmem:[%s3706_s15 + $0xb0] sm:$0xff]  ;;  %v740_v4 = vld [vmem:[%s3706_s15 + $0x180] sm:$0xff]  ;;  %v745_v8 = vld [vmem:[%s3706_s15 + $0x1a8] sm:$0xff] }
 0x13e   : > { %v742_v7 = vld [vmem:[%s3706_s15 + $0x190] sm:$0xff]  ;;  %v744_v9 = vld [vmem:[%s3706_s15 + $0x1a0] sm:$0xff]  ;;  %v747_v10 = vld [vmem:[%s3706_s15 + $0x1b8] sm:$0xff] }
 0x13f   : > { %v746_v11 = vld [vmem:[%s3706_s15 + $0x1b0] sm:$0xff]  ;;  %v751_v14 = vld [vmem:[%s3706_s15 + $0x1d8] sm:$0xff]  ;;  %v753_v16 = vld [vmem:[%s3706_s15 + $0x1e8] sm:$0xff] }
 0x140   : > { %2966 = vmatpush1.bf16.msra.mxu0 %v2965_v48  ;;  %3018 = vmatpush1.bf16.msra.mxu1 %v3017_v49  ;;  %v720_v48 = vld [vmem:[%s3706_s15 + $0xe0] sm:$0xff]  ;;  %v723_v49 = vld [vmem:[%s3706_s15 + $0xf8] sm:$0xff] }
 0x141   : > { %2968 = vmatprep.subr.bf16.mxu0 %v2967_v51  ;;  %3019 = vmatprep.subr.bf16.mxu1 %v3426_v5  ;;  %v725_v51 = vld [vmem:[%s3706_s15 + $0x108] sm:$0xff]  ;;  %v752_v17 = vld [vmem:[%s3706_s15 + $0x1e0] sm:$0xff]  ;;  %v755_v18 = vld [vmem:[%s3706_s15 + $0x1f8] sm:$0xff] }
 0x144   : > { %2970 = vmatpush1.bf16.msra.mxu0 %v2969_v57  ;;  %3021 = vmatpush1.bf16.msra.mxu1 %v3020_v58  ;;  %v731_v57 = vld [vmem:[%s3706_s15 + $0x138] sm:$0xff]  ;;  %v730_v58 = vld [vmem:[%s3706_s15 + $0x130] sm:$0xff] }
 0x145   : > { %2972 = vmatprep.subr.bf16.mxu0 %v2971_v60  ;;  %3022 = vmatprep.subr.bf16.mxu1 %v3426_v5  ;;  %v732_v60 = vld [vmem:[%s3706_s15 + $0x140] sm:$0xff] }
 0x148   : > { %2974 = vmatpush1.bf16.msra.mxu0 %v2973_v2  ;;  %3024 = vmatpush1.bf16.msra.mxu1 %v3023_v3  ;;  %v738_v2 = vld [vmem:[%s3706_s15 + $0x170] sm:$0xff]  ;;  %v741_v3 = vld [vmem:[%s3706_s15 + $0x188] sm:$0xff] }
 0x149   : > { %2976 = vmatprep.subr.bf16.mxu0 %v2975_v6  ;;  %3025 = vmatprep.subr.bf16.mxu1 %v3426_v5  ;;  %v743_v6 = vld [vmem:[%s3706_s15 + $0x198] sm:$0xff] }
 0x14c   : > { %2978 = vmatpush1.bf16.msra.mxu0 %v2977_v12  ;;  %3027 = vmatpush1.bf16.msra.mxu1 %v3026_v13  ;;  %v749_v12 = vld [vmem:[%s3706_s15 + $0x1c8] sm:$0xff]  ;;  %v748_v13 = vld [vmem:[%s3706_s15 + $0x1c0] sm:$0xff] }
 0x14d   : > { %2980 = vmatprep.subr.bf16.mxu0 %v2979_v15  ;;  %3028 = vmatprep.subr.bf16.mxu1 %v3426_v5  ;;  %v696_v5 = vld [vmem:[%s3706_s15 + $0x20] sm:$0xff]  ;;  %v750_v15 = vld [vmem:[%s3706_s15 + $0x1d0] sm:$0xff] }
 0x150   : > { %2982 = vmatpush1.bf16.msra.mxu0 %v2981_v19  ;;  %3030 = vmatpush1.bf16.msra.mxu1 %v3029_v20  ;;  %v754_v19 = vld [vmem:[%s3706_s15 + $0x1f0] sm:$0xff]  ;;  %v757_v20 = vld [vmem:[%s3706_s15 + $0x208] sm:$0xff] }
 0x153   : > { %981 = vmatmul.mubr.f32.vlgmr.msra.gmra.mrb[0].mxu0 %v692_v21  ;;  %1430 = vmatmul.mubr.f32.vlgmr.msra.gmra.mrb[0].mxu1 %v692_v21  ;;  %v756_v21 = vld [vmem:[%s3706_s15 + $0x200] sm:$0xff] }
 0x154   : > { %986 = vmatprep.mubr.f32.mxu0 %v695_v22  ;;  %1434 = vmatprep.mubr.f32.mxu1 %v695_v22  ;;  %v759_v22 = vld [vmem:[%s3706_s15 + $0x218] sm:$0xff] }
 0x157   : > { %987 = vmatmul.mubr.f32.gmra.mrb[2].mxu0 %v694_v23  ;;  %1435 = vmatmul.mubr.f32.gmra.mrb[2].mxu1 %v694_v23  ;;  %v758_v23 = vld [vmem:[%s3706_s15 + $0x210] sm:$0xff] }
 0x158   : > { %992 = vmatprep.mubr.f32.mxu0 %v697_v24  ;;  %1439 = vmatprep.mubr.f32.mxu1 %v697_v24  ;;  %v761_v24 = vld [vmem:[%s3706_s15 + $0x228] sm:$0xff] }
 0x15b   : > { %993 = vmatmul.mubr.f32.gmra.mrb[4].mxu0 %v696_v5  ;;  %1440 = vmatmul.mubr.f32.gmra.mrb[4].mxu1 %v696_v5  ;;  %v760_v5 = vld [vmem:[%s3706_s15 + $0x220] sm:$0xff] }
 0x15c   : > { %998 = vmatprep.mubr.f32.mxu0 %v699_v25  ;;  %1444 = vmatprep.mubr.f32.mxu1 %v699_v25  ;;  %v763_v25 = vld [vmem:[%s3706_s15 + $0x238] sm:$0xff] }
 0x15f   : > { %999 = vmatmul.mubr.f32.gmra.mrb[6].mxu0 %v698_v26  ;;  %1445 = vmatmul.mubr.f32.gmra.mrb[6].mxu1 %v698_v26  ;;  %v762_v26 = vld [vmem:[%s3706_s15 + $0x230] sm:$0xff] }
 0x160   : > { %1004 = vmatprep.mubr.f32.mxu0 %v701_v27  ;;  %1449 = vmatprep.mubr.f32.mxu1 %v701_v27  ;;  %v765_v27 = vld [vmem:[%s3706_s15 + $0x248] sm:$0xff] }
 0x163   : > { %1005 = vmatmul.mubr.f32.gmra.mrb[8].mxu0 %v700_v28  ;;  %1450 = vmatmul.mubr.f32.gmra.mrb[8].mxu1 %v700_v28  ;;  %v764_v28 = vld [vmem:[%s3706_s15 + $0x240] sm:$0xff] }
 0x164   : > { %1010 = vmatprep.mubr.f32.mxu0 %v703_v29  ;;  %1454 = vmatprep.mubr.f32.mxu1 %v703_v29  ;;  %v767_v29 = vld [vmem:[%s3706_s15 + $0x258] sm:$0xff] }
 0x167   : > { %1011 = vmatmul.mubr.f32.gmra.mrb[10].mxu0 %v702_v30  ;;  %1455 = vmatmul.mubr.f32.gmra.mrb[10].mxu1 %v702_v30  ;;  %v766_v30 = vld [vmem:[%s3706_s15 + $0x250] sm:$0xff] }
 0x168   : > { %1016 = vmatprep.mubr.f32.mxu0 %v705_v31  ;;  %1459 = vmatprep.mubr.f32.mxu1 %v705_v31  ;;  %v769_v31 = vld [vmem:[%s3706_s15 + $0x268] sm:$0xff] }
 0x16b   : > { %1017 = vmatmul.mubr.f32.gmra.mrb[12].mxu0 %v704_v32  ;;  %1460 = vmatmul.mubr.f32.gmra.mrb[12].mxu1 %v704_v32  ;;  %v768_v32 = vld [vmem:[%s3706_s15 + $0x260] sm:$0xff] }
 0x16c   : > { %1022 = vmatprep.mubr.f32.mxu0 %v707_v33  ;;  %1464 = vmatprep.mubr.f32.mxu1 %v707_v33  ;;  %v771_v33 = vld [vmem:[%s3706_s15 + $0x278] sm:$0xff] }
 0x16f   : > { %1023 = vmatmul.mubr.f32.gmra.mrb[14].mxu0 %v706_v34  ;;  %1465 = vmatmul.mubr.f32.gmra.mrb[14].mxu1 %v706_v34  ;;  %v770_v34 = vld [vmem:[%s3706_s15 + $0x270] sm:$0xff] }
 0x170   : > { %1028 = vmatprep.mubr.f32.mxu0 %v709_v35  ;;  %1469 = vmatprep.mubr.f32.mxu1 %v709_v35  ;;  %v773_v35 = vld [vmem:[%s3706_s15 + $0x288] sm:$0xff] }
 0x173   : > { %1029 = vmatmul.mubr.f32.gmra.mrb[16].mxu0 %v708_v36  ;;  %1470 = vmatmul.mubr.f32.gmra.mrb[16].mxu1 %v708_v36  ;;  %v772_v36 = vld [vmem:[%s3706_s15 + $0x280] sm:$0xff] }
 0x174   : > { %1034 = vmatprep.mubr.f32.mxu0 %v711_v37  ;;  %1474 = vmatprep.mubr.f32.mxu1 %v711_v37  ;;  %v775_v37 = vld [vmem:[%s3706_s15 + $0x298] sm:$0xff] }
 0x177   : > { %1035 = vmatmul.mubr.f32.gmra.mrb[18].mxu0 %v710_v38  ;;  %1475 = vmatmul.mubr.f32.gmra.mrb[18].mxu1 %v710_v38  ;;  %v774_v38 = vld [vmem:[%s3706_s15 + $0x290] sm:$0xff] }
 0x178   : > { %1040 = vmatprep.mubr.f32.mxu0 %v713_v39  ;;  %1479 = vmatprep.mubr.f32.mxu1 %v713_v39  ;;  %v777_v39 = vld [vmem:[%s3706_s15 + $0x2a8] sm:$0xff] }
 0x17b   : > { %1041 = vmatmul.mubr.f32.gmra.mrb[20].mxu0 %v712_v40  ;;  %1480 = vmatmul.mubr.f32.gmra.mrb[20].mxu1 %v712_v40  ;;  %v776_v40 = vld [vmem:[%s3706_s15 + $0x2a0] sm:$0xff] }
 0x17c   : > { %1046 = vmatprep.mubr.f32.mxu0 %v715_v41  ;;  %1484 = vmatprep.mubr.f32.mxu1 %v715_v41  ;;  %v779_v41 = vld [vmem:[%s3706_s15 + $0x2b8] sm:$0xff] }
 0x17f   : > { %1047 = vmatmul.mubr.f32.gmra.mrb[22].mxu0 %v714_v42  ;;  %1485 = vmatmul.mubr.f32.gmra.mrb[22].mxu1 %v714_v42  ;;  %v778_v42 = vld [vmem:[%s3706_s15 + $0x2b0] sm:$0xff] }
 0x180   : > { %1052 = vmatprep.mubr.f32.mxu0 %v717_v43  ;;  %1489 = vmatprep.mubr.f32.mxu1 %v717_v43  ;;  %v781_v43 = vld [vmem:[%s3706_s15 + $0x2c8] sm:$0xff] }
 0x183   : > { %1053 = vmatmul.mubr.f32.gmra.mrb[24].mxu0 %v716_v44  ;;  %1490 = vmatmul.mubr.f32.gmra.mrb[24].mxu1 %v716_v44  ;;  %v780_v44 = vld [vmem:[%s3706_s15 + $0x2c0] sm:$0xff] }
 0x184   : > { %1058 = vmatprep.mubr.f32.mxu0 %v719_v45  ;;  %1494 = vmatprep.mubr.f32.mxu1 %v719_v45  ;;  %v783_v45 = vld [vmem:[%s3706_s15 + $0x2d8] sm:$0xff] }
 0x187   : > { %1059 = vmatmul.mubr.f32.gmra.mrb[26].mxu0 %v718_v46  ;;  %1495 = vmatmul.mubr.f32.gmra.mrb[26].mxu1 %v718_v46  ;;  %v782_v46 = vld [vmem:[%s3706_s15 + $0x2d0] sm:$0xff] }
 0x188   : > { %1064 = vmatprep.mubr.f32.mxu0 %v721_v47  ;;  %1499 = vmatprep.mubr.f32.mxu1 %v721_v47  ;;  %v785_v47 = vld [vmem:[%s3706_s15 + $0x2e8] sm:$0xff] }
 0x18b   : > { %1065 = vmatmul.mubr.f32.gmra.mrb[28].mxu0 %v720_v48  ;;  %1500 = vmatmul.mubr.f32.gmra.mrb[28].mxu1 %v720_v48  ;;  %v784_v48 = vld [vmem:[%s3706_s15 + $0x2e0] sm:$0xff] }
 0x18c   : > { %1070 = vmatprep.mubr.f32.mxu0 %v723_v49  ;;  %1504 = vmatprep.mubr.f32.mxu1 %v723_v49  ;;  %v787_v49 = vld [vmem:[%s3706_s15 + $0x2f8] sm:$0xff] }
 0x18f   : > { %1071 = vmatmul.mubr.f32.gmra.mrb[30].mxu0 %v722_v50  ;;  %1505 = vmatmul.mubr.f32.gmra.mrb[30].mxu1 %v722_v50  ;;  %v786_v50 = vld [vmem:[%s3706_s15 + $0x2f0] sm:$0xff] }
 0x190   : > { %1076 = vmatprep.mubr.f32.mxu0 %v725_v51  ;;  %1509 = vmatprep.mubr.f32.mxu1 %v725_v51  ;;  %v789_v51 = vld [vmem:[%s3706_s15 + $0x308] sm:$0xff] }
 0x193   : > { %1077 = vmatmul.mubr.f32.gmra.mrb[32].mxu0 %v724_v52  ;;  %1510 = vmatmul.mubr.f32.gmra.mrb[32].mxu1 %v724_v52  ;;  %v788_v52 = vld [vmem:[%s3706_s15 + $0x300] sm:$0xff] }
 0x194   : > { %1082 = vmatprep.mubr.f32.mxu0 %v727_v53  ;;  %1514 = vmatprep.mubr.f32.mxu1 %v727_v53  ;;  %v791_v53 = vld [vmem:[%s3706_s15 + $0x318] sm:$0xff] }
 0x197   : > { %1083 = vmatmul.mubr.f32.gmra.mrb[34].mxu0 %v726_v54  ;;  %1515 = vmatmul.mubr.f32.gmra.mrb[34].mxu1 %v726_v54  ;;  %v790_v54 = vld [vmem:[%s3706_s15 + $0x310] sm:$0xff] }
 0x198   : > { %1088 = vmatprep.mubr.f32.mxu0 %v729_v55  ;;  %1519 = vmatprep.mubr.f32.mxu1 %v729_v55  ;;  %v793_v55 = vld [vmem:[%s3706_s15 + $0x328] sm:$0xff] }
 0x19b   : > { %1089 = vmatmul.mubr.f32.gmra.mrb[36].mxu0 %v728_v56  ;;  %1520 = vmatmul.mubr.f32.gmra.mrb[36].mxu1 %v728_v56  ;;  %v792_v56 = vld [vmem:[%s3706_s15 + $0x320] sm:$0xff] }
 0x19c   : > { %1094 = vmatprep.mubr.f32.mxu0 %v731_v57  ;;  %1524 = vmatprep.mubr.f32.mxu1 %v731_v57  ;;  %v795_v57 = vld [vmem:[%s3706_s15 + $0x338] sm:$0xff] }
 0x19f   : > { %1095 = vmatmul.mubr.f32.gmra.mrb[38].mxu0 %v730_v58  ;;  %1525 = vmatmul.mubr.f32.gmra.mrb[38].mxu1 %v730_v58  ;;  %v794_v58 = vld [vmem:[%s3706_s15 + $0x330] sm:$0xff] }
 0x1a0   : > { %1100 = vmatprep.mubr.f32.mxu0 %v733_v59  ;;  %1529 = vmatprep.mubr.f32.mxu1 %v733_v59  ;;  %v797_v59 = vld [vmem:[%s3706_s15 + $0x348] sm:$0xff] }
 0x1a3   : > { %1101 = vmatmul.mubr.f32.gmra.mrb[40].mxu0 %v732_v60  ;;  %1530 = vmatmul.mubr.f32.gmra.mrb[40].mxu1 %v732_v60  ;;  %v796_v60 = vld [vmem:[%s3706_s15 + $0x340] sm:$0xff] }
 0x1a4   : > { %1106 = vmatprep.mubr.f32.mxu0 %v735_v61  ;;  %1534 = vmatprep.mubr.f32.mxu1 %v735_v61  ;;  %v799_v61 = vld [vmem:[%s3706_s15 + $0x358] sm:$0xff] }
 0x1a7   : > { %1107 = vmatmul.mubr.f32.gmra.mrb[42].mxu0 %v734_v62  ;;  %1535 = vmatmul.mubr.f32.gmra.mrb[42].mxu1 %v734_v62  ;;  %v500_v62 = vld [vmem:[#allocation2] sm:$0xff] }
 0x1a8   : > { %1112 = vmatprep.mubr.f32.mxu0 %v737_v63  ;;  %1539 = vmatprep.mubr.f32.mxu1 %v737_v63  ;;  %v502_v63 = vld [vmem:[#allocation2 + $0x10] sm:$0xff] }
 0x1ab   : > { %1113 = vmatmul.mubr.f32.gmra.mrb[44].mxu0 %v736_v0  ;;  %1540 = vmatmul.mubr.f32.gmra.mrb[44].mxu1 %v736_v0  ;;  %v798_v0 = vld [vmem:[%s3706_s15 + $0x350] sm:$0xff] }
 0x1ac   : > { %1118 = vmatprep.mubr.f32.mxu0 %v739_v1  ;;  %1544 = vmatprep.mubr.f32.mxu1 %v739_v1  ;;  %v501_v1 = vld [vmem:[#allocation2 + $0x8] sm:$0xff] }
 0x1af   : > { %1119 = vmatmul.mubr.f32.gmra.mrb[46].mxu0 %v738_v2  ;;  %1545 = vmatmul.mubr.f32.gmra.mrb[46].mxu1 %v738_v2  ;;  %v801_v2 = vld [vmem:[%s3706_s15 + $0x368] sm:$0xff] }
 0x1b0   : > { %1124 = vmatprep.mubr.f32.mxu0 %v741_v3  ;;  %1549 = vmatprep.mubr.f32.mxu1 %v741_v3 }
 0x1b3   : > { %1125 = vmatmul.mubr.f32.gmra.mrb[48].mxu0 %v740_v4  ;;  %1550 = vmatmul.mubr.f32.gmra.mrb[48].mxu1 %v740_v4 }
 0x1b4   : > { %1130 = vmatprep.mubr.f32.mxu0 %v743_v6  ;;  %1554 = vmatprep.mubr.f32.mxu1 %v743_v6 }
 0x1b7   : > { %1131 = vmatmul.mubr.f32.gmra.mrb[50].mxu0 %v742_v7  ;;  %1555 = vmatmul.mubr.f32.gmra.mrb[50].mxu1 %v742_v7 }
 0x1b8   : > { %1136 = vmatprep.mubr.f32.mxu0 %v745_v8  ;;  %1559 = vmatprep.mubr.f32.mxu1 %v745_v8 }
 0x1bb   : > { %1137 = vmatmul.mubr.f32.gmra.mrb[52].mxu0 %v744_v9  ;;  %1560 = vmatmul.mubr.f32.gmra.mrb[52].mxu1 %v744_v9 }
 0x1bc   : > { %1142 = vmatprep.mubr.f32.mxu0 %v747_v10  ;;  %1564 = vmatprep.mubr.f32.mxu1 %v747_v10 }
 0x1bf   : > { %1143 = vmatmul.mubr.f32.gmra.mrb[54].mxu0 %v746_v11  ;;  %1565 = vmatmul.mubr.f32.gmra.mrb[54].mxu1 %v746_v11  ;;  %v503_v11 = vld [vmem:[#allocation2 + $0x18] sm:$0xff] }
 0x1c0   : > { %1148 = vmatprep.mubr.f32.mxu0 %v749_v12  ;;  %1569 = vmatprep.mubr.f32.mxu1 %v749_v12  ;;  %v505_v12 = vld [vmem:[#allocation2 + $0x28] sm:$0xff] }
 0x1c3   : > { %1149 = vmatmul.mubr.f32.gmra.mrb[56].mxu0 %v748_v13  ;;  %1570 = vmatmul.mubr.f32.gmra.mrb[56].mxu1 %v748_v13  ;;  %v800_v13 = vld [vmem:[%s3706_s15 + $0x360] sm:$0xff] }
 0x1c4   : > { %1154 = vmatprep.mubr.f32.mxu0 %v751_v14  ;;  %1574 = vmatprep.mubr.f32.mxu1 %v751_v14  ;;  %v504_v14 = vld [vmem:[#allocation2 + $0x20] sm:$0xff] }
 0x1c7   : > { %1155 = vmatmul.mubr.f32.gmra.mrb[58].mxu0 %v750_v15  ;;  %1575 = vmatmul.mubr.f32.gmra.mrb[58].mxu1 %v750_v15  ;;  %v803_v15 = vld [vmem:[%s3706_s15 + $0x378] sm:$0xff] }
 0x1c8   : > { %1160 = vmatprep.mubr.f32.mxu0 %v753_v16  ;;  %1579 = vmatprep.mubr.f32.mxu1 %v753_v16 }
 0x1cb   : > { %1161 = vmatmul.mubr.f32.gmra.mrb[60].mxu0 %v752_v17  ;;  %1580 = vmatmul.mubr.f32.gmra.mrb[60].mxu1 %v752_v17 }
 0x1cc   : > { %1166 = vmatprep.mubr.f32.mxu0 %v755_v18  ;;  %1584 = vmatprep.mubr.f32.mxu1 %v755_v18 }
 0x1cf   : > { %1167 = vmatmul.mubr.f32.gmra.mrb[62].mxu0 %v754_v19  ;;  %1585 = vmatmul.mubr.f32.gmra.mrb[62].mxu1 %v754_v19 }
 0x1d0   : > { %1172 = vmatprep.mubr.f32.mxu0 %v757_v20  ;;  %1589 = vmatprep.mubr.f32.mxu1 %v757_v20 }
 0x1d3   : > { %1173 = vmatmul.mubr.f32.gmra.mrb[64].mxu0 %v756_v21  ;;  %1590 = vmatmul.mubr.f32.gmra.mrb[64].mxu1 %v756_v21 }
 0x1d4   : > { %1178 = vmatprep.mubr.f32.mxu0 %v759_v22  ;;  %1594 = vmatprep.mubr.f32.mxu1 %v759_v22 }
 0x1d7   : > { %1179 = vmatmul.mubr.f32.gmra.mrb[66].mxu0 %v758_v23  ;;  %1595 = vmatmul.mubr.f32.gmra.mrb[66].mxu1 %v758_v23  ;;  %v506_v23 = vld [vmem:[#allocation2 + $0x30] sm:$0xff] }
 0x1d8   : > { %1184 = vmatprep.mubr.f32.mxu0 %v761_v24  ;;  %1599 = vmatprep.mubr.f32.mxu1 %v761_v24  ;;  %v508_v24 = vld [vmem:[#allocation2 + $0x40] sm:$0xff] }
 0x1db   : > { %1185 = vmatmul.mubr.f32.gmra.mrb[68].mxu0 %v760_v5  ;;  %1600 = vmatmul.mubr.f32.gmra.mrb[68].mxu1 %v760_v5  ;;  %v802_v5 = vld [vmem:[%s3706_s15 + $0x370] sm:$0xff] }
 0x1dc   : > { %1190 = vmatprep.mubr.f32.mxu0 %v763_v25  ;;  %1604 = vmatprep.mubr.f32.mxu1 %v763_v25  ;;  %v507_v25 = vld [vmem:[#allocation2 + $0x38] sm:$0xff] }
 0x1df   : > { %1191 = vmatmul.mubr.f32.gmra.mrb[70].mxu0 %v762_v26  ;;  %1605 = vmatmul.mubr.f32.gmra.mrb[70].mxu1 %v762_v26  ;;  %v805_v26 = vld [vmem:[%s3706_s15 + $0x388] sm:$0xff] }
 0x1e0   : > { %1196 = vmatprep.mubr.f32.mxu0 %v765_v27  ;;  %1609 = vmatprep.mubr.f32.mxu1 %v765_v27 }
 0x1e3   : > { %1197 = vmatmul.mubr.f32.gmra.mrb[72].mxu0 %v764_v28  ;;  %1610 = vmatmul.mubr.f32.gmra.mrb[72].mxu1 %v764_v28 }
 0x1e4   : > { %1202 = vmatprep.mubr.f32.mxu0 %v767_v29  ;;  %1614 = vmatprep.mubr.f32.mxu1 %v767_v29 }
 0x1e7   : > { %1203 = vmatmul.mubr.f32.gmra.mrb[74].mxu0 %v766_v30  ;;  %1615 = vmatmul.mubr.f32.gmra.mrb[74].mxu1 %v766_v30 }
 0x1e8   : > { %1208 = vmatprep.mubr.f32.mxu0 %v769_v31  ;;  %1619 = vmatprep.mubr.f32.mxu1 %v769_v31 }
 0x1eb   : > { %1209 = vmatmul.mubr.f32.gmra.mrb[76].mxu0 %v768_v32  ;;  %1620 = vmatmul.mubr.f32.gmra.mrb[76].mxu1 %v768_v32 }
 0x1ec   : > { %1214 = vmatprep.mubr.f32.mxu0 %v771_v33  ;;  %1624 = vmatprep.mubr.f32.mxu1 %v771_v33 }
 0x1ef   : > { %1215 = vmatmul.mubr.f32.gmra.mrb[78].mxu0 %v770_v34  ;;  %1625 = vmatmul.mubr.f32.gmra.mrb[78].mxu1 %v770_v34  ;;  %v509_v34 = vld [vmem:[#allocation2 + $0x48] sm:$0xff] }
 0x1f0   : > { %1220 = vmatprep.mubr.f32.mxu0 %v773_v35  ;;  %1629 = vmatprep.mubr.f32.mxu1 %v773_v35  ;;  %v511_v35 = vld [vmem:[#allocation2 + $0x58] sm:$0xff] }
 0x1f3   : > { %1221 = vmatmul.mubr.f32.gmra.mrb[80].mxu0 %v772_v36  ;;  %1630 = vmatmul.mubr.f32.gmra.mrb[80].mxu1 %v772_v36  ;;  %v804_v36 = vld [vmem:[%s3706_s15 + $0x380] sm:$0xff] }
 0x1f4   : > { %1226 = vmatprep.mubr.f32.mxu0 %v775_v37  ;;  %1634 = vmatprep.mubr.f32.mxu1 %v775_v37  ;;  %v510_v37 = vld [vmem:[#allocation2 + $0x50] sm:$0xff] }
 0x1f7   : > { %1227 = vmatmul.mubr.f32.gmra.mrb[82].mxu0 %v774_v38  ;;  %1635 = vmatmul.mubr.f32.gmra.mrb[82].mxu1 %v774_v38  ;;  %v807_v38 = vld [vmem:[%s3706_s15 + $0x398] sm:$0xff] }
 0x1f8   : > { %1232 = vmatprep.mubr.f32.mxu0 %v777_v39  ;;  %1639 = vmatprep.mubr.f32.mxu1 %v777_v39 }
 0x1fb   : > { %1233 = vmatmul.mubr.f32.gmra.mrb[84].mxu0 %v776_v40  ;;  %1640 = vmatmul.mubr.f32.gmra.mrb[84].mxu1 %v776_v40 }
 0x1fc   : > { %1238 = vmatprep.mubr.f32.mxu0 %v779_v41  ;;  %1644 = vmatprep.mubr.f32.mxu1 %v779_v41 }
 0x1ff   : > { %1239 = vmatmul.mubr.f32.gmra.mrb[86].mxu0 %v778_v42  ;;  %1645 = vmatmul.mubr.f32.gmra.mrb[86].mxu1 %v778_v42 }
 0x200   : > { %1244 = vmatprep.mubr.f32.mxu0 %v781_v43  ;;  %1649 = vmatprep.mubr.f32.mxu1 %v781_v43 }
 0x203   : > { %1245 = vmatmul.mubr.f32.gmra.mrb[88].mxu0 %v780_v44  ;;  %1650 = vmatmul.mubr.f32.gmra.mrb[88].mxu1 %v780_v44 }
 0x204   : > { %1250 = vmatprep.mubr.f32.mxu0 %v783_v45  ;;  %1654 = vmatprep.mubr.f32.mxu1 %v783_v45 }
 0x207   : > { %1251 = vmatmul.mubr.f32.gmra.mrb[90].mxu0 %v782_v46  ;;  %1655 = vmatmul.mubr.f32.gmra.mrb[90].mxu1 %v782_v46  ;;  %v512_v46 = vld [vmem:[#allocation2 + $0x60] sm:$0xff] }
 0x208   : > { %1256 = vmatprep.mubr.f32.mxu0 %v785_v47  ;;  %1659 = vmatprep.mubr.f32.mxu1 %v785_v47  ;;  %v514_v47 = vld [vmem:[#allocation2 + $0x70] sm:$0xff] }
 0x20b   : > { %1257 = vmatmul.mubr.f32.gmra.mrb[92].mxu0 %v784_v48  ;;  %1660 = vmatmul.mubr.f32.gmra.mrb[92].mxu1 %v784_v48  ;;  %v806_v48 = vld [vmem:[%s3706_s15 + $0x390] sm:$0xff] }
 0x20c   : > { %1262 = vmatprep.mubr.f32.mxu0 %v787_v49  ;;  %1664 = vmatprep.mubr.f32.mxu1 %v787_v49  ;;  %v513_v49 = vld [vmem:[#allocation2 + $0x68] sm:$0xff] }
 0x20f   : > { %1263 = vmatmul.mubr.f32.gmra.mrb[94].mxu0 %v786_v50  ;;  %1665 = vmatmul.mubr.f32.gmra.mrb[94].mxu1 %v786_v50  ;;  %v809_v50 = vld [vmem:[%s3706_s15 + $0x3a8] sm:$0xff] }
 0x210   : > { %1268 = vmatprep.mubr.f32.mxu0 %v789_v51  ;;  %1669 = vmatprep.mubr.f32.mxu1 %v789_v51 }
 0x213   : > { %1269 = vmatmul.mubr.f32.gmra.mrb[96].mxu0 %v788_v52  ;;  %1670 = vmatmul.mubr.f32.gmra.mrb[96].mxu1 %v788_v52 }
 0x214   : > { %1274 = vmatprep.mubr.f32.mxu0 %v791_v53  ;;  %1674 = vmatprep.mubr.f32.mxu1 %v791_v53 }
 0x217   : > { %1275 = vmatmul.mubr.f32.gmra.mrb[98].mxu0 %v790_v54  ;;  %1675 = vmatmul.mubr.f32.gmra.mrb[98].mxu1 %v790_v54 }
 0x218   : > { %1280 = vmatprep.mubr.f32.mxu0 %v793_v55  ;;  %1679 = vmatprep.mubr.f32.mxu1 %v793_v55 }
 0x21b   : > { %1281 = vmatmul.mubr.f32.gmra.mrb[100].mxu0 %v792_v56  ;;  %1680 = vmatmul.mubr.f32.gmra.mrb[100].mxu1 %v792_v56 }
 0x21c   : > { %1286 = vmatprep.mubr.f32.mxu0 %v795_v57  ;;  %1684 = vmatprep.mubr.f32.mxu1 %v795_v57 }
 0x21f   : > { %1287 = vmatmul.mubr.f32.gmra.mrb[102].mxu0 %v794_v58  ;;  %1685 = vmatmul.mubr.f32.gmra.mrb[102].mxu1 %v794_v58  ;;  %v515_v58 = vld [vmem:[#allocation2 + $0x78] sm:$0xff] }
 0x220   : > { %1292 = vmatprep.mubr.f32.mxu0 %v797_v59  ;;  %1689 = vmatprep.mubr.f32.mxu1 %v797_v59  ;;  %v517_v59 = vld [vmem:[#allocation2 + $0x88] sm:$0xff] }
 0x223   : > { %1293 = vmatmul.mubr.f32.gmra.mrb[104].mxu0 %v796_v60  ;;  %1690 = vmatmul.mubr.f32.gmra.mrb[104].mxu1 %v796_v60  ;;  %v808_v60 = vld [vmem:[%s3706_s15 + $0x3a0] sm:$0xff] }
 0x224   : > { %1298 = vmatprep.mubr.f32.mxu0 %v799_v61  ;;  %1694 = vmatprep.mubr.f32.mxu1 %v799_v61  ;;  %v516_v61 = vld [vmem:[#allocation2 + $0x80] sm:$0xff] }
 0x226   : > { %v982_v3 = vpop.f32.mrb[0].mxu0  ;;  %v1431_v4 = vpop.f32.mrb[0].mxu1 }
 0x227   : > { %v1750_v6 = vadd.f32 %v982_v3, %v500_v62  ;;  %v1752_v7 = vadd.f32 %v1431_v4, %v502_v63  ;;  %v984_v8 = vpop.f32.mrb[1].mxu0  ;;  %1299 = vmatmul.mubr.f32.gmra.mrb[106].mxu0 %v798_v0  ;;  %v1433_v9 = vpop.f32.mrb[1].mxu1  ;;  %1695 = vmatmul.mubr.f32.gmra.mrb[106].mxu1 %v798_v0  ;;  %v811_v62 = vld [vmem:[%s3706_s15 + $0x3b8] sm:$0xff] }
 0x228   : > { %v1751_v10 = vadd.f32 %v984_v8, %v501_v1  ;;  %1304 = vmatprep.mubr.f32.mxu0 %v801_v2  ;;  %1699 = vmatprep.mubr.f32.mxu1 %v801_v2  ;;  %v520_v8 = vld [vmem:[#allocation2 + $0xa0] sm:$0xff]  ;;  %v810_v9 = vld [vmem:[%s3706_s15 + $0x3b0] sm:$0xff] }
 0x229   : > { %1942 = vst [vmem:[#allocation2] sm:$0xff] %v1750_v6  ;;  %1944 = vst [vmem:[#allocation2 + $0x10] sm:$0xff] %v1752_v7  ;;  %v518_v7 = vld [vmem:[#allocation2 + $0x90] sm:$0xff] }
 0x22a   : > { %1943 = vst [vmem:[#allocation2 + $0x8] sm:$0xff] %v1751_v10  ;;  %v988_v16 = vpop.f32.mrb[2].mxu0  ;;  %v1436_v17 = vpop.f32.mrb[2].mxu1  ;;  %v519_v10 = vld [vmem:[#allocation2 + $0x98] sm:$0xff] }
 0x22b   : > { %v1753_v18 = vadd.f32 %v988_v16, %v503_v11  ;;  %v1755_v19 = vadd.f32 %v1436_v17, %v505_v12  ;;  %v990_v20 = vpop.f32.mrb[3].mxu0  ;;  %1305 = vmatmul.mubr.f32.gmra.mrb[108].mxu0 %v800_v13  ;;  %v1438_v21 = vpop.f32.mrb[3].mxu1  ;;  %1700 = vmatmul.mubr.f32.gmra.mrb[108].mxu1 %v800_v13  ;;  %v813_v11 = vld [vmem:[%s3706_s15 + $0x3c8] sm:$0xff] }
 0x22c   : > { %v1754_v22 = vadd.f32 %v990_v20, %v504_v14  ;;  %1310 = vmatprep.mubr.f32.mxu0 %v803_v15  ;;  %1704 = vmatprep.mubr.f32.mxu1 %v803_v15  ;;  %v523_v20 = vld [vmem:[#allocation2 + $0xb8] sm:$0xff]  ;;  %v812_v21 = vld [vmem:[%s3706_s15 + $0x3c0] sm:$0xff] }
 0x22d   : > { %1945 = vst [vmem:[#allocation2 + $0x18] sm:$0xff] %v1753_v18  ;;  %1947 = vst [vmem:[#allocation2 + $0x28] sm:$0xff] %v1755_v19  ;;  %v521_v19 = vld [vmem:[#allocation2 + $0xa8] sm:$0xff] }
 0x22e   : > { %1946 = vst [vmem:[#allocation2 + $0x20] sm:$0xff] %v1754_v22  ;;  %v994_v27 = vpop.f32.mrb[4].mxu0  ;;  %v1441_v28 = vpop.f32.mrb[4].mxu1  ;;  %v522_v22 = vld [vmem:[#allocation2 + $0xb0] sm:$0xff] }
 0x22f   : > { %v1756_v29 = vadd.f32 %v994_v27, %v506_v23  ;;  %v1758_v30 = vadd.f32 %v1441_v28, %v508_v24  ;;  %v996_v31 = vpop.f32.mrb[5].mxu0  ;;  %1311 = vmatmul.mubr.f32.gmra.mrb[110].mxu0 %v802_v5  ;;  %v1443_v32 = vpop.f32.mrb[5].mxu1  ;;  %1705 = vmatmul.mubr.f32.gmra.mrb[110].mxu1 %v802_v5  ;;  %v815_v23 = vld [vmem:[%s3706_s15 + $0x3d8] sm:$0xff] }
 0x230   : > { %v1757_v33 = vadd.f32 %v996_v31, %v507_v25  ;;  %1316 = vmatprep.mubr.f32.mxu0 %v805_v26  ;;  %1709 = vmatprep.mubr.f32.mxu1 %v805_v26  ;;  %v526_v31 = vld [vmem:[#allocation2 + $0xd0] sm:$0xff] }
 0x231   : > { %1948 = vst [vmem:[#allocation2 + $0x30] sm:$0xff] %v1756_v29  ;;  %1950 = vst [vmem:[#allocation2 + $0x40] sm:$0xff] %v1758_v30  ;;  %v524_v30 = vld [vmem:[#allocation2 + $0xc0] sm:$0xff]  ;;  %v814_v32 = vld [vmem:[%s3706_s15 + $0x3d0] sm:$0xff] }
 0x232   : > { %1949 = vst [vmem:[#allocation2 + $0x38] sm:$0xff] %v1757_v33  ;;  %v1000_v39 = vpop.f32.mrb[6].mxu0  ;;  %v1446_v40 = vpop.f32.mrb[6].mxu1  ;;  %v525_v33 = vld [vmem:[#allocation2 + $0xc8] sm:$0xff] }
 0x233   : > { %v1759_v41 = vadd.f32 %v1000_v39, %v509_v34  ;;  %v1761_v42 = vadd.f32 %v1446_v40, %v511_v35  ;;  %v1002_v43 = vpop.f32.mrb[7].mxu0  ;;  %1317 = vmatmul.mubr.f32.gmra.mrb[112].mxu0 %v804_v36  ;;  %v1448_v44 = vpop.f32.mrb[7].mxu1  ;;  %1710 = vmatmul.mubr.f32.gmra.mrb[112].mxu1 %v804_v36  ;;  %v817_v34 = vld [vmem:[%s3706_s15 + $0x3e8] sm:$0xff] }
 0x234   : > { %v1760_v45 = vadd.f32 %v1002_v43, %v510_v37  ;;  %1322 = vmatprep.mubr.f32.mxu0 %v807_v38  ;;  %1714 = vmatprep.mubr.f32.mxu1 %v807_v38  ;;  %v529_v43 = vld [vmem:[#allocation2 + $0xe8] sm:$0xff]  ;;  %v816_v44 = vld [vmem:[%s3706_s15 + $0x3e0] sm:$0xff] }
 0x235   : > { %1951 = vst [vmem:[#allocation2 + $0x48] sm:$0xff] %v1759_v41  ;;  %1953 = vst [vmem:[#allocation2 + $0x58] sm:$0xff] %v1761_v42  ;;  %v527_v42 = vld [vmem:[#allocation2 + $0xd8] sm:$0xff] }
 0x236   : > { %1952 = vst [vmem:[#allocation2 + $0x50] sm:$0xff] %v1760_v45  ;;  %v1006_v51 = vpop.f32.mrb[8].mxu0  ;;  %v1451_v52 = vpop.f32.mrb[8].mxu1  ;;  %v528_v45 = vld [vmem:[#allocation2 + $0xe0] sm:$0xff] }
 0x237   : > { %v1762_v53 = vadd.f32 %v1006_v51, %v512_v46  ;;  %v1764_v54 = vadd.f32 %v1451_v52, %v514_v47  ;;  %v1008_v55 = vpop.f32.mrb[9].mxu0  ;;  %1323 = vmatmul.mubr.f32.gmra.mrb[114].mxu0 %v806_v48  ;;  %v1453_v56 = vpop.f32.mrb[9].mxu1  ;;  %1715 = vmatmul.mubr.f32.gmra.mrb[114].mxu1 %v806_v48  ;;  %v819_v46 = vld [vmem:[%s3706_s15 + $0x3f8] sm:$0xff] }
 0x238   : > { %v1763_v57 = vadd.f32 %v1008_v55, %v513_v49  ;;  %1328 = vmatprep.mubr.f32.mxu0 %v809_v50  ;;  %1719 = vmatprep.mubr.f32.mxu1 %v809_v50  ;;  %v532_v55 = vld [vmem:[#allocation2 + $0x100] sm:$0xff]  ;;  %v818_v56 = vld [vmem:[%s3706_s15 + $0x3f0] sm:$0xff] }
 0x239   : > { %1954 = vst [vmem:[#allocation2 + $0x60] sm:$0xff] %v1762_v53  ;;  %1956 = vst [vmem:[#allocation2 + $0x70] sm:$0xff] %v1764_v54  ;;  %v530_v54 = vld [vmem:[#allocation2 + $0xf0] sm:$0xff] }
 0x23a   : > { %1955 = vst [vmem:[#allocation2 + $0x68] sm:$0xff] %v1763_v57  ;;  %v1012_v63 = vpop.f32.mrb[10].mxu0  ;;  %v1456_v0 = vpop.f32.mrb[10].mxu1  ;;  %v531_v57 = vld [vmem:[#allocation2 + $0xf8] sm:$0xff] }
 0x23b   : > { %v1765_v1 = vadd.f32 %v1012_v63, %v515_v58  ;;  %v1767_v2 = vadd.f32 %v1456_v0, %v517_v59  ;;  %v1014_v3 = vpop.f32.mrb[11].mxu0  ;;  %1329 = vmatmul.mubr.f32.gmra.mrb[116].mxu0 %v808_v60  ;;  %v1458_v4 = vpop.f32.mrb[11].mxu1  ;;  %1720 = vmatmul.mubr.f32.gmra.mrb[116].mxu1 %v808_v60 }
 0x23c   : > { %v1766_v6 = vadd.f32 %v1014_v3, %v516_v61  ;;  %1334 = vmatprep.mubr.f32.mxu0 %v811_v62  ;;  %1724 = vmatprep.mubr.f32.mxu1 %v811_v62  ;;  %v534_v3 = vld [vmem:[#allocation2 + $0x110] sm:$0xff] }
 0x23d   : > { %1957 = vst [vmem:[#allocation2 + $0x78] sm:$0xff] %v1765_v1  ;;  %1959 = vst [vmem:[#allocation2 + $0x88] sm:$0xff] %v1767_v2  ;;  %v533_v1 = vld [vmem:[#allocation2 + $0x108] sm:$0xff]  ;;  %v535_v2 = vld [vmem:[#allocation2 + $0x118] sm:$0xff] }
 0x23e   : > { %1958 = vst [vmem:[#allocation2 + $0x80] sm:$0xff] %v1766_v6  ;;  %v1018_v12 = vpop.f32.mrb[12].mxu0  ;;  %v1461_v13 = vpop.f32.mrb[12].mxu1 }
 0x23f   : > { %v1768_v14 = vadd.f32 %v1018_v12, %v518_v7  ;;  %v1770_v15 = vadd.f32 %v1461_v13, %v520_v8  ;;  %v1020_v16 = vpop.f32.mrb[13].mxu0  ;;  %1335 = vmatmul.mubr.f32.gmra.mrb[118].mxu0 %v810_v9  ;;  %v1463_v17 = vpop.f32.mrb[13].mxu1  ;;  %1725 = vmatmul.mubr.f32.gmra.mrb[118].mxu1 %v810_v9  ;;  %v536_v12 = vld [vmem:[#allocation2 + $0x120] sm:$0xff]  ;;  %v538_v13 = vld [vmem:[#allocation2 + $0x130] sm:$0xff] }
 0x240   : > { %v1769_v18 = vadd.f32 %v1020_v16, %v519_v10  ;;  %1340 = vmatprep.mubr.f32.mxu0 %v813_v11  ;;  %1729 = vmatprep.mubr.f32.mxu1 %v813_v11 }
 0x241   : > { %1960 = vst [vmem:[#allocation2 + $0x90] sm:$0xff] %v1768_v14  ;;  %1962 = vst [vmem:[#allocation2 + $0xa0] sm:$0xff] %v1770_v15  ;;  %v537_v14 = vld [vmem:[#allocation2 + $0x128] sm:$0xff] }
 0x242   : > { %1961 = vst [vmem:[#allocation2 + $0x98] sm:$0xff] %v1769_v18  ;;  %v1024_v24 = vpop.f32.mrb[14].mxu0  ;;  %v1466_v5 = vpop.f32.mrb[14].mxu1 }
 0x243   : > { %v1771_v25 = vadd.f32 %v1024_v24, %v521_v19  ;;  %v1773_v26 = vadd.f32 %v1466_v5, %v523_v20  ;;  %v1026_v27 = vpop.f32.mrb[15].mxu0  ;;  %1341 = vmatmul.mubr.f32.gmra.mrb[120].mxu0 %v812_v21  ;;  %v1468_v28 = vpop.f32.mrb[15].mxu1  ;;  %1730 = vmatmul.mubr.f32.gmra.mrb[120].mxu1 %v812_v21  ;;  %v540_v24 = vld [vmem:[#allocation2 + $0x140] sm:$0xff] }
 0x244   : > { %v1772_v29 = vadd.f32 %v1026_v27, %v522_v22  ;;  %1346 = vmatprep.mubr.f32.mxu0 %v815_v23  ;;  %1734 = vmatprep.mubr.f32.mxu1 %v815_v23  ;;  %v539_v22 = vld [vmem:[#allocation2 + $0x138] sm:$0xff]  ;;  %v541_v23 = vld [vmem:[#allocation2 + $0x148] sm:$0xff] }
 0x245   : > { %1963 = vst [vmem:[#allocation2 + $0xa8] sm:$0xff] %v1771_v25  ;;  %1965 = vst [vmem:[#allocation2 + $0xb8] sm:$0xff] %v1773_v26 }
 0x246   : > { %1964 = vst [vmem:[#allocation2 + $0xb0] sm:$0xff] %v1772_v29  ;;  %v1030_v35 = vpop.f32.mrb[16].mxu0  ;;  %v1471_v36 = vpop.f32.mrb[16].mxu1 }
 0x247   : > { %v1774_v37 = vadd.f32 %v1030_v35, %v524_v30  ;;  %v1776_v38 = vadd.f32 %v1471_v36, %v526_v31  ;;  %v1032_v39 = vpop.f32.mrb[17].mxu0  ;;  %1347 = vmatmul.mubr.f32.gmra.mrb[122].mxu0 %v814_v32  ;;  %v1473_v40 = vpop.f32.mrb[17].mxu1  ;;  %1735 = vmatmul.mubr.f32.gmra.mrb[122].mxu1 %v814_v32  ;;  %v542_v31 = vld [vmem:[#allocation2 + $0x150] sm:$0xff]  ;;  %v544_v32 = vld [vmem:[#allocation2 + $0x160] sm:$0xff] }
 0x248   : > { %v1775_v41 = vadd.f32 %v1032_v39, %v525_v33  ;;  %1352 = vmatprep.mubr.f32.mxu0 %v817_v34  ;;  %1739 = vmatprep.mubr.f32.mxu1 %v817_v34  ;;  %v543_v33 = vld [vmem:[#allocation2 + $0x158] sm:$0xff] }
 0x249   : > { %1966 = vst [vmem:[#allocation2 + $0xc0] sm:$0xff] %v1774_v37  ;;  %1968 = vst [vmem:[#allocation2 + $0xd0] sm:$0xff] %v1776_v38 }
 0x24a   : > { %1967 = vst [vmem:[#allocation2 + $0xc8] sm:$0xff] %v1775_v41  ;;  %v1036_v47 = vpop.f32.mrb[18].mxu0  ;;  %v1476_v48 = vpop.f32.mrb[18].mxu1  ;;  %v545_v41 = vld [vmem:[#allocation2 + $0x168] sm:$0xff] }
 0x24b   : > { %v1777_v49 = vadd.f32 %v1036_v47, %v527_v42  ;;  %v1779_v50 = vadd.f32 %v1476_v48, %v529_v43  ;;  %v1038_v51 = vpop.f32.mrb[19].mxu0  ;;  %1353 = vmatmul.mubr.f32.gmra.mrb[124].mxu0 %v816_v44  ;;  %v1478_v52 = vpop.f32.mrb[19].mxu1  ;;  %1740 = vmatmul.mubr.f32.gmra.mrb[124].mxu1 %v816_v44  ;;  %v547_v42 = vld [vmem:[#allocation2 + $0x178] sm:$0xff]  ;;  %v546_v43 = vld [vmem:[#allocation2 + $0x170] sm:$0xff] }
 0x24c   : > { %v1778_v53 = vadd.f32 %v1038_v51, %v528_v45  ;;  %1358 = vmatprep.mubr.f32.mxu0 %v819_v46  ;;  %1744 = vmatprep.mubr.f32.mxu1 %v819_v46  ;;  %v548_v51 = vld [vmem:[#allocation2 + $0x180] sm:$0xff]  ;;  %v550_v52 = vld [vmem:[#allocation2 + $0x190] sm:$0xff] }
 0x24d   : > { %1969 = vst [vmem:[#allocation2 + $0xd8] sm:$0xff] %v1777_v49  ;;  %1971 = vst [vmem:[#allocation2 + $0xe8] sm:$0xff] %v1779_v50 }
 0x24e   : > { %1970 = vst [vmem:[#allocation2 + $0xe0] sm:$0xff] %v1778_v53  ;;  %v1042_v58 = vpop.f32.mrb[20].mxu0  ;;  %v1481_v59 = vpop.f32.mrb[20].mxu1  ;;  %v549_v53 = vld [vmem:[#allocation2 + $0x188] sm:$0xff] }
 0x24f   : > { %v1780_v60 = vadd.f32 %v1042_v58, %v530_v54  ;;  %v1782_v61 = vadd.f32 %v1481_v59, %v532_v55  ;;  %v1044_v62 = vpop.f32.mrb[21].mxu0  ;;  %1359 = vmatmul.mubr.f32.gmra.mrb[126].mxu0 %v818_v56  ;;  %v1483_v63 = vpop.f32.mrb[21].mxu1  ;;  %1745 = vmatmul.mubr.f32.gmra.mrb[126].mxu1 %v818_v56 }
 0x250   : > { %v1781_v0 = vadd.f32 %v1044_v62, %v531_v57  ;;  %v553_v62 = vld [vmem:[#allocation2 + $0x1a8] sm:$0xff]  ;;  %v552_v63 = vld [vmem:[#allocation2 + $0x1a0] sm:$0xff] }
 0x251   : > { %1972 = vst [vmem:[#allocation2 + $0xf0] sm:$0xff] %v1780_v60  ;;  %1974 = vst [vmem:[#allocation2 + $0x100] sm:$0xff] %v1782_v61  ;;  %v551_v61 = vld [vmem:[#allocation2 + $0x198] sm:$0xff] }
 0x252   : > { %1973 = vst [vmem:[#allocation2 + $0xf8] sm:$0xff] %v1781_v0  ;;  %v1048_v4 = vpop.f32.mrb[22].mxu0  ;;  %v1486_v6 = vpop.f32.mrb[22].mxu1 }
 0x253   : > { %v1783_v7 = vadd.f32 %v1048_v4, %v533_v1  ;;  %v1785_v8 = vadd.f32 %v1486_v6, %v535_v2  ;;  %v1050_v9 = vpop.f32.mrb[23].mxu0  ;;  %v1488_v10 = vpop.f32.mrb[23].mxu1 }
 0x254   : > { %v1784_v11 = vadd.f32 %v1050_v9, %v534_v3  ;;  %v556_v9 = vld [vmem:[#allocation2 + $0x1c0] sm:$0xff]  ;;  %v555_v10 = vld [vmem:[#allocation2 + $0x1b8] sm:$0xff] }
 0x255   : > { %1975 = vst [vmem:[#allocation2 + $0x108] sm:$0xff] %v1783_v7  ;;  %1977 = vst [vmem:[#allocation2 + $0x118] sm:$0xff] %v1785_v8  ;;  %v554_v8 = vld [vmem:[#allocation2 + $0x1b0] sm:$0xff] }
 0x256   : > { %1976 = vst [vmem:[#allocation2 + $0x110] sm:$0xff] %v1784_v11  ;;  %v1054_v15 = vpop.f32.mrb[24].mxu0  ;;  %v1491_v16 = vpop.f32.mrb[24].mxu1 }
 0x257   : > { %v1786_v17 = vadd.f32 %v1054_v15, %v536_v12  ;;  %v1788_v18 = vadd.f32 %v1491_v16, %v538_v13  ;;  %v1056_v19 = vpop.f32.mrb[25].mxu0  ;;  %v1493_v20 = vpop.f32.mrb[25].mxu1 }
 0x258   : > { %v1787_v21 = vadd.f32 %v1056_v19, %v537_v14  ;;  %v559_v19 = vld [vmem:[#allocation2 + $0x1d8] sm:$0xff]  ;;  %v558_v20 = vld [vmem:[#allocation2 + $0x1d0] sm:$0xff] }
 0x259   : > { %1978 = vst [vmem:[#allocation2 + $0x120] sm:$0xff] %v1786_v17  ;;  %1980 = vst [vmem:[#allocation2 + $0x130] sm:$0xff] %v1788_v18  ;;  %v557_v18 = vld [vmem:[#allocation2 + $0x1c8] sm:$0xff] }
 0x25a   : > { %1979 = vst [vmem:[#allocation2 + $0x128] sm:$0xff] %v1787_v21  ;;  %v1060_v5 = vpop.f32.mrb[26].mxu0  ;;  %v1496_v25 = vpop.f32.mrb[26].mxu1 }
 0x25b   : > { %v1789_v26 = vadd.f32 %v1060_v5, %v539_v22  ;;  %v1791_v27 = vadd.f32 %v1496_v25, %v541_v23  ;;  %v1062_v28 = vpop.f32.mrb[27].mxu0  ;;  %v1498_v29 = vpop.f32.mrb[27].mxu1 }
 0x25c   : > { %v1790_v30 = vadd.f32 %v1062_v28, %v540_v24  ;;  %v562_v28 = vld [vmem:[#allocation2 + $0x1f0] sm:$0xff]  ;;  %v561_v29 = vld [vmem:[#allocation2 + $0x1e8] sm:$0xff] }
 0x25d   : > { %1981 = vst [vmem:[#allocation2 + $0x138] sm:$0xff] %v1789_v26  ;;  %1983 = vst [vmem:[#allocation2 + $0x148] sm:$0xff] %v1791_v27  ;;  %v560_v27 = vld [vmem:[#allocation2 + $0x1e0] sm:$0xff] }
 0x25e   : > { %1982 = vst [vmem:[#allocation2 + $0x140] sm:$0xff] %v1790_v30  ;;  %v1066_v34 = vpop.f32.mrb[28].mxu0  ;;  %v1501_v35 = vpop.f32.mrb[28].mxu1 }
 0x25f   : > { %v1792_v36 = vadd.f32 %v1066_v34, %v542_v31  ;;  %v1794_v37 = vadd.f32 %v1501_v35, %v544_v32  ;;  %v1068_v38 = vpop.f32.mrb[29].mxu0  ;;  %v1503_v39 = vpop.f32.mrb[29].mxu1 }
 0x260   : > { %v1793_v40 = vadd.f32 %v1068_v38, %v543_v33  ;;  %v565_v38 = vld [vmem:[#allocation2 + $0x208] sm:$0xff]  ;;  %v564_v39 = vld [vmem:[#allocation2 + $0x200] sm:$0xff] }
 0x261   : > { %1984 = vst [vmem:[#allocation2 + $0x150] sm:$0xff] %v1792_v36  ;;  %1986 = vst [vmem:[#allocation2 + $0x160] sm:$0xff] %v1794_v37  ;;  %v563_v37 = vld [vmem:[#allocation2 + $0x1f8] sm:$0xff] }
 0x262   : > { %1985 = vst [vmem:[#allocation2 + $0x158] sm:$0xff] %v1793_v40  ;;  %v1072_v44 = vpop.f32.mrb[30].mxu0  ;;  %v1506_v45 = vpop.f32.mrb[30].mxu1 }
 0x263   : > { %v1795_v46 = vadd.f32 %v1072_v44, %v545_v41  ;;  %v1797_v47 = vadd.f32 %v1506_v45, %v547_v42  ;;  %v1074_v48 = vpop.f32.mrb[31].mxu0  ;;  %v1508_v49 = vpop.f32.mrb[31].mxu1 }
 0x264   : > { %v1796_v50 = vadd.f32 %v1074_v48, %v546_v43  ;;  %v568_v48 = vld [vmem:[#allocation2 + $0x220] sm:$0xff]  ;;  %v567_v49 = vld [vmem:[#allocation2 + $0x218] sm:$0xff] }
 0x265   : > { %1987 = vst [vmem:[#allocation2 + $0x168] sm:$0xff] %v1795_v46  ;;  %1989 = vst [vmem:[#allocation2 + $0x178] sm:$0xff] %v1797_v47  ;;  %v566_v47 = vld [vmem:[#allocation2 + $0x210] sm:$0xff] }
 0x266   : > { %1988 = vst [vmem:[#allocation2 + $0x170] sm:$0xff] %v1796_v50  ;;  %v1078_v54 = vpop.f32.mrb[32].mxu0  ;;  %v1511_v55 = vpop.f32.mrb[32].mxu1 }
 0x267   : > { %v1798_v56 = vadd.f32 %v1078_v54, %v548_v51  ;;  %v1800_v57 = vadd.f32 %v1511_v55, %v550_v52  ;;  %v1080_v58 = vpop.f32.mrb[33].mxu0  ;;  %v1513_v59 = vpop.f32.mrb[33].mxu1 }
 0x268   : > { %v1799_v60 = vadd.f32 %v1080_v58, %v549_v53  ;;  %v571_v58 = vld [vmem:[#allocation2 + $0x238] sm:$0xff]  ;;  %v570_v59 = vld [vmem:[#allocation2 + $0x230] sm:$0xff] }
 0x269   : > { %1990 = vst [vmem:[#allocation2 + $0x180] sm:$0xff] %v1798_v56  ;;  %1992 = vst [vmem:[#allocation2 + $0x190] sm:$0xff] %v1800_v57  ;;  %v569_v57 = vld [vmem:[#allocation2 + $0x228] sm:$0xff] }
 0x26a   : > { %1991 = vst [vmem:[#allocation2 + $0x188] sm:$0xff] %v1799_v60  ;;  %v1084_v0 = vpop.f32.mrb[34].mxu0  ;;  %v1516_v1 = vpop.f32.mrb[34].mxu1 }
 0x26b   : > { %v1801_v2 = vadd.f32 %v1084_v0, %v551_v61  ;;  %v1803_v3 = vadd.f32 %v1516_v1, %v553_v62  ;;  %v1086_v4 = vpop.f32.mrb[35].mxu0  ;;  %v1518_v6 = vpop.f32.mrb[35].mxu1 }
 0x26c   : > { %v1802_v7 = vadd.f32 %v1086_v4, %v552_v63  ;;  %v574_v4 = vld [vmem:[#allocation2 + $0x250] sm:$0xff]  ;;  %v573_v6 = vld [vmem:[#allocation2 + $0x248] sm:$0xff] }
 0x26d   : > { %1993 = vst [vmem:[#allocation2 + $0x198] sm:$0xff] %v1801_v2  ;;  %1995 = vst [vmem:[#allocation2 + $0x1a8] sm:$0xff] %v1803_v3  ;;  %v572_v3 = vld [vmem:[#allocation2 + $0x240] sm:$0xff] }
 0x26e   : > { %1994 = vst [vmem:[#allocation2 + $0x1a0] sm:$0xff] %v1802_v7  ;;  %v1090_v11 = vpop.f32.mrb[36].mxu0  ;;  %v1521_v12 = vpop.f32.mrb[36].mxu1 }
 0x26f   : > { %v1804_v13 = vadd.f32 %v1090_v11, %v554_v8  ;;  %v1806_v14 = vadd.f32 %v1521_v12, %v556_v9  ;;  %v1092_v15 = vpop.f32.mrb[37].mxu0  ;;  %v1523_v16 = vpop.f32.mrb[37].mxu1 }
 0x270   : > { %v1805_v17 = vadd.f32 %v1092_v15, %v555_v10  ;;  %v577_v15 = vld [vmem:[#allocation2 + $0x268] sm:$0xff]  ;;  %v576_v16 = vld [vmem:[#allocation2 + $0x260] sm:$0xff] }
 0x271   : > { %1996 = vst [vmem:[#allocation2 + $0x1b0] sm:$0xff] %v1804_v13  ;;  %1998 = vst [vmem:[#allocation2 + $0x1c0] sm:$0xff] %v1806_v14  ;;  %v575_v14 = vld [vmem:[#allocation2 + $0x258] sm:$0xff] }
 0x272   : > { %1997 = vst [vmem:[#allocation2 + $0x1b8] sm:$0xff] %v1805_v17  ;;  %v1096_v21 = vpop.f32.mrb[38].mxu0  ;;  %v1526_v22 = vpop.f32.mrb[38].mxu1 }
 0x273   : > { %v1807_v23 = vadd.f32 %v1096_v21, %v557_v18  ;;  %v1809_v24 = vadd.f32 %v1526_v22, %v559_v19  ;;  %v1098_v5 = vpop.f32.mrb[39].mxu0  ;;  %v1528_v25 = vpop.f32.mrb[39].mxu1 }
 0x274   : > { %v1808_v26 = vadd.f32 %v1098_v5, %v558_v20  ;;  %v580_v5 = vld [vmem:[#allocation2 + $0x280] sm:$0xff]  ;;  %v579_v25 = vld [vmem:[#allocation2 + $0x278] sm:$0xff] }
 0x275   : > { %1999 = vst [vmem:[#allocation2 + $0x1c8] sm:$0xff] %v1807_v23  ;;  %2001 = vst [vmem:[#allocation2 + $0x1d8] sm:$0xff] %v1809_v24  ;;  %v578_v24 = vld [vmem:[#allocation2 + $0x270] sm:$0xff] }
 0x276   : > { %2000 = vst [vmem:[#allocation2 + $0x1d0] sm:$0xff] %v1808_v26  ;;  %v1102_v30 = vpop.f32.mrb[40].mxu0  ;;  %v1531_v31 = vpop.f32.mrb[40].mxu1 }
 0x277   : > { %v1810_v32 = vadd.f32 %v1102_v30, %v560_v27  ;;  %v1812_v33 = vadd.f32 %v1531_v31, %v562_v28  ;;  %v1104_v34 = vpop.f32.mrb[41].mxu0  ;;  %v1533_v35 = vpop.f32.mrb[41].mxu1 }
 0x278   : > { %v1811_v36 = vadd.f32 %v1104_v34, %v561_v29  ;;  %v583_v34 = vld [vmem:[#allocation2 + $0x298] sm:$0xff]  ;;  %v582_v35 = vld [vmem:[#allocation2 + $0x290] sm:$0xff] }
 0x279   : > { %2002 = vst [vmem:[#allocation2 + $0x1e0] sm:$0xff] %v1810_v32  ;;  %2004 = vst [vmem:[#allocation2 + $0x1f0] sm:$0xff] %v1812_v33  ;;  %v581_v33 = vld [vmem:[#allocation2 + $0x288] sm:$0xff] }
 0x27a   : > { %2003 = vst [vmem:[#allocation2 + $0x1e8] sm:$0xff] %v1811_v36  ;;  %v1108_v40 = vpop.f32.mrb[42].mxu0  ;;  %v1536_v41 = vpop.f32.mrb[42].mxu1 }
 0x27b   : > { %v1813_v42 = vadd.f32 %v1108_v40, %v563_v37  ;;  %v1815_v43 = vadd.f32 %v1536_v41, %v565_v38  ;;  %v1110_v44 = vpop.f32.mrb[43].mxu0  ;;  %v1538_v45 = vpop.f32.mrb[43].mxu1 }
 0x27c   : > { %v1814_v46 = vadd.f32 %v1110_v44, %v564_v39  ;;  %v586_v44 = vld [vmem:[#allocation2 + $0x2b0] sm:$0xff]  ;;  %v585_v45 = vld [vmem:[#allocation2 + $0x2a8] sm:$0xff] }
 0x27d   : > { %2005 = vst [vmem:[#allocation2 + $0x1f8] sm:$0xff] %v1813_v42  ;;  %2007 = vst [vmem:[#allocation2 + $0x208] sm:$0xff] %v1815_v43  ;;  %v584_v43 = vld [vmem:[#allocation2 + $0x2a0] sm:$0xff] }
 0x27e   : > { %2006 = vst [vmem:[#allocation2 + $0x200] sm:$0xff] %v1814_v46  ;;  %v1114_v50 = vpop.f32.mrb[44].mxu0  ;;  %v1541_v51 = vpop.f32.mrb[44].mxu1 }
 0x27f   : > { %v1816_v52 = vadd.f32 %v1114_v50, %v566_v47  ;;  %v1818_v53 = vadd.f32 %v1541_v51, %v568_v48  ;;  %v1116_v54 = vpop.f32.mrb[45].mxu0  ;;  %v1543_v55 = vpop.f32.mrb[45].mxu1 }
 0x280   : > { %v1817_v56 = vadd.f32 %v1116_v54, %v567_v49  ;;  %v589_v54 = vld [vmem:[#allocation2 + $0x2c8] sm:$0xff]  ;;  %v588_v55 = vld [vmem:[#allocation2 + $0x2c0] sm:$0xff] }
 0x281   : > { %2008 = vst [vmem:[#allocation2 + $0x210] sm:$0xff] %v1816_v52  ;;  %2010 = vst [vmem:[#allocation2 + $0x220] sm:$0xff] %v1818_v53  ;;  %v587_v53 = vld [vmem:[#allocation2 + $0x2b8] sm:$0xff] }
 0x282   : > { %2009 = vst [vmem:[#allocation2 + $0x218] sm:$0xff] %v1817_v56  ;;  %v1120_v60 = vpop.f32.mrb[46].mxu0  ;;  %v1546_v61 = vpop.f32.mrb[46].mxu1 }
 0x283   : > { %v1819_v62 = vadd.f32 %v1120_v60, %v569_v57  ;;  %v1821_v63 = vadd.f32 %v1546_v61, %v571_v58  ;;  %v1122_v0 = vpop.f32.mrb[47].mxu0  ;;  %v1548_v1 = vpop.f32.mrb[47].mxu1 }
 0x284   : > { %v1820_v2 = vadd.f32 %v1122_v0, %v570_v59  ;;  %v592_v0 = vld [vmem:[#allocation2 + $0x2e0] sm:$0xff]  ;;  %v591_v1 = vld [vmem:[#allocation2 + $0x2d8] sm:$0xff] }
 0x285   : > { %2011 = vst [vmem:[#allocation2 + $0x228] sm:$0xff] %v1819_v62  ;;  %2013 = vst [vmem:[#allocation2 + $0x238] sm:$0xff] %v1821_v63  ;;  %v590_v63 = vld [vmem:[#allocation2 + $0x2d0] sm:$0xff] }
 0x286   : > { %2012 = vst [vmem:[#allocation2 + $0x230] sm:$0xff] %v1820_v2  ;;  %v1126_v7 = vpop.f32.mrb[48].mxu0  ;;  %v1551_v8 = vpop.f32.mrb[48].mxu1 }
 0x287   : > { %v1822_v9 = vadd.f32 %v1126_v7, %v572_v3  ;;  %v1824_v10 = vadd.f32 %v1551_v8, %v574_v4  ;;  %v1128_v11 = vpop.f32.mrb[49].mxu0  ;;  %v1553_v12 = vpop.f32.mrb[49].mxu1 }
 0x288   : > { %v1823_v13 = vadd.f32 %v1128_v11, %v573_v6  ;;  %v595_v11 = vld [vmem:[#allocation2 + $0x2f8] sm:$0xff]  ;;  %v594_v12 = vld [vmem:[#allocation2 + $0x2f0] sm:$0xff] }
 0x289   : > { %2014 = vst [vmem:[#allocation2 + $0x240] sm:$0xff] %v1822_v9  ;;  %2016 = vst [vmem:[#allocation2 + $0x250] sm:$0xff] %v1824_v10  ;;  %v593_v10 = vld [vmem:[#allocation2 + $0x2e8] sm:$0xff] }
 0x28a   : > { %2015 = vst [vmem:[#allocation2 + $0x248] sm:$0xff] %v1823_v13  ;;  %v1132_v17 = vpop.f32.mrb[50].mxu0  ;;  %v1556_v18 = vpop.f32.mrb[50].mxu1 }
 0x28b   : > { %v1825_v19 = vadd.f32 %v1132_v17, %v575_v14  ;;  %v1827_v20 = vadd.f32 %v1556_v18, %v577_v15  ;;  %v1134_v21 = vpop.f32.mrb[51].mxu0  ;;  %v1558_v22 = vpop.f32.mrb[51].mxu1 }
 0x28c   : > { %v1826_v23 = vadd.f32 %v1134_v21, %v576_v16  ;;  %v598_v21 = vld [vmem:[#allocation2 + $0x310] sm:$0xff]  ;;  %v597_v22 = vld [vmem:[#allocation2 + $0x308] sm:$0xff] }
 0x28d   : > { %2017 = vst [vmem:[#allocation2 + $0x258] sm:$0xff] %v1825_v19  ;;  %2019 = vst [vmem:[#allocation2 + $0x268] sm:$0xff] %v1827_v20  ;;  %v596_v20 = vld [vmem:[#allocation2 + $0x300] sm:$0xff] }
 0x28e   : > { %2018 = vst [vmem:[#allocation2 + $0x260] sm:$0xff] %v1826_v23  ;;  %v1138_v26 = vpop.f32.mrb[52].mxu0  ;;  %v1561_v27 = vpop.f32.mrb[52].mxu1 }
 0x28f   : > { %v1828_v28 = vadd.f32 %v1138_v26, %v578_v24  ;;  %v1830_v29 = vadd.f32 %v1561_v27, %v580_v5  ;;  %v1140_v30 = vpop.f32.mrb[53].mxu0  ;;  %v1563_v31 = vpop.f32.mrb[53].mxu1 }
 0x290   : > { %v1829_v32 = vadd.f32 %v1140_v30, %v579_v25  ;;  %v601_v30 = vld [vmem:[#allocation2 + $0x328] sm:$0xff]  ;;  %v600_v31 = vld [vmem:[#allocation2 + $0x320] sm:$0xff] }
 0x291   : > { %2020 = vst [vmem:[#allocation2 + $0x270] sm:$0xff] %v1828_v28  ;;  %2022 = vst [vmem:[#allocation2 + $0x280] sm:$0xff] %v1830_v29  ;;  %v599_v29 = vld [vmem:[#allocation2 + $0x318] sm:$0xff] }
 0x292   : > { %2021 = vst [vmem:[#allocation2 + $0x278] sm:$0xff] %v1829_v32  ;;  %v1144_v36 = vpop.f32.mrb[54].mxu0  ;;  %v1566_v37 = vpop.f32.mrb[54].mxu1 }
 0x293   : > { %v1831_v38 = vadd.f32 %v1144_v36, %v581_v33  ;;  %v1833_v39 = vadd.f32 %v1566_v37, %v583_v34  ;;  %v1146_v40 = vpop.f32.mrb[55].mxu0  ;;  %v1568_v41 = vpop.f32.mrb[55].mxu1 }
 0x294   : > { %v1832_v42 = vadd.f32 %v1146_v40, %v582_v35  ;;  %v604_v40 = vld [vmem:[#allocation2 + $0x340] sm:$0xff]  ;;  %v603_v41 = vld [vmem:[#allocation2 + $0x338] sm:$0xff] }
 0x295   : > { %2023 = vst [vmem:[#allocation2 + $0x288] sm:$0xff] %v1831_v38  ;;  %2025 = vst [vmem:[#allocation2 + $0x298] sm:$0xff] %v1833_v39  ;;  %v602_v39 = vld [vmem:[#allocation2 + $0x330] sm:$0xff] }
 0x296   : > { %2024 = vst [vmem:[#allocation2 + $0x290] sm:$0xff] %v1832_v42  ;;  %v1150_v46 = vpop.f32.mrb[56].mxu0  ;;  %v1571_v47 = vpop.f32.mrb[56].mxu1 }
 0x297   : > { %v1834_v48 = vadd.f32 %v1150_v46, %v584_v43  ;;  %v1836_v49 = vadd.f32 %v1571_v47, %v586_v44  ;;  %v1152_v50 = vpop.f32.mrb[57].mxu0  ;;  %v1573_v51 = vpop.f32.mrb[57].mxu1 }
 0x298   : > { %v1835_v52 = vadd.f32 %v1152_v50, %v585_v45  ;;  %v607_v50 = vld [vmem:[#allocation2 + $0x358] sm:$0xff]  ;;  %v606_v51 = vld [vmem:[#allocation2 + $0x350] sm:$0xff] }
 0x299   : > { %2026 = vst [vmem:[#allocation2 + $0x2a0] sm:$0xff] %v1834_v48  ;;  %2028 = vst [vmem:[#allocation2 + $0x2b0] sm:$0xff] %v1836_v49  ;;  %v605_v49 = vld [vmem:[#allocation2 + $0x348] sm:$0xff] }
 0x29a   : > { %2027 = vst [vmem:[#allocation2 + $0x2a8] sm:$0xff] %v1835_v52  ;;  %v1156_v56 = vpop.f32.mrb[58].mxu0  ;;  %v1576_v57 = vpop.f32.mrb[58].mxu1 }
 0x29b   : > { %v1837_v58 = vadd.f32 %v1156_v56, %v587_v53  ;;  %v1839_v59 = vadd.f32 %v1576_v57, %v589_v54  ;;  %v1158_v60 = vpop.f32.mrb[59].mxu0  ;;  %v1578_v61 = vpop.f32.mrb[59].mxu1 }
 0x29c   : > { %v1838_v62 = vadd.f32 %v1158_v60, %v588_v55  ;;  %v610_v60 = vld [vmem:[#allocation2 + $0x370] sm:$0xff]  ;;  %v609_v61 = vld [vmem:[#allocation2 + $0x368] sm:$0xff] }
 0x29d   : > { %2029 = vst [vmem:[#allocation2 + $0x2b8] sm:$0xff] %v1837_v58  ;;  %2031 = vst [vmem:[#allocation2 + $0x2c8] sm:$0xff] %v1839_v59  ;;  %v608_v59 = vld [vmem:[#allocation2 + $0x360] sm:$0xff] }
 0x29e   : > { %2030 = vst [vmem:[#allocation2 + $0x2c0] sm:$0xff] %v1838_v62  ;;  %v1162_v2 = vpop.f32.mrb[60].mxu0  ;;  %v1581_v3 = vpop.f32.mrb[60].mxu1 }
 0x29f   : > { %v1840_v4 = vadd.f32 %v1162_v2, %v590_v63  ;;  %v1842_v6 = vadd.f32 %v1581_v3, %v592_v0  ;;  %v1164_v7 = vpop.f32.mrb[61].mxu0  ;;  %v1583_v8 = vpop.f32.mrb[61].mxu1 }
 0x2a0   : > { %v1841_v9 = vadd.f32 %v1164_v7, %v591_v1  ;;  %v613_v7 = vld [vmem:[#allocation2 + $0x388] sm:$0xff]  ;;  %v612_v8 = vld [vmem:[#allocation2 + $0x380] sm:$0xff] }
 0x2a1   : > { %2032 = vst [vmem:[#allocation2 + $0x2d0] sm:$0xff] %v1840_v4  ;;  %2034 = vst [vmem:[#allocation2 + $0x2e0] sm:$0xff] %v1842_v6  ;;  %v611_v6 = vld [vmem:[#allocation2 + $0x378] sm:$0xff] }
 0x2a2   : > { %2033 = vst [vmem:[#allocation2 + $0x2d8] sm:$0xff] %v1841_v9  ;;  %v1168_v13 = vpop.f32.mrb[62].mxu0  ;;  %v1586_v14 = vpop.f32.mrb[62].mxu1 }
 0x2a3   : > { %v1843_v15 = vadd.f32 %v1168_v13, %v593_v10  ;;  %v1845_v16 = vadd.f32 %v1586_v14, %v595_v11  ;;  %v1170_v17 = vpop.f32.mrb[63].mxu0  ;;  %v1588_v18 = vpop.f32.mrb[63].mxu1 }
 0x2a4   : > { %v1844_v19 = vadd.f32 %v1170_v17, %v594_v12  ;;  %v616_v17 = vld [vmem:[#allocation2 + $0x3a0] sm:$0xff]  ;;  %v615_v18 = vld [vmem:[#allocation2 + $0x398] sm:$0xff] }
 0x2a5   : > { %2035 = vst [vmem:[#allocation2 + $0x2e8] sm:$0xff] %v1843_v15  ;;  %2037 = vst [vmem:[#allocation2 + $0x2f8] sm:$0xff] %v1845_v16  ;;  %v614_v16 = vld [vmem:[#allocation2 + $0x390] sm:$0xff] }
 0x2a6   : > { %2036 = vst [vmem:[#allocation2 + $0x2f0] sm:$0xff] %v1844_v19  ;;  %v1174_v23 = vpop.f32.mrb[64].mxu0  ;;  %v1591_v24 = vpop.f32.mrb[64].mxu1 }
 0x2a7   : > { %v1846_v5 = vadd.f32 %v1174_v23, %v596_v20  ;;  %v1848_v25 = vadd.f32 %v1591_v24, %v598_v21  ;;  %v1176_v26 = vpop.f32.mrb[65].mxu0  ;;  %v1593_v27 = vpop.f32.mrb[65].mxu1 }
 0x2a8   : > { %v1847_v28 = vadd.f32 %v1176_v26, %v597_v22  ;;  %v619_v26 = vld [vmem:[#allocation2 + $0x3b8] sm:$0xff]  ;;  %v618_v27 = vld [vmem:[#allocation2 + $0x3b0] sm:$0xff] }
 0x2a9   : > { %2038 = vst [vmem:[#allocation2 + $0x300] sm:$0xff] %v1846_v5  ;;  %2040 = vst [vmem:[#allocation2 + $0x310] sm:$0xff] %v1848_v25  ;;  %v617_v25 = vld [vmem:[#allocation2 + $0x3a8] sm:$0xff] }
 0x2aa   : > { %2039 = vst [vmem:[#allocation2 + $0x308] sm:$0xff] %v1847_v28  ;;  %v1180_v32 = vpop.f32.mrb[66].mxu0  ;;  %v1596_v33 = vpop.f32.mrb[66].mxu1 }
 0x2ab   : > { %v1849_v34 = vadd.f32 %v1180_v32, %v599_v29  ;;  %v1851_v35 = vadd.f32 %v1596_v33, %v601_v30  ;;  %v1182_v36 = vpop.f32.mrb[67].mxu0  ;;  %v1598_v37 = vpop.f32.mrb[67].mxu1 }
 0x2ac   : > { %v1850_v38 = vadd.f32 %v1182_v36, %v600_v31  ;;  %v622_v36 = vld [vmem:[#allocation2 + $0x3d0] sm:$0xff]  ;;  %v621_v37 = vld [vmem:[#allocation2 + $0x3c8] sm:$0xff] }
 0x2ad   : > { %2041 = vst [vmem:[#allocation2 + $0x318] sm:$0xff] %v1849_v34  ;;  %2043 = vst [vmem:[#allocation2 + $0x328] sm:$0xff] %v1851_v35  ;;  %v620_v35 = vld [vmem:[#allocation2 + $0x3c0] sm:$0xff] }
 0x2ae   : > { %2042 = vst [vmem:[#allocation2 + $0x320] sm:$0xff] %v1850_v38  ;;  %v1186_v42 = vpop.f32.mrb[68].mxu0  ;;  %v1601_v43 = vpop.f32.mrb[68].mxu1 }
 0x2af   : > { %v1852_v44 = vadd.f32 %v1186_v42, %v602_v39  ;;  %v1854_v45 = vadd.f32 %v1601_v43, %v604_v40  ;;  %v1188_v46 = vpop.f32.mrb[69].mxu0  ;;  %v1603_v47 = vpop.f32.mrb[69].mxu1 }
 0x2b0   : > { %v1853_v48 = vadd.f32 %v1188_v46, %v603_v41  ;;  %v625_v46 = vld [vmem:[#allocation2 + $0x3e8] sm:$0xff]  ;;  %v624_v47 = vld [vmem:[#allocation2 + $0x3e0] sm:$0xff] }
 0x2b1   : > { %2044 = vst [vmem:[#allocation2 + $0x330] sm:$0xff] %v1852_v44  ;;  %2046 = vst [vmem:[#allocation2 + $0x340] sm:$0xff] %v1854_v45  ;;  %v623_v45 = vld [vmem:[#allocation2 + $0x3d8] sm:$0xff] }
 0x2b2   : > { %2045 = vst [vmem:[#allocation2 + $0x338] sm:$0xff] %v1853_v48  ;;  %v1192_v52 = vpop.f32.mrb[70].mxu0  ;;  %v1606_v53 = vpop.f32.mrb[70].mxu1 }
 0x2b3   : > { %v1855_v54 = vadd.f32 %v1192_v52, %v605_v49  ;;  %v1857_v55 = vadd.f32 %v1606_v53, %v607_v50  ;;  %v1194_v56 = vpop.f32.mrb[71].mxu0  ;;  %v1608_v57 = vpop.f32.mrb[71].mxu1 }
 0x2b4   : > { %v1856_v58 = vadd.f32 %v1194_v56, %v606_v51  ;;  %v628_v56 = vld [vmem:[#allocation2 + $0x400] sm:$0xff]  ;;  %v627_v57 = vld [vmem:[#allocation2 + $0x3f8] sm:$0xff] }
 0x2b5   : > { %2047 = vst [vmem:[#allocation2 + $0x348] sm:$0xff] %v1855_v54  ;;  %2049 = vst [vmem:[#allocation2 + $0x358] sm:$0xff] %v1857_v55  ;;  %v626_v55 = vld [vmem:[#allocation2 + $0x3f0] sm:$0xff] }
 0x2b6   : > { %2048 = vst [vmem:[#allocation2 + $0x350] sm:$0xff] %v1856_v58  ;;  %v1198_v62 = vpop.f32.mrb[72].mxu0  ;;  %v1611_v63 = vpop.f32.mrb[72].mxu1 }
 0x2b7   : > { %v1858_v0 = vadd.f32 %v1198_v62, %v608_v59  ;;  %v1860_v1 = vadd.f32 %v1611_v63, %v610_v60  ;;  %v1200_v2 = vpop.f32.mrb[73].mxu0  ;;  %v1613_v3 = vpop.f32.mrb[73].mxu1 }
 0x2b8   : > { %v1859_v4 = vadd.f32 %v1200_v2, %v609_v61  ;;  %v631_v2 = vld [vmem:[#allocation2 + $0x418] sm:$0xff]  ;;  %v630_v3 = vld [vmem:[#allocation2 + $0x410] sm:$0xff] }
 0x2b9   : > { %2050 = vst [vmem:[#allocation2 + $0x360] sm:$0xff] %v1858_v0  ;;  %2052 = vst [vmem:[#allocation2 + $0x370] sm:$0xff] %v1860_v1  ;;  %v629_v1 = vld [vmem:[#allocation2 + $0x408] sm:$0xff] }
 0x2ba   : > { %2051 = vst [vmem:[#allocation2 + $0x368] sm:$0xff] %v1859_v4  ;;  %v1204_v9 = vpop.f32.mrb[74].mxu0  ;;  %v1616_v10 = vpop.f32.mrb[74].mxu1 }
 0x2bb   : > { %v1861_v11 = vadd.f32 %v1204_v9, %v611_v6  ;;  %v1863_v12 = vadd.f32 %v1616_v10, %v613_v7  ;;  %v1206_v13 = vpop.f32.mrb[75].mxu0  ;;  %v1618_v14 = vpop.f32.mrb[75].mxu1 }
 0x2bc   : > { %v1862_v15 = vadd.f32 %v1206_v13, %v612_v8  ;;  %v634_v13 = vld [vmem:[#allocation2 + $0x430] sm:$0xff]  ;;  %v633_v14 = vld [vmem:[#allocation2 + $0x428] sm:$0xff] }
 0x2bd   : > { %2053 = vst [vmem:[#allocation2 + $0x378] sm:$0xff] %v1861_v11  ;;  %2055 = vst [vmem:[#allocation2 + $0x388] sm:$0xff] %v1863_v12  ;;  %v632_v12 = vld [vmem:[#allocation2 + $0x420] sm:$0xff] }
 0x2be   : > { %2054 = vst [vmem:[#allocation2 + $0x380] sm:$0xff] %v1862_v15  ;;  %v1210_v19 = vpop.f32.mrb[76].mxu0  ;;  %v1621_v20 = vpop.f32.mrb[76].mxu1 }
 0x2bf   : > { %v1864_v21 = vadd.f32 %v1210_v19, %v614_v16  ;;  %v1866_v22 = vadd.f32 %v1621_v20, %v616_v17  ;;  %v1212_v23 = vpop.f32.mrb[77].mxu0  ;;  %v1623_v24 = vpop.f32.mrb[77].mxu1 }
 0x2c0   : > { %v1865_v5 = vadd.f32 %v1212_v23, %v615_v18  ;;  %v637_v23 = vld [vmem:[#allocation2 + $0x448] sm:$0xff]  ;;  %v636_v24 = vld [vmem:[#allocation2 + $0x440] sm:$0xff] }
 0x2c1   : > { %2056 = vst [vmem:[#allocation2 + $0x390] sm:$0xff] %v1864_v21  ;;  %2058 = vst [vmem:[#allocation2 + $0x3a0] sm:$0xff] %v1866_v22  ;;  %v635_v22 = vld [vmem:[#allocation2 + $0x438] sm:$0xff] }
 0x2c2   : > { %2057 = vst [vmem:[#allocation2 + $0x398] sm:$0xff] %v1865_v5  ;;  %v1216_v28 = vpop.f32.mrb[78].mxu0  ;;  %v1626_v29 = vpop.f32.mrb[78].mxu1 }
 0x2c3   : > { %v1867_v30 = vadd.f32 %v1216_v28, %v617_v25  ;;  %v1869_v31 = vadd.f32 %v1626_v29, %v619_v26  ;;  %v1218_v32 = vpop.f32.mrb[79].mxu0  ;;  %v1628_v33 = vpop.f32.mrb[79].mxu1 }
 0x2c4   : > { %v1868_v34 = vadd.f32 %v1218_v32, %v618_v27  ;;  %v640_v32 = vld [vmem:[#allocation2 + $0x460] sm:$0xff]  ;;  %v639_v33 = vld [vmem:[#allocation2 + $0x458] sm:$0xff] }
 0x2c5   : > { %2059 = vst [vmem:[#allocation2 + $0x3a8] sm:$0xff] %v1867_v30  ;;  %2061 = vst [vmem:[#allocation2 + $0x3b8] sm:$0xff] %v1869_v31  ;;  %v638_v31 = vld [vmem:[#allocation2 + $0x450] sm:$0xff] }
 0x2c6   : > { %2060 = vst [vmem:[#allocation2 + $0x3b0] sm:$0xff] %v1868_v34  ;;  %v1222_v38 = vpop.f32.mrb[80].mxu0  ;;  %v1631_v39 = vpop.f32.mrb[80].mxu1 }
 0x2c7   : > { %v1870_v40 = vadd.f32 %v1222_v38, %v620_v35  ;;  %v1872_v41 = vadd.f32 %v1631_v39, %v622_v36  ;;  %v1224_v42 = vpop.f32.mrb[81].mxu0  ;;  %v1633_v43 = vpop.f32.mrb[81].mxu1 }
 0x2c8   : > { %v1871_v44 = vadd.f32 %v1224_v42, %v621_v37  ;;  %v643_v42 = vld [vmem:[#allocation2 + $0x478] sm:$0xff]  ;;  %v642_v43 = vld [vmem:[#allocation2 + $0x470] sm:$0xff] }
 0x2c9   : > { %2062 = vst [vmem:[#allocation2 + $0x3c0] sm:$0xff] %v1870_v40  ;;  %2064 = vst [vmem:[#allocation2 + $0x3d0] sm:$0xff] %v1872_v41  ;;  %v641_v41 = vld [vmem:[#allocation2 + $0x468] sm:$0xff] }
 0x2ca   : > { %2063 = vst [vmem:[#allocation2 + $0x3c8] sm:$0xff] %v1871_v44  ;;  %v1228_v48 = vpop.f32.mrb[82].mxu0  ;;  %v1636_v49 = vpop.f32.mrb[82].mxu1 }
 0x2cb   : > { %v1873_v50 = vadd.f32 %v1228_v48, %v623_v45  ;;  %v1875_v51 = vadd.f32 %v1636_v49, %v625_v46  ;;  %v1230_v52 = vpop.f32.mrb[83].mxu0  ;;  %v1638_v53 = vpop.f32.mrb[83].mxu1 }
 0x2cc   : > { %v1874_v54 = vadd.f32 %v1230_v52, %v624_v47  ;;  %v646_v52 = vld [vmem:[#allocation2 + $0x490] sm:$0xff]  ;;  %v645_v53 = vld [vmem:[#allocation2 + $0x488] sm:$0xff] }
 0x2cd   : > { %2065 = vst [vmem:[#allocation2 + $0x3d8] sm:$0xff] %v1873_v50  ;;  %2067 = vst [vmem:[#allocation2 + $0x3e8] sm:$0xff] %v1875_v51  ;;  %v644_v51 = vld [vmem:[#allocation2 + $0x480] sm:$0xff] }
 0x2ce   : > { %2066 = vst [vmem:[#allocation2 + $0x3e0] sm:$0xff] %v1874_v54  ;;  %v1234_v58 = vpop.f32.mrb[84].mxu0  ;;  %v1641_v59 = vpop.f32.mrb[84].mxu1 }
 0x2cf   : > { %v1876_v60 = vadd.f32 %v1234_v58, %v626_v55  ;;  %v1878_v61 = vadd.f32 %v1641_v59, %v628_v56  ;;  %v1236_v62 = vpop.f32.mrb[85].mxu0  ;;  %v1643_v63 = vpop.f32.mrb[85].mxu1 }
 0x2d0   : > { %v1877_v0 = vadd.f32 %v1236_v62, %v627_v57  ;;  %v649_v62 = vld [vmem:[#allocation2 + $0x4a8] sm:$0xff]  ;;  %v648_v63 = vld [vmem:[#allocation2 + $0x4a0] sm:$0xff] }
 0x2d1   : > { %2068 = vst [vmem:[#allocation2 + $0x3f0] sm:$0xff] %v1876_v60  ;;  %2070 = vst [vmem:[#allocation2 + $0x400] sm:$0xff] %v1878_v61  ;;  %v647_v61 = vld [vmem:[#allocation2 + $0x498] sm:$0xff] }
 0x2d2   : > { %2069 = vst [vmem:[#allocation2 + $0x3f8] sm:$0xff] %v1877_v0  ;;  %v1240_v4 = vpop.f32.mrb[86].mxu0  ;;  %v1646_v6 = vpop.f32.mrb[86].mxu1 }
 0x2d3   : > { %v1879_v7 = vadd.f32 %v1240_v4, %v629_v1  ;;  %v1881_v8 = vadd.f32 %v1646_v6, %v631_v2  ;;  %v1242_v9 = vpop.f32.mrb[87].mxu0  ;;  %v1648_v10 = vpop.f32.mrb[87].mxu1 }
 0x2d4   : > { %v1880_v11 = vadd.f32 %v1242_v9, %v630_v3  ;;  %v652_v9 = vld [vmem:[#allocation2 + $0x4c0] sm:$0xff]  ;;  %v651_v10 = vld [vmem:[#allocation2 + $0x4b8] sm:$0xff] }
 0x2d5   : > { %2071 = vst [vmem:[#allocation2 + $0x408] sm:$0xff] %v1879_v7  ;;  %2073 = vst [vmem:[#allocation2 + $0x418] sm:$0xff] %v1881_v8  ;;  %v650_v8 = vld [vmem:[#allocation2 + $0x4b0] sm:$0xff] }
 0x2d6   : > { %2072 = vst [vmem:[#allocation2 + $0x410] sm:$0xff] %v1880_v11  ;;  %v1246_v15 = vpop.f32.mrb[88].mxu0  ;;  %v1651_v16 = vpop.f32.mrb[88].mxu1 }
 0x2d7   : > { %v1882_v17 = vadd.f32 %v1246_v15, %v632_v12  ;;  %v1884_v18 = vadd.f32 %v1651_v16, %v634_v13  ;;  %v1248_v19 = vpop.f32.mrb[89].mxu0  ;;  %v1653_v20 = vpop.f32.mrb[89].mxu1 }
 0x2d8   : > { %v1883_v21 = vadd.f32 %v1248_v19, %v633_v14  ;;  %v655_v19 = vld [vmem:[#allocation2 + $0x4d8] sm:$0xff]  ;;  %v654_v20 = vld [vmem:[#allocation2 + $0x4d0] sm:$0xff] }
 0x2d9   : > { %2074 = vst [vmem:[#allocation2 + $0x420] sm:$0xff] %v1882_v17  ;;  %2076 = vst [vmem:[#allocation2 + $0x430] sm:$0xff] %v1884_v18  ;;  %v653_v18 = vld [vmem:[#allocation2 + $0x4c8] sm:$0xff] }
 0x2da   : > { %2075 = vst [vmem:[#allocation2 + $0x428] sm:$0xff] %v1883_v21  ;;  %v1252_v5 = vpop.f32.mrb[90].mxu0  ;;  %v1656_v25 = vpop.f32.mrb[90].mxu1 }
 0x2db   : > { %v1885_v26 = vadd.f32 %v1252_v5, %v635_v22  ;;  %v1887_v27 = vadd.f32 %v1656_v25, %v637_v23  ;;  %v1254_v28 = vpop.f32.mrb[91].mxu0  ;;  %v1658_v29 = vpop.f32.mrb[91].mxu1 }
 0x2dc   : > { %v1886_v30 = vadd.f32 %v1254_v28, %v636_v24  ;;  %v658_v28 = vld [vmem:[#allocation2 + $0x4f0] sm:$0xff]  ;;  %v657_v29 = vld [vmem:[#allocation2 + $0x4e8] sm:$0xff] }
 0x2dd   : > { %2077 = vst [vmem:[#allocation2 + $0x438] sm:$0xff] %v1885_v26  ;;  %2079 = vst [vmem:[#allocation2 + $0x448] sm:$0xff] %v1887_v27  ;;  %v656_v27 = vld [vmem:[#allocation2 + $0x4e0] sm:$0xff] }
 0x2de   : > { %2078 = vst [vmem:[#allocation2 + $0x440] sm:$0xff] %v1886_v30  ;;  %v1258_v34 = vpop.f32.mrb[92].mxu0  ;;  %v1661_v35 = vpop.f32.mrb[92].mxu1 }
 0x2df   : > { %v1888_v36 = vadd.f32 %v1258_v34, %v638_v31  ;;  %v1890_v37 = vadd.f32 %v1661_v35, %v640_v32  ;;  %v1260_v38 = vpop.f32.mrb[93].mxu0  ;;  %v1663_v39 = vpop.f32.mrb[93].mxu1 }
 0x2e0   : > { %v1889_v40 = vadd.f32 %v1260_v38, %v639_v33  ;;  %v661_v38 = vld [vmem:[#allocation2 + $0x508] sm:$0xff]  ;;  %v660_v39 = vld [vmem:[#allocation2 + $0x500] sm:$0xff] }
 0x2e1   : > { %2080 = vst [vmem:[#allocation2 + $0x450] sm:$0xff] %v1888_v36  ;;  %2082 = vst [vmem:[#allocation2 + $0x460] sm:$0xff] %v1890_v37  ;;  %v659_v37 = vld [vmem:[#allocation2 + $0x4f8] sm:$0xff] }
 0x2e2   : > { %2081 = vst [vmem:[#allocation2 + $0x458] sm:$0xff] %v1889_v40  ;;  %v1264_v44 = vpop.f32.mrb[94].mxu0  ;;  %v1666_v45 = vpop.f32.mrb[94].mxu1 }
 0x2e3   : > { %v1891_v46 = vadd.f32 %v1264_v44, %v641_v41  ;;  %v1893_v47 = vadd.f32 %v1666_v45, %v643_v42  ;;  %v1266_v48 = vpop.f32.mrb[95].mxu0  ;;  %v1668_v49 = vpop.f32.mrb[95].mxu1 }
 0x2e4   : > { %v1892_v50 = vadd.f32 %v1266_v48, %v642_v43  ;;  %v664_v48 = vld [vmem:[#allocation2 + $0x520] sm:$0xff]  ;;  %v663_v49 = vld [vmem:[#allocation2 + $0x518] sm:$0xff] }
 0x2e5   : > { %2083 = vst [vmem:[#allocation2 + $0x468] sm:$0xff] %v1891_v46  ;;  %2085 = vst [vmem:[#allocation2 + $0x478] sm:$0xff] %v1893_v47  ;;  %v662_v47 = vld [vmem:[#allocation2 + $0x510] sm:$0xff] }
 0x2e6   : > { %2084 = vst [vmem:[#allocation2 + $0x470] sm:$0xff] %v1892_v50  ;;  %v1270_v54 = vpop.f32.mrb[96].mxu0  ;;  %v1671_v55 = vpop.f32.mrb[96].mxu1 }
 0x2e7   : > { %v1894_v56 = vadd.f32 %v1270_v54, %v644_v51  ;;  %v1896_v57 = vadd.f32 %v1671_v55, %v646_v52  ;;  %v1272_v58 = vpop.f32.mrb[97].mxu0  ;;  %v1673_v59 = vpop.f32.mrb[97].mxu1 }
 0x2e8   : > { %v1895_v60 = vadd.f32 %v1272_v58, %v645_v53  ;;  %v667_v58 = vld [vmem:[#allocation2 + $0x538] sm:$0xff]  ;;  %v666_v59 = vld [vmem:[#allocation2 + $0x530] sm:$0xff] }
 0x2e9   : > { %2086 = vst [vmem:[#allocation2 + $0x480] sm:$0xff] %v1894_v56  ;;  %2088 = vst [vmem:[#allocation2 + $0x490] sm:$0xff] %v1896_v57  ;;  %v665_v57 = vld [vmem:[#allocation2 + $0x528] sm:$0xff] }
 0x2ea   : > { %2087 = vst [vmem:[#allocation2 + $0x488] sm:$0xff] %v1895_v60  ;;  %v1276_v0 = vpop.f32.mrb[98].mxu0  ;;  %v1676_v1 = vpop.f32.mrb[98].mxu1 }
 0x2eb   : > { %v1897_v2 = vadd.f32 %v1276_v0, %v647_v61  ;;  %v1899_v3 = vadd.f32 %v1676_v1, %v649_v62  ;;  %v1278_v4 = vpop.f32.mrb[99].mxu0  ;;  %v1678_v6 = vpop.f32.mrb[99].mxu1 }
 0x2ec   : > { %v1898_v7 = vadd.f32 %v1278_v4, %v648_v63  ;;  %v670_v4 = vld [vmem:[#allocation2 + $0x550] sm:$0xff]  ;;  %v669_v6 = vld [vmem:[#allocation2 + $0x548] sm:$0xff] }
 0x2ed   : > { %2089 = vst [vmem:[#allocation2 + $0x498] sm:$0xff] %v1897_v2  ;;  %2091 = vst [vmem:[#allocation2 + $0x4a8] sm:$0xff] %v1899_v3  ;;  %v668_v3 = vld [vmem:[#allocation2 + $0x540] sm:$0xff] }
 0x2ee   : > { %2090 = vst [vmem:[#allocation2 + $0x4a0] sm:$0xff] %v1898_v7  ;;  %v1282_v11 = vpop.f32.mrb[100].mxu0  ;;  %v1681_v12 = vpop.f32.mrb[100].mxu1 }
 0x2ef   : > { %v1900_v13 = vadd.f32 %v1282_v11, %v650_v8  ;;  %v1902_v14 = vadd.f32 %v1681_v12, %v652_v9  ;;  %v1284_v15 = vpop.f32.mrb[101].mxu0  ;;  %v1683_v16 = vpop.f32.mrb[101].mxu1 }
 0x2f0   : > { %v1901_v17 = vadd.f32 %v1284_v15, %v651_v10  ;;  %v673_v15 = vld [vmem:[#allocation2 + $0x568] sm:$0xff]  ;;  %v672_v16 = vld [vmem:[#allocation2 + $0x560] sm:$0xff] }
 0x2f1   : > { %2092 = vst [vmem:[#allocation2 + $0x4b0] sm:$0xff] %v1900_v13  ;;  %2094 = vst [vmem:[#allocation2 + $0x4c0] sm:$0xff] %v1902_v14  ;;  %v671_v14 = vld [vmem:[#allocation2 + $0x558] sm:$0xff] }
 0x2f2   : > { %2093 = vst [vmem:[#allocation2 + $0x4b8] sm:$0xff] %v1901_v17  ;;  %v1288_v21 = vpop.f32.mrb[102].mxu0  ;;  %v1686_v22 = vpop.f32.mrb[102].mxu1 }
 0x2f3   : > { %v1903_v23 = vadd.f32 %v1288_v21, %v653_v18  ;;  %v1905_v24 = vadd.f32 %v1686_v22, %v655_v19  ;;  %v1290_v5 = vpop.f32.mrb[103].mxu0  ;;  %v1688_v25 = vpop.f32.mrb[103].mxu1 }
 0x2f4   : > { %v1904_v26 = vadd.f32 %v1290_v5, %v654_v20  ;;  %v676_v5 = vld [vmem:[#allocation2 + $0x580] sm:$0xff]  ;;  %v675_v25 = vld [vmem:[#allocation2 + $0x578] sm:$0xff] }
 0x2f5   : > { %2095 = vst [vmem:[#allocation2 + $0x4c8] sm:$0xff] %v1903_v23  ;;  %2097 = vst [vmem:[#allocation2 + $0x4d8] sm:$0xff] %v1905_v24  ;;  %v674_v24 = vld [vmem:[#allocation2 + $0x570] sm:$0xff] }
 0x2f6   : > { %2096 = vst [vmem:[#allocation2 + $0x4d0] sm:$0xff] %v1904_v26  ;;  %v1294_v30 = vpop.f32.mrb[104].mxu0  ;;  %v1691_v31 = vpop.f32.mrb[104].mxu1 }
 0x2f7   : > { %v1906_v32 = vadd.f32 %v1294_v30, %v656_v27  ;;  %v1908_v33 = vadd.f32 %v1691_v31, %v658_v28  ;;  %v1296_v34 = vpop.f32.mrb[105].mxu0  ;;  %v1693_v35 = vpop.f32.mrb[105].mxu1 }
 0x2f8   : > { %v1907_v36 = vadd.f32 %v1296_v34, %v657_v29  ;;  %v679_v34 = vld [vmem:[#allocation2 + $0x598] sm:$0xff]  ;;  %v678_v35 = vld [vmem:[#allocation2 + $0x590] sm:$0xff] }
 0x2f9   : > { %2098 = vst [vmem:[#allocation2 + $0x4e0] sm:$0xff] %v1906_v32  ;;  %2100 = vst [vmem:[#allocation2 + $0x4f0] sm:$0xff] %v1908_v33  ;;  %v677_v33 = vld [vmem:[#allocation2 + $0x588] sm:$0xff] }
 0x2fa   : > { %2099 = vst [vmem:[#allocation2 + $0x4e8] sm:$0xff] %v1907_v36  ;;  %v1300_v40 = vpop.f32.mrb[106].mxu0  ;;  %v1696_v41 = vpop.f32.mrb[106].mxu1 }
 0x2fb   : > { %v1909_v42 = vadd.f32 %v1300_v40, %v659_v37  ;;  %v1911_v43 = vadd.f32 %v1696_v41, %v661_v38  ;;  %v1302_v44 = vpop.f32.mrb[107].mxu0  ;;  %v1698_v45 = vpop.f32.mrb[107].mxu1 }
 0x2fc   : > { %v1910_v46 = vadd.f32 %v1302_v44, %v660_v39  ;;  %v682_v44 = vld [vmem:[#allocation2 + $0x5b0] sm:$0xff]  ;;  %v681_v45 = vld [vmem:[#allocation2 + $0x5a8] sm:$0xff] }
 0x2fd   : > { %2101 = vst [vmem:[#allocation2 + $0x4f8] sm:$0xff] %v1909_v42  ;;  %2103 = vst [vmem:[#allocation2 + $0x508] sm:$0xff] %v1911_v43  ;;  %v680_v43 = vld [vmem:[#allocation2 + $0x5a0] sm:$0xff] }
 0x2fe   : > { %2102 = vst [vmem:[#allocation2 + $0x500] sm:$0xff] %v1910_v46  ;;  %v1306_v50 = vpop.f32.mrb[108].mxu0  ;;  %v1701_v51 = vpop.f32.mrb[108].mxu1 }
 0x2ff   : > { %v1912_v52 = vadd.f32 %v1306_v50, %v662_v47  ;;  %v1914_v53 = vadd.f32 %v1701_v51, %v664_v48  ;;  %v1308_v54 = vpop.f32.mrb[109].mxu0  ;;  %v1703_v55 = vpop.f32.mrb[109].mxu1 }
 0x300   : > { %v1913_v56 = vadd.f32 %v1308_v54, %v663_v49  ;;  %v685_v54 = vld [vmem:[#allocation2 + $0x5c8] sm:$0xff]  ;;  %v684_v55 = vld [vmem:[#allocation2 + $0x5c0] sm:$0xff] }
 0x301   : > { %2104 = vst [vmem:[#allocation2 + $0x510] sm:$0xff] %v1912_v52  ;;  %2106 = vst [vmem:[#allocation2 + $0x520] sm:$0xff] %v1914_v53  ;;  %v683_v53 = vld [vmem:[#allocation2 + $0x5b8] sm:$0xff] }
 0x302   : > { %2105 = vst [vmem:[#allocation2 + $0x518] sm:$0xff] %v1913_v56  ;;  %v1312_v60 = vpop.f32.mrb[110].mxu0  ;;  %v1706_v61 = vpop.f32.mrb[110].mxu1 }
 0x303   : > { %v1915_v62 = vadd.f32 %v1312_v60, %v665_v57  ;;  %v1917_v63 = vadd.f32 %v1706_v61, %v667_v58  ;;  %v1314_v0 = vpop.f32.mrb[111].mxu0  ;;  %v1708_v1 = vpop.f32.mrb[111].mxu1 }
 0x304   : > { %v1916_v2 = vadd.f32 %v1314_v0, %v666_v59  ;;  %v688_v0 = vld [vmem:[#allocation2 + $0x5e0] sm:$0xff]  ;;  %v687_v1 = vld [vmem:[#allocation2 + $0x5d8] sm:$0xff] }
 0x305   : > { %2107 = vst [vmem:[#allocation2 + $0x528] sm:$0xff] %v1915_v62  ;;  %2109 = vst [vmem:[#allocation2 + $0x538] sm:$0xff] %v1917_v63  ;;  %v686_v63 = vld [vmem:[#allocation2 + $0x5d0] sm:$0xff] }
 0x306   : > { %2108 = vst [vmem:[#allocation2 + $0x530] sm:$0xff] %v1916_v2  ;;  %v1318_v7 = vpop.f32.mrb[112].mxu0  ;;  %v1711_v8 = vpop.f32.mrb[112].mxu1 }
 0x307   : > { %v1918_v9 = vadd.f32 %v1318_v7, %v668_v3  ;;  %v1920_v10 = vadd.f32 %v1711_v8, %v670_v4  ;;  %v1320_v11 = vpop.f32.mrb[113].mxu0  ;;  %v1713_v12 = vpop.f32.mrb[113].mxu1 }
 0x308   : > { %v1919_v13 = vadd.f32 %v1320_v11, %v669_v6  ;;  %v691_v11 = vld [vmem:[#allocation2 + $0x5f8] sm:$0xff]  ;;  %v690_v12 = vld [vmem:[#allocation2 + $0x5f0] sm:$0xff] }
 0x309   : > { %2110 = vst [vmem:[#allocation2 + $0x540] sm:$0xff] %v1918_v9  ;;  %2112 = vst [vmem:[#allocation2 + $0x550] sm:$0xff] %v1920_v10  ;;  %v689_v10 = vld [vmem:[#allocation2 + $0x5e8] sm:$0xff] }
 0x30a   : > { %2111 = vst [vmem:[#allocation2 + $0x548] sm:$0xff] %v1919_v13  ;;  %v1324_v17 = vpop.f32.mrb[114].mxu0  ;;  %v1716_v18 = vpop.f32.mrb[114].mxu1 }
 0x30b   : > { %v1921_v19 = vadd.f32 %v1324_v17, %v671_v14  ;;  %v1923_v20 = vadd.f32 %v1716_v18, %v673_v15  ;;  %v1326_v21 = vpop.f32.mrb[115].mxu0  ;;  %v1718_v22 = vpop.f32.mrb[115].mxu1 }
 0x30c   : > { %v1922_v23 = vadd.f32 %v1326_v21, %v672_v16  ;;  %v2330_v21 = vld [vmem:[#allocation8] sm:$0x7] (!%p2907_p5) }
 0x30d   : > { %2113 = vst [vmem:[#allocation2 + $0x558] sm:$0xff] %v1921_v19  ;;  %2115 = vst [vmem:[#allocation2 + $0x568] sm:$0xff] %v1923_v20  ;;  %v2332_v20 = vlaneseq (!%p2907_p5) }
 0x30e   : > { %2114 = vst [vmem:[#allocation2 + $0x560] sm:$0xff] %v1922_v23  ;;  %v1330_v26 = vpop.f32.mrb[116].mxu0  ;;  %v1721_v27 = vpop.f32.mrb[116].mxu1  ;;  %v2138_v23 = vld [vmem:[#allocation2] sm:$0xff] (!%p2907_p5) }
 0x30f   : > { %v1924_v28 = vadd.f32 %v1330_v26, %v674_v24  ;;  %v1926_v29 = vadd.f32 %v1721_v27, %v676_v5  ;;  %v1332_v30 = vpop.f32.mrb[117].mxu0  ;;  %v1723_v31 = vpop.f32.mrb[117].mxu1  ;;  %v2333_v22 = vshrl.u32 (!%p2907_p5), %v2332_v20, 7  ;;  %v2139_v24 = vld [vmem:[#allocation2 + $0x8] sm:$0xff] (!%p2907_p5)  ;;  %v2140_v5 = vld [vmem:[#allocation2 + $0x10] sm:$0xff] (!%p2907_p5)  ;;  %v2173_v20 = vld [vmem:[#allocation2 + $0x118] sm:$0xff] (!%p2907_p5) }
 0x310   : > { %v1925_v32 = vadd.f32 %v1332_v30, %v675_v25  ;;  %v2141_v25 = vld [vmem:[#allocation2 + $0x18] sm:$0xff] (!%p2907_p5)  ;;  %v2143_v30 = vld [vmem:[#allocation2 + $0x28] sm:$0xff] (!%p2907_p5)  ;;  %v2144_v31 = vld [vmem:[#allocation2 + $0x30] sm:$0xff] (!%p2907_p5) }
 0x311   : > { %2116 = vst [vmem:[#allocation2 + $0x570] sm:$0xff] %v1924_v28  ;;  %2118 = vst [vmem:[#allocation2 + $0x580] sm:$0xff] %v1926_v29  ;;  %v2334_v26 = vsub.s32 (!%p2907_p5), 0, %v2333_v22  ;;  %v2338_v27 = vsub.s32 (!%p2907_p5), 1, %v2333_v22  ;;  %v2342_v28 = vsub.s32 (!%p2907_p5), 2, %v2333_v22  ;;  %v2142_v29 = vld [vmem:[#allocation2 + $0x20] sm:$0xff] (!%p2907_p5) }
 0x312   : > { %2117 = vst [vmem:[#allocation2 + $0x578] sm:$0xff] %v1925_v32  ;;  %v1336_v36 = vpop.f32.mrb[118].mxu0  ;;  %v1726_v37 = vpop.f32.mrb[118].mxu1  ;;  %v2145_v32 = vld [vmem:[#allocation2 + $0x38] sm:$0xff] (!%p2907_p5)  ;;  %v2175_v22 = vld [vmem:[#allocation2 + $0x128] sm:$0xff] (!%p2907_p5) }
 0x313   : > { %v1927_v38 = vadd.f32 %v1336_v36, %v677_v33  ;;  %v1929_v39 = vadd.f32 %v1726_v37, %v679_v34  ;;  %v1338_v40 = vpop.f32.mrb[119].mxu0  ;;  %v1728_v41 = vpop.f32.mrb[119].mxu1  ;;  %v2146_v33 = vld [vmem:[#allocation2 + $0x40] sm:$0xff] (!%p2907_p5)  ;;  %v2147_v34 = vld [vmem:[#allocation2 + $0x48] sm:$0xff] (!%p2907_p5)  ;;  %v2149_v36 = vld [vmem:[#allocation2 + $0x58] sm:$0xff] (!%p2907_p5)  ;;  %v4163_v37 = vrot.slane (!%p2907_p5), %v2330_v21, %v2334_v26 }
 0x314   : > { %v1928_v42 = vadd.f32 %v1338_v40, %v678_v35  ;;  %v2148_v35 = vld [vmem:[#allocation2 + $0x50] sm:$0xff] (!%p2907_p5)  ;;  %v2150_v40 = vld [vmem:[#allocation2 + $0x60] sm:$0xff] (!%p2907_p5)  ;;  %v2151_v41 = vld [vmem:[#allocation2 + $0x68] sm:$0xff] (!%p2907_p5) }
 0x315   : > { %2119 = vst [vmem:[#allocation2 + $0x588] sm:$0xff] %v1927_v38  ;;  %2121 = vst [vmem:[#allocation2 + $0x598] sm:$0xff] %v1929_v39  ;;  %v4165_v38 = vrot.slane (!%p2907_p5), %v2330_v21, %v2338_v27  ;;  %v4167_v39 = vrot.slane (!%p2907_p5), %v2330_v21, %v2342_v28  ;;  %v2174_v21 = vld [vmem:[#allocation2 + $0x120] sm:$0xff] (!%p2907_p5)  ;;  %v2176_v26 = vld [vmem:[#allocation2 + $0x130] sm:$0xff] (!%p2907_p5) }
 0x316   : > { %2120 = vst [vmem:[#allocation2 + $0x590] sm:$0xff] %v1928_v42  ;;  %v1342_v46 = vpop.f32.mrb[120].mxu0  ;;  %v1731_v47 = vpop.f32.mrb[120].mxu1  ;;  %v2152_v42 = vld [vmem:[#allocation2 + $0x70] sm:$0xff] (!%p2907_p5)  ;;  %v2177_v27 = vld [vmem:[#allocation2 + $0x138] sm:$0xff] (!%p2907_p5)  ;;  %v2178_v28 = vld [vmem:[#allocation2 + $0x140] sm:$0xff] (!%p2907_p5) }
 0x317   : > { %v1930_v48 = vadd.f32 %v1342_v46, %v680_v43  ;;  %v1932_v49 = vadd.f32 %v1731_v47, %v682_v44  ;;  %v1344_v50 = vpop.f32.mrb[121].mxu0  ;;  %v1733_v51 = vpop.f32.mrb[121].mxu1  ;;  %v2153_v43 = vld [vmem:[#allocation2 + $0x78] sm:$0xff] (!%p2907_p5)  ;;  %v2154_v44 = vld [vmem:[#allocation2 + $0x80] sm:$0xff] (!%p2907_p5)  ;;  %v2156_v46 = vld [vmem:[#allocation2 + $0x90] sm:$0xff] (!%p2907_p5) }
 0x318   : > { %v1931_v52 = vadd.f32 %v1344_v50, %v681_v45  ;;  %v2155_v45 = vld [vmem:[#allocation2 + $0x88] sm:$0xff] (!%p2907_p5)  ;;  %v2157_v47 = vld [vmem:[#allocation2 + $0x98] sm:$0xff] (!%p2907_p5)  ;;  %v2349_v50 = vadd.f32 (!%p2907_p5), %v4167_v39, %v2140_v5  ;;  %v2350_v51 = vadd.f32 (!%p2907_p5), %v4163_v37, %v2141_v25 }
 0x319   : > { %2122 = vst [vmem:[#allocation2 + $0x5a0] sm:$0xff] %v1930_v48  ;;  %2124 = vst [vmem:[#allocation2 + $0x5b0] sm:$0xff] %v1932_v49  ;;  %v2347_v48 = vadd.f32 (!%p2907_p5), %v4163_v37, %v2138_v23  ;;  %v2348_v49 = vadd.f32 (!%p2907_p5), %v4165_v38, %v2139_v24 }
 0x31a   : > { %2123 = vst [vmem:[#allocation2 + $0x5a8] sm:$0xff] %v1931_v52  ;;  %v1348_v56 = vpop.f32.mrb[122].mxu0  ;;  %v1736_v57 = vpop.f32.mrb[122].mxu1  ;;  %v2158_v52 = vld [vmem:[#allocation2 + $0xa0] sm:$0xff] (!%p2907_p5)  ;;  %2541 = vst [vmem:[%s3727_s14 + $0x10] sm:$0xff] (!%p2907_p5), %v2349_v50  ;;  %v2185_v50 = vld [vmem:[#allocation2 + $0x178] sm:$0xff] (!%p2907_p5) }
 0x31b   : > { %v1933_v58 = vadd.f32 %v1348_v56, %v683_v53  ;;  %v1935_v59 = vadd.f32 %v1736_v57, %v685_v54  ;;  %v1350_v60 = vpop.f32.mrb[123].mxu0  ;;  %v1738_v61 = vpop.f32.mrb[123].mxu1  ;;  %v2159_v53 = vld [vmem:[#allocation2 + $0xa8] sm:$0xff] (!%p2907_p5)  ;;  %v2160_v54 = vld [vmem:[#allocation2 + $0xb0] sm:$0xff] (!%p2907_p5)  ;;  %v2351_v56 = vadd.f32 (!%p2907_p5), %v4165_v38, %v2142_v29  ;;  %v2352_v57 = vadd.f32 (!%p2907_p5), %v4167_v39, %v2143_v30  ;;  %2539 = vst [vmem:[%s3727_s14] sm:$0xff] (!%p2907_p5), %v2347_v48 }
 0x31c   : > { %v1934_v62 = vadd.f32 %v1350_v60, %v684_v55  ;;  %v2161_v55 = vld [vmem:[#allocation2 + $0xb8] sm:$0xff] (!%p2907_p5)  ;;  %v2162_v60 = vld [vmem:[#allocation2 + $0xc0] sm:$0xff] (!%p2907_p5)  ;;  %v2163_v61 = vld [vmem:[#allocation2 + $0xc8] sm:$0xff] (!%p2907_p5)  ;;  %2540 = vst [vmem:[%s3727_s14 + $0x8] sm:$0xff] (!%p2907_p5), %v2348_v49  ;;  %v2367_v23 = vadd.f32 (!%p2907_p5), %v4167_v39, %v2158_v52  ;;  %v2368_v24 = vadd.f32 (!%p2907_p5), %v4163_v37, %v2159_v53  ;;  %v2369_v5 = vadd.f32 (!%p2907_p5), %v4165_v38, %v2160_v54 }
 0x31d   : > { %2125 = vst [vmem:[#allocation2 + $0x5b8] sm:$0xff] %v1933_v58  ;;  %2127 = vst [vmem:[#allocation2 + $0x5c8] sm:$0xff] %v1935_v59  ;;  %v2353_v58 = vadd.f32 (!%p2907_p5), %v4163_v37, %v2144_v31  ;;  %v2354_v59 = vadd.f32 (!%p2907_p5), %v4165_v38, %v2145_v32  ;;  %v2370_v25 = vadd.f32 (!%p2907_p5), %v4167_v39, %v2161_v55  ;;  %v2187_v52 = vld [vmem:[#allocation2 + $0x188] sm:$0xff] (!%p2907_p5) }
 0x31e   : > { %2126 = vst [vmem:[#allocation2 + $0x5c0] sm:$0xff] %v1934_v62  ;;  %v1354_v2 = vpop.f32.mrb[124].mxu0  ;;  %v1741_v3 = vpop.f32.mrb[124].mxu1  ;;  %v2164_v62 = vld [vmem:[#allocation2 + $0xd0] sm:$0xff] (!%p2907_p5)  ;;  %2542 = vst [vmem:[%s3727_s14 + $0x18] sm:$0xff] (!%p2907_p5), %v2350_v51  ;;  %v2371_v29 = vadd.f32 (!%p2907_p5), %v4163_v37, %v2162_v60  ;;  %v2372_v30 = vadd.f32 (!%p2907_p5), %v4165_v38, %v2163_v61  ;;  %v2382_v49 = vadd.f32 (!%p2907_p5), %v4167_v39, %v2173_v20  ;;  %v2186_v51 = vld [vmem:[#allocation2 + $0x180] sm:$0xff] (!%p2907_p5) }
 0x31f   : > { %v1936_v4 = vadd.f32 %v1354_v2, %v686_v63  ;;  %v1938_v6 = vadd.f32 %v1741_v3, %v688_v0  ;;  %v1356_v7 = vpop.f32.mrb[125].mxu0  ;;  %v1743_v8 = vpop.f32.mrb[125].mxu1  ;;  %v2165_v63 = vld [vmem:[#allocation2 + $0xd8] sm:$0xff] (!%p2907_p5)  ;;  %v2355_v0 = vadd.f32 (!%p2907_p5), %v4167_v39, %v2146_v33  ;;  %v2357_v2 = vadd.f32 (!%p2907_p5), %v4165_v38, %v2148_v35  ;;  %2543 = vst [vmem:[%s3727_s14 + $0x20] sm:$0xff] (!%p2907_p5), %v2351_v56  ;;  %v2179_v33 = vld [vmem:[#allocation2 + $0x148] sm:$0xff] (!%p2907_p5) }
 0x320   : > { %v1937_v9 = vadd.f32 %v1356_v7, %v687_v1  ;;  %2137 = sbr.rel (%p2907_p5) target bundleno = 897 (0x381), region = 52  ;;  %v2356_v1 = vadd.f32 (!%p2907_p5), %v4163_v37, %v2147_v34  ;;  %v2358_v3 = vadd.f32 (!%p2907_p5), %v4167_v39, %v2149_v36  ;;  %v2168_v7 = vld [vmem:[#allocation2 + $0xf0] sm:$0xff] (!%p2907_p5)  ;;  %v2169_v8 = vld [vmem:[#allocation2 + $0xf8] sm:$0xff] (!%p2907_p5)  ;;  %2544 = vst [vmem:[%s3727_s14 + $0x28] sm:$0xff] (!%p2907_p5), %v2352_v57  ;;  %2545 = vst [vmem:[%s3727_s14 + $0x30] sm:$0xff] (!%p2907_p5), %v2353_v58 }
 0x321   : > { %2128 = vst [vmem:[#allocation2 + $0x5d0] sm:$0xff] %v1936_v4  ;;  %2130 = vst [vmem:[#allocation2 + $0x5e0] sm:$0xff] %v1938_v6  ;;  %v2166_v4 = vld [vmem:[#allocation2 + $0xe0] sm:$0xff] (!%p2907_p5)  ;;  %v2167_v6 = vld [vmem:[#allocation2 + $0xe8] sm:$0xff] (!%p2907_p5)  ;;  %v2373_v31 = vadd.f32 (!%p2907_p5), %v4167_v39, %v2164_v62  ;;  %v2374_v32 = vadd.f32 (!%p2907_p5), %v4163_v37, %v2165_v63  ;;  %v2383_v53 = vadd.f32 (!%p2907_p5), %v4163_v37, %v2174_v21 }
 0x322   : > { %2129 = vst [vmem:[#allocation2 + $0x5d8] sm:$0xff] %v1937_v9  ;;  %v1360_v13 = vpop.f32.mrb[126].mxu0  ;;  %v1746_v14 = vpop.f32.mrb[126].mxu1  ;;  %2546 = vst [vmem:[%s3727_s14 + $0x38] sm:$0xff] (!%p2907_p5), %v2354_v59  ;;  %v2359_v9 = vadd.f32 (!%p2907_p5), %v4163_v37, %v2150_v40  ;;  %v2180_v34 = vld [vmem:[#allocation2 + $0x150] sm:$0xff] (!%p2907_p5)  ;;  %v2181_v35 = vld [vmem:[#allocation2 + $0x158] sm:$0xff] (!%p2907_p5)  ;;  %v2375_v36 = vadd.f32 (!%p2907_p5), %v4165_v38, %v2166_v4  ;;  %v2376_v40 = vadd.f32 (!%p2907_p5), %v4167_v39, %v2167_v6 }
 0x323   : > { %v1939_v15 = vadd.f32 %v1360_v13, %v689_v10  ;;  %v1941_v16 = vadd.f32 %v1746_v14, %v691_v11  ;;  %v1362_v17 = vpop.f32.mrb[127].mxu0  ;;  %v1748_v18 = vpop.f32.mrb[127].mxu1  ;;  %v2360_v10 = vadd.f32 (!%p2907_p5), %v4165_v38, %v2151_v41  ;;  %v2361_v11 = vadd.f32 (!%p2907_p5), %v4167_v39, %v2152_v42  ;;  %v2170_v13 = vld [vmem:[#allocation2 + $0x100] sm:$0xff] (!%p2907_p5)  ;;  %v2171_v14 = vld [vmem:[#allocation2 + $0x108] sm:$0xff] (!%p2907_p5)  ;;  %2547 = vst [vmem:[%s3727_s14 + $0x40] sm:$0xff] (!%p2907_p5), %v2355_v0  ;;  %v2188_v57 = vld [vmem:[#allocation2 + $0x190] sm:$0xff] (!%p2907_p5) }
 0x324   : > { %v1940_v19 = vadd.f32 %v1362_v17, %v690_v12  ;;  %v2362_v12 = vadd.f32 (!%p2907_p5), %v4163_v37, %v2153_v43  ;;  %2548 = vst [vmem:[%s3727_s14 + $0x48] sm:$0xff] (!%p2907_p5), %v2356_v1  ;;  %2549 = vst [vmem:[%s3727_s14 + $0x50] sm:$0xff] (!%p2907_p5), %v2357_v2  ;;  %v2364_v17 = vadd.f32 (!%p2907_p5), %v4167_v39, %v2155_v45  ;;  %v2182_v43 = vld [vmem:[#allocation2 + $0x160] sm:$0xff] (!%p2907_p5)  ;;  %v2184_v45 = vld [vmem:[#allocation2 + $0x170] sm:$0xff] (!%p2907_p5) }
 0x325   : > { %2131 = vst [vmem:[#allocation2 + $0x5e8] sm:$0xff] %v1939_v15  ;;  %2133 = vst [vmem:[#allocation2 + $0x5f8] sm:$0xff] %v1941_v16  ;;  %v2172_v15 = vld [vmem:[#allocation2 + $0x110] sm:$0xff] (!%p2907_p5)  ;;  %v2363_v16 = vadd.f32 (!%p2907_p5), %v4165_v38, %v2154_v44  ;;  %v2365_v18 = vadd.f32 (!%p2907_p5), %v4163_v37, %v2156_v46  ;;  %v2377_v41 = vadd.f32 (!%p2907_p5), %v4163_v37, %v2168_v7  ;;  %v2183_v44 = vld [vmem:[#allocation2 + $0x168] sm:$0xff] (!%p2907_p5) }
 0x326   : > { %2132 = vst [vmem:[#allocation2 + $0x5f0] sm:$0xff] %v1940_v19  ;;  %2550 = vst [vmem:[%s3727_s14 + $0x58] sm:$0xff] (!%p2907_p5), %v2358_v3  ;;  %v2366_v19 = vadd.f32 (!%p2907_p5), %v4165_v38, %v2157_v47  ;;  %v2378_v42 = vadd.f32 (!%p2907_p5), %v4165_v38, %v2169_v8  ;;  %v2379_v46 = vadd.f32 (!%p2907_p5), %v4167_v39, %v2170_v13  ;;  %v2189_v58 = vld [vmem:[#allocation2 + $0x198] sm:$0xff] (!%p2907_p5)  ;;  %v2190_v59 = vld [vmem:[#allocation2 + $0x1a0] sm:$0xff] (!%p2907_p5) }
 0x327   : > { %2551 = vst [vmem:[%s3727_s14 + $0x60] sm:$0xff] %v2359_v9  ;;  %2552 = vst [vmem:[%s3727_s14 + $0x68] sm:$0xff] %v2360_v10  ;;  %v2380_v47 = vadd.f32 %v4163_v37, %v2171_v14  ;;  %v2381_v48 = vadd.f32 %v4165_v38, %v2172_v15  ;;  %v2384_v54 = vadd.f32 %v4165_v38, %v2175_v22  ;;  %v2191_v0 = vld [vmem:[#allocation2 + $0x1a8] sm:$0xff]  ;;  %v2192_v1 = vld [vmem:[#allocation2 + $0x1b0] sm:$0xff] }
 0x328   : > { %2553 = vst [vmem:[%s3727_s14 + $0x70] sm:$0xff] %v2361_v11  ;;  %2554 = vst [vmem:[%s3727_s14 + $0x78] sm:$0xff] %v2362_v12  ;;  %v2385_v55 = vadd.f32 %v4167_v39, %v2176_v26  ;;  %v2386_v56 = vadd.f32 %v4163_v37, %v2177_v27  ;;  %v2387_v60 = vadd.f32 %v4165_v38, %v2178_v28  ;;  %v2193_v2 = vld [vmem:[#allocation2 + $0x1b8] sm:$0xff]  ;;  %v2194_v8 = vld [vmem:[#allocation2 + $0x1c0] sm:$0xff] }
 0x329   : > { %2555 = vst [vmem:[%s3727_s14 + $0x80] sm:$0xff] %v2363_v16  ;;  %2556 = vst [vmem:[%s3727_s14 + $0x88] sm:$0xff] %v2364_v17  ;;  %v2388_v61 = vadd.f32 %v4167_v39, %v2179_v33  ;;  %v2389_v62 = vadd.f32 %v4163_v37, %v2180_v34  ;;  %v2390_v63 = vadd.f32 %v4165_v38, %v2181_v35  ;;  %v2195_v9 = vld [vmem:[#allocation2 + $0x1c8] sm:$0xff]  ;;  %v2196_v10 = vld [vmem:[#allocation2 + $0x1d0] sm:$0xff] }
 0x32a   : > { %2557 = vst [vmem:[%s3727_s14 + $0x90] sm:$0xff] %v2365_v18  ;;  %2558 = vst [vmem:[%s3727_s14 + $0x98] sm:$0xff] %v2366_v19  ;;  %v2391_v3 = vadd.f32 %v4167_v39, %v2182_v43  ;;  %v2392_v4 = vadd.f32 %v4163_v37, %v2183_v44  ;;  %v2393_v6 = vadd.f32 %v4165_v38, %v2184_v45  ;;  %v2197_v15 = vld [vmem:[#allocation2 + $0x1d8] sm:$0xff]  ;;  %v2198_v16 = vld [vmem:[#allocation2 + $0x1e0] sm:$0xff] }
 0x32b   : > { %2559 = vst [vmem:[%s3727_s14 + $0xa0] sm:$0xff] %v2367_v23  ;;  %2560 = vst [vmem:[%s3727_s14 + $0xa8] sm:$0xff] %v2368_v24  ;;  %v2394_v7 = vadd.f32 %v4167_v39, %v2185_v50  ;;  %v2395_v11 = vadd.f32 %v4163_v37, %v2186_v51  ;;  %v2396_v12 = vadd.f32 %v4165_v38, %v2187_v52  ;;  %v2199_v17 = vld [vmem:[#allocation2 + $0x1e8] sm:$0xff]  ;;  %v2200_v22 = vld [vmem:[#allocation2 + $0x1f0] sm:$0xff] }
 0x32c   : > { %2561 = vst [vmem:[%s3727_s14 + $0xb0] sm:$0xff] %v2369_v5  ;;  %2562 = vst [vmem:[%s3727_s14 + $0xb8] sm:$0xff] %v2370_v25  ;;  %v2397_v13 = vadd.f32 %v4167_v39, %v2188_v57  ;;  %v2398_v14 = vadd.f32 %v4163_v37, %v2189_v58  ;;  %v2399_v18 = vadd.f32 %v4165_v38, %v2190_v59  ;;  %v2201_v23 = vld [vmem:[#allocation2 + $0x1f8] sm:$0xff]  ;;  %v2202_v24 = vld [vmem:[#allocation2 + $0x200] sm:$0xff] }
 0x32d   : > { %2563 = vst [vmem:[%s3727_s14 + $0xc0] sm:$0xff] %v2371_v29  ;;  %2564 = vst [vmem:[%s3727_s14 + $0xc8] sm:$0xff] %v2372_v30  ;;  %v2400_v19 = vadd.f32 %v4167_v39, %v2191_v0  ;;  %v2401_v20 = vadd.f32 %v4163_v37, %v2192_v1  ;;  %v2402_v21 = vadd.f32 %v4165_v38, %v2193_v2  ;;  %v2203_v28 = vld [vmem:[#allocation2 + $0x208] sm:$0xff]  ;;  %v2204_v29 = vld [vmem:[#allocation2 + $0x210] sm:$0xff] }
 0x32e   : > { %2565 = vst [vmem:[%s3727_s14 + $0xd0] sm:$0xff] %v2373_v31  ;;  %2566 = vst [vmem:[%s3727_s14 + $0xd8] sm:$0xff] %v2374_v32  ;;  %v2403_v5 = vadd.f32 %v4167_v39, %v2194_v8  ;;  %v2404_v25 = vadd.f32 %v4163_v37, %v2195_v9  ;;  %v2405_v26 = vadd.f32 %v4165_v38, %v2196_v10  ;;  %v2205_v30 = vld [vmem:[#allocation2 + $0x218] sm:$0xff]  ;;  %v2206_v35 = vld [vmem:[#allocation2 + $0x220] sm:$0xff] }
 0x32f   : > { %2567 = vst [vmem:[%s3727_s14 + $0xe0] sm:$0xff] %v2375_v36  ;;  %2568 = vst [vmem:[%s3727_s14 + $0xe8] sm:$0xff] %v2376_v40  ;;  %v2406_v27 = vadd.f32 %v4167_v39, %v2197_v15  ;;  %v2407_v31 = vadd.f32 %v4163_v37, %v2198_v16  ;;  %v2408_v32 = vadd.f32 %v4165_v38, %v2199_v17  ;;  %v2207_v36 = vld [vmem:[#allocation2 + $0x228] sm:$0xff]  ;;  %v2208_v40 = vld [vmem:[#allocation2 + $0x230] sm:$0xff] }
 0x330   : > { %2569 = vst [vmem:[%s3727_s14 + $0xf0] sm:$0xff] %v2377_v41  ;;  %2570 = vst [vmem:[%s3727_s14 + $0xf8] sm:$0xff] %v2378_v42  ;;  %v2409_v33 = vadd.f32 %v4167_v39, %v2200_v22  ;;  %v2410_v34 = vadd.f32 %v4163_v37, %v2201_v23  ;;  %v2411_v41 = vadd.f32 %v4165_v38, %v2202_v24  ;;  %v2209_v45 = vld [vmem:[#allocation2 + $0x238] sm:$0xff]  ;;  %v2212_v52 = vld [vmem:[#allocation2 + $0x250] sm:$0xff] }
 0x331   : > { %2571 = vst [vmem:[%s3727_s14 + $0x100] sm:$0xff] %v2379_v46  ;;  %2572 = vst [vmem:[%s3727_s14 + $0x108] sm:$0xff] %v2380_v47  ;;  %v2412_v42 = vadd.f32 %v4167_v39, %v2203_v28  ;;  %v2413_v43 = vadd.f32 %v4163_v37, %v2204_v29  ;;  %v2414_v44 = vadd.f32 %v4165_v38, %v2205_v30  ;;  %v2210_v46 = vld [vmem:[#allocation2 + $0x240] sm:$0xff]  ;;  %v2211_v47 = vld [vmem:[#allocation2 + $0x248] sm:$0xff] }
 0x332   : > { %2573 = vst [vmem:[%s3727_s14 + $0x110] sm:$0xff] %v2381_v48  ;;  %2574 = vst [vmem:[%s3727_s14 + $0x118] sm:$0xff] %v2382_v49  ;;  %v2415_v48 = vadd.f32 %v4167_v39, %v2206_v35  ;;  %v2416_v49 = vadd.f32 %v4163_v37, %v2207_v36  ;;  %v2417_v50 = vadd.f32 %v4165_v38, %v2208_v40  ;;  %v2215_v59 = vld [vmem:[#allocation2 + $0x268] sm:$0xff]  ;;  %v2218_v2 = vld [vmem:[#allocation2 + $0x280] sm:$0xff] }
 0x333   : > { %2575 = vst [vmem:[%s3727_s14 + $0x120] sm:$0xff] %v2383_v53  ;;  %2576 = vst [vmem:[%s3727_s14 + $0x128] sm:$0xff] %v2384_v54  ;;  %v2418_v51 = vadd.f32 %v4167_v39, %v2209_v45  ;;  %v2213_v53 = vld [vmem:[#allocation2 + $0x258] sm:$0xff]  ;;  %v2214_v54 = vld [vmem:[#allocation2 + $0x260] sm:$0xff]  ;;  %v2421_v57 = vadd.f32 %v4167_v39, %v2212_v52 }
 0x334   : > { %2577 = vst [vmem:[%s3727_s14 + $0x130] sm:$0xff] %v2385_v55  ;;  %2578 = vst [vmem:[%s3727_s14 + $0x138] sm:$0xff] %v2386_v56  ;;  %v2419_v55 = vadd.f32 %v4163_v37, %v2210_v46  ;;  %v2420_v56 = vadd.f32 %v4165_v38, %v2211_v47  ;;  %v2422_v58 = vadd.f32 %v4163_v37, %v2213_v53  ;;  %v2221_v9 = vld [vmem:[#allocation2 + $0x298] sm:$0xff]  ;;  %v2222_v10 = vld [vmem:[#allocation2 + $0x2a0] sm:$0xff] }
 0x335   : > { %2579 = vst [vmem:[%s3727_s14 + $0x140] sm:$0xff] %v2387_v60  ;;  %2580 = vst [vmem:[%s3727_s14 + $0x148] sm:$0xff] %v2388_v61  ;;  %v2216_v60 = vld [vmem:[#allocation2 + $0x270] sm:$0xff]  ;;  %v2217_v61 = vld [vmem:[#allocation2 + $0x278] sm:$0xff] }
 0x336   : > { %2581 = vst [vmem:[%s3727_s14 + $0x150] sm:$0xff] %v2389_v62  ;;  %2582 = vst [vmem:[%s3727_s14 + $0x158] sm:$0xff] %v2390_v63  ;;  %v2423_v62 = vadd.f32 %v4165_v38, %v2214_v54  ;;  %v2424_v63 = vadd.f32 %v4167_v39, %v2215_v59  ;;  %v2425_v0 = vadd.f32 %v4163_v37, %v2216_v60  ;;  %v2224_v15 = vld [vmem:[#allocation2 + $0x2b0] sm:$0xff]  ;;  %v2225_v16 = vld [vmem:[#allocation2 + $0x2b8] sm:$0xff] }
 0x337   : > { %2583 = vst [vmem:[%s3727_s14 + $0x160] sm:$0xff] %v2391_v3  ;;  %2584 = vst [vmem:[%s3727_s14 + $0x168] sm:$0xff] %v2392_v4  ;;  %v2426_v1 = vadd.f32 %v4165_v38, %v2217_v61  ;;  %v2219_v3 = vld [vmem:[#allocation2 + $0x288] sm:$0xff]  ;;  %v2220_v4 = vld [vmem:[#allocation2 + $0x290] sm:$0xff] }
 0x338   : > { %2585 = vst [vmem:[%s3727_s14 + $0x170] sm:$0xff] %v2393_v6  ;;  %2586 = vst [vmem:[%s3727_s14 + $0x178] sm:$0xff] %v2394_v7  ;;  %v2427_v6 = vadd.f32 %v4167_v39, %v2218_v2  ;;  %v2428_v7 = vadd.f32 %v4163_v37, %v2219_v3  ;;  %v2429_v8 = vadd.f32 %v4165_v38, %v2220_v4  ;;  %v2226_v17 = vld [vmem:[#allocation2 + $0x2c0] sm:$0xff]  ;;  %v2228_v22 = vld [vmem:[#allocation2 + $0x2d0] sm:$0xff] }
 0x339   : > { %2587 = vst [vmem:[%s3727_s14 + $0x180] sm:$0xff] %v2395_v11  ;;  %2588 = vst [vmem:[%s3727_s14 + $0x188] sm:$0xff] %v2396_v12  ;;  %v2223_v11 = vld [vmem:[#allocation2 + $0x2a8] sm:$0xff]  ;;  %v2430_v12 = vadd.f32 %v4167_v39, %v2221_v9  ;;  %v2229_v23 = vld [vmem:[#allocation2 + $0x2d8] sm:$0xff] }
 0x33a   : > { %2589 = vst [vmem:[%s3727_s14 + $0x190] sm:$0xff] %v2397_v13  ;;  %2590 = vst [vmem:[%s3727_s14 + $0x198] sm:$0xff] %v2398_v14  ;;  %v2431_v13 = vadd.f32 %v4163_v37, %v2222_v10  ;;  %v2432_v14 = vadd.f32 %v4165_v38, %v2223_v11  ;;  %v2232_v28 = vld [vmem:[#allocation2 + $0x2f0] sm:$0xff]  ;;  %v2239_v47 = vld [vmem:[#allocation2 + $0x328] sm:$0xff] }
 0x33b   : > { %2591 = vst [vmem:[%s3727_s14 + $0x1a0] sm:$0xff] %v2399_v18  ;;  %2592 = vst [vmem:[%s3727_s14 + $0x1a8] sm:$0xff] %v2400_v19  ;;  %v2433_v18 = vadd.f32 %v4167_v39, %v2224_v15  ;;  %v2434_v19 = vadd.f32 %v4163_v37, %v2225_v16  ;;  %v2242_v53 = vld [vmem:[#allocation2 + $0x340] sm:$0xff]  ;;  %v2243_v54 = vld [vmem:[#allocation2 + $0x348] sm:$0xff] }
 0x33c   : > { %2593 = vst [vmem:[%s3727_s14 + $0x1b0] sm:$0xff] %v2401_v20  ;;  %2594 = vst [vmem:[%s3727_s14 + $0x1b8] sm:$0xff] %v2402_v21  ;;  %v2435_v20 = vadd.f32 %v4165_v38, %v2226_v17  ;;  %v2227_v21 = vld [vmem:[#allocation2 + $0x2c8] sm:$0xff]  ;;  %v2245_v59 = vld [vmem:[#allocation2 + $0x358] sm:$0xff] }
 0x33d   : > { %2595 = vst [vmem:[%s3727_s14 + $0x1c0] sm:$0xff] %v2403_v5  ;;  %2596 = vst [vmem:[%s3727_s14 + $0x1c8] sm:$0xff] %v2404_v25  ;;  %v2436_v24 = vadd.f32 %v4167_v39, %v2227_v21  ;;  %v2437_v5 = vadd.f32 %v4163_v37, %v2228_v22  ;;  %v2438_v25 = vadd.f32 %v4165_v38, %v2229_v23  ;;  %v2246_v60 = vld [vmem:[#allocation2 + $0x360] sm:$0xff]  ;;  %v2247_v61 = vld [vmem:[#allocation2 + $0x368] sm:$0xff] }
 0x33e   : > { %2597 = vst [vmem:[%s3727_s14 + $0x1d0] sm:$0xff] %v2405_v26  ;;  %2598 = vst [vmem:[%s3727_s14 + $0x1d8] sm:$0xff] %v2406_v27  ;;  %v2230_v26 = vld [vmem:[#allocation2 + $0x2e0] sm:$0xff]  ;;  %v2231_v27 = vld [vmem:[#allocation2 + $0x2e8] sm:$0xff] }
 0x33f   : > { %2599 = vst [vmem:[%s3727_s14 + $0x1e0] sm:$0xff] %v2407_v31  ;;  %2600 = vst [vmem:[%s3727_s14 + $0x1e8] sm:$0xff] %v2408_v32  ;;  %v2439_v29 = vadd.f32 %v4167_v39, %v2230_v26  ;;  %v2440_v30 = vadd.f32 %v4163_v37, %v2231_v27  ;;  %v2441_v31 = vadd.f32 %v4165_v38, %v2232_v28  ;;  %v2233_v32 = vld [vmem:[#allocation2 + $0x2f8] sm:$0xff]  ;;  %v2250_v3 = vld [vmem:[#allocation2 + $0x380] sm:$0xff] }
 0x340   : > { %2601 = vst [vmem:[%s3727_s14 + $0x1f0] sm:$0xff] %v2409_v33  ;;  %2602 = vst [vmem:[%s3727_s14 + $0x1f8] sm:$0xff] %v2410_v34  ;;  %v2234_v33 = vld [vmem:[#allocation2 + $0x300] sm:$0xff]  ;;  %v2235_v34 = vld [vmem:[#allocation2 + $0x308] sm:$0xff]  ;;  %v2442_v35 = vadd.f32 %v4167_v39, %v2233_v32 }
 0x341   : > { %2603 = vst [vmem:[%s3727_s14 + $0x200] sm:$0xff] %v2411_v41  ;;  %2604 = vst [vmem:[%s3727_s14 + $0x208] sm:$0xff] %v2412_v42  ;;  %v2443_v36 = vadd.f32 %v4163_v37, %v2234_v33  ;;  %v2444_v40 = vadd.f32 %v4165_v38, %v2235_v34  ;;  %v2236_v41 = vld [vmem:[#allocation2 + $0x310] sm:$0xff]  ;;  %v2237_v42 = vld [vmem:[#allocation2 + $0x318] sm:$0xff] }
 0x342   : > { %2605 = vst [vmem:[%s3727_s14 + $0x210] sm:$0xff] %v2413_v43  ;;  %2606 = vst [vmem:[%s3727_s14 + $0x218] sm:$0xff] %v2414_v44  ;;  %v2238_v43 = vld [vmem:[#allocation2 + $0x320] sm:$0xff]  ;;  %v2445_v44 = vadd.f32 %v4167_v39, %v2236_v41  ;;  %v2446_v45 = vadd.f32 %v4163_v37, %v2237_v42  ;;  %v2249_v2 = vld [vmem:[#allocation2 + $0x378] sm:$0xff] }
 0x343   : > { %2607 = vst [vmem:[%s3727_s14 + $0x220] sm:$0xff] %v2415_v48  ;;  %2608 = vst [vmem:[%s3727_s14 + $0x228] sm:$0xff] %v2416_v49  ;;  %v2447_v46 = vadd.f32 %v4165_v38, %v2238_v43  ;;  %v2240_v48 = vld [vmem:[#allocation2 + $0x330] sm:$0xff]  ;;  %v2241_v49 = vld [vmem:[#allocation2 + $0x338] sm:$0xff] }
 0x344   : > { %2609 = vst [vmem:[%s3727_s14 + $0x230] sm:$0xff] %v2417_v50  ;;  %2610 = vst [vmem:[%s3727_s14 + $0x238] sm:$0xff] %v2418_v51  ;;  %v2448_v50 = vadd.f32 %v4167_v39, %v2239_v47  ;;  %v2449_v51 = vadd.f32 %v4163_v37, %v2240_v48  ;;  %v2450_v52 = vadd.f32 %v4165_v38, %v2241_v49  ;;  %v2252_v9 = vld [vmem:[#allocation2 + $0x390] sm:$0xff]  ;;  %v2253_v10 = vld [vmem:[#allocation2 + $0x398] sm:$0xff] }
 0x345   : > { %2611 = vst [vmem:[%s3727_s14 + $0x240] sm:$0xff] %v2419_v55  ;;  %2612 = vst [vmem:[%s3727_s14 + $0x248] sm:$0xff] %v2420_v56  ;;  %v2244_v55 = vld [vmem:[#allocation2 + $0x350] sm:$0xff]  ;;  %v2451_v56 = vadd.f32 %v4167_v39, %v2242_v53  ;;  %v2255_v15 = vld [vmem:[#allocation2 + $0x3a8] sm:$0xff] }
 0x346   : > { %2613 = vst [vmem:[%s3727_s14 + $0x250] sm:$0xff] %v2421_v57  ;;  %2614 = vst [vmem:[%s3727_s14 + $0x258] sm:$0xff] %v2422_v58  ;;  %v2452_v57 = vadd.f32 %v4163_v37, %v2243_v54  ;;  %v2453_v58 = vadd.f32 %v4165_v38, %v2244_v55  ;;  %v2256_v16 = vld [vmem:[#allocation2 + $0x3b0] sm:$0xff]  ;;  %v2258_v21 = vld [vmem:[#allocation2 + $0x3c0] sm:$0xff] }
 0x347   : > { %2615 = vst [vmem:[%s3727_s14 + $0x260] sm:$0xff] %v2423_v62  ;;  %2616 = vst [vmem:[%s3727_s14 + $0x268] sm:$0xff] %v2424_v63  ;;  %v2454_v62 = vadd.f32 %v4167_v39, %v2245_v59  ;;  %v2455_v63 = vadd.f32 %v4163_v37, %v2246_v60  ;;  %v2259_v22 = vld [vmem:[#allocation2 + $0x3c8] sm:$0xff]  ;;  %v2261_v26 = vld [vmem:[#allocation2 + $0x3d8] sm:$0xff] }
 0x348   : > { %2617 = vst [vmem:[%s3727_s14 + $0x270] sm:$0xff] %v2425_v0  ;;  %2618 = vst [vmem:[%s3727_s14 + $0x278] sm:$0xff] %v2426_v1  ;;  %v2456_v0 = vadd.f32 %v4165_v38, %v2247_v61  ;;  %v2248_v1 = vld [vmem:[#allocation2 + $0x370] sm:$0xff]  ;;  %v2262_v27 = vld [vmem:[#allocation2 + $0x3e0] sm:$0xff] }
 0x349   : > { %2619 = vst [vmem:[%s3727_s14 + $0x280] sm:$0xff] %v2427_v6  ;;  %2620 = vst [vmem:[%s3727_s14 + $0x288] sm:$0xff] %v2428_v7  ;;  %v2457_v4 = vadd.f32 %v4167_v39, %v2248_v1  ;;  %v2458_v6 = vadd.f32 %v4163_v37, %v2249_v2  ;;  %v2459_v7 = vadd.f32 %v4165_v38, %v2250_v3  ;;  %v2264_v32 = vld [vmem:[#allocation2 + $0x3f0] sm:$0xff]  ;;  %v2265_v33 = vld [vmem:[#allocation2 + $0x3f8] sm:$0xff] }
 0x34a   : > { %2621 = vst [vmem:[%s3727_s14 + $0x290] sm:$0xff] %v2429_v8  ;;  %2622 = vst [vmem:[%s3727_s14 + $0x298] sm:$0xff] %v2430_v12  ;;  %v2251_v8 = vld [vmem:[#allocation2 + $0x388] sm:$0xff]  ;;  %v2461_v12 = vadd.f32 %v4163_v37, %v2252_v9  ;;  %v2268_v42 = vld [vmem:[#allocation2 + $0x410] sm:$0xff] }
 0x34b   : > { %2623 = vst [vmem:[%s3727_s14 + $0x2a0] sm:$0xff] %v2431_v13  ;;  %2624 = vst [vmem:[%s3727_s14 + $0x2a8] sm:$0xff] %v2432_v14  ;;  %v2460_v11 = vadd.f32 %v4167_v39, %v2251_v8  ;;  %v2462_v13 = vadd.f32 %v4165_v38, %v2253_v10  ;;  %v2254_v14 = vld [vmem:[#allocation2 + $0x3a0] sm:$0xff]  ;;  %v2267_v41 = vld [vmem:[#allocation2 + $0x408] sm:$0xff] }
 0x34c   : > { %2625 = vst [vmem:[%s3727_s14 + $0x2b0] sm:$0xff] %v2433_v18  ;;  %2626 = vst [vmem:[%s3727_s14 + $0x2b8] sm:$0xff] %v2434_v19  ;;  %v2463_v17 = vadd.f32 %v4167_v39, %v2254_v14  ;;  %v2464_v18 = vadd.f32 %v4163_v37, %v2255_v15  ;;  %v2465_v19 = vadd.f32 %v4165_v38, %v2256_v16  ;;  %v2270_v47 = vld [vmem:[#allocation2 + $0x420] sm:$0xff]  ;;  %v2271_v48 = vld [vmem:[#allocation2 + $0x428] sm:$0xff] }
 0x34d   : > { %2627 = vst [vmem:[%s3727_s14 + $0x2c0] sm:$0xff] %v2435_v20  ;;  %2628 = vst [vmem:[%s3727_s14 + $0x2c8] sm:$0xff] %v2436_v24  ;;  %v2257_v20 = vld [vmem:[#allocation2 + $0x3b8] sm:$0xff]  ;;  %v2467_v24 = vadd.f32 %v4163_v37, %v2258_v21  ;;  %v2274_v54 = vld [vmem:[#allocation2 + $0x440] sm:$0xff] }
 0x34e   : > { %2629 = vst [vmem:[%s3727_s14 + $0x2d0] sm:$0xff] %v2437_v5  ;;  %2630 = vst [vmem:[%s3727_s14 + $0x2d8] sm:$0xff] %v2438_v25  ;;  %v2466_v23 = vadd.f32 %v4167_v39, %v2257_v20  ;;  %v2468_v5 = vadd.f32 %v4165_v38, %v2259_v22  ;;  %v2260_v25 = vld [vmem:[#allocation2 + $0x3d0] sm:$0xff]  ;;  %v2273_v53 = vld [vmem:[#allocation2 + $0x438] sm:$0xff] }
 0x34f   : > { %2631 = vst [vmem:[%s3727_s14 + $0x2e0] sm:$0xff] %v2439_v29  ;;  %2632 = vst [vmem:[%s3727_s14 + $0x2e8] sm:$0xff] %v2440_v30  ;;  %v2469_v28 = vadd.f32 %v4167_v39, %v2260_v25  ;;  %v2470_v29 = vadd.f32 %v4163_v37, %v2261_v26  ;;  %v2471_v30 = vadd.f32 %v4165_v38, %v2262_v27  ;;  %v2276_v59 = vld [vmem:[#allocation2 + $0x450] sm:$0xff]  ;;  %v2277_v60 = vld [vmem:[#allocation2 + $0x458] sm:$0xff] }
 0x350   : > { %2633 = vst [vmem:[%s3727_s14 + $0x2f0] sm:$0xff] %v2441_v31  ;;  %2634 = vst [vmem:[%s3727_s14 + $0x2f8] sm:$0xff] %v2442_v35  ;;  %v2263_v31 = vld [vmem:[#allocation2 + $0x3e8] sm:$0xff]  ;;  %v2473_v35 = vadd.f32 %v4163_v37, %v2264_v32  ;;  %v2280_v2 = vld [vmem:[#allocation2 + $0x470] sm:$0xff] }
 0x351   : > { %2635 = vst [vmem:[%s3727_s14 + $0x300] sm:$0xff] %v2443_v36  ;;  %2636 = vst [vmem:[%s3727_s14 + $0x308] sm:$0xff] %v2444_v40  ;;  %v2472_v34 = vadd.f32 %v4167_v39, %v2263_v31  ;;  %v2474_v36 = vadd.f32 %v4165_v38, %v2265_v33  ;;  %v2266_v40 = vld [vmem:[#allocation2 + $0x400] sm:$0xff]  ;;  %v2279_v1 = vld [vmem:[#allocation2 + $0x468] sm:$0xff] }
 0x352   : > { %2637 = vst [vmem:[%s3727_s14 + $0x310] sm:$0xff] %v2445_v44  ;;  %2638 = vst [vmem:[%s3727_s14 + $0x318] sm:$0xff] %v2446_v45  ;;  %v2475_v43 = vadd.f32 %v4167_v39, %v2266_v40  ;;  %v2476_v44 = vadd.f32 %v4163_v37, %v2267_v41  ;;  %v2477_v45 = vadd.f32 %v4165_v38, %v2268_v42  ;;  %v2282_v8 = vld [vmem:[#allocation2 + $0x480] sm:$0xff]  ;;  %v2283_v9 = vld [vmem:[#allocation2 + $0x488] sm:$0xff] }
 0x353   : > { %2639 = vst [vmem:[%s3727_s14 + $0x320] sm:$0xff] %v2447_v46  ;;  %2640 = vst [vmem:[%s3727_s14 + $0x328] sm:$0xff] %v2448_v50  ;;  %v2269_v46 = vld [vmem:[#allocation2 + $0x418] sm:$0xff]  ;;  %v2479_v50 = vadd.f32 %v4163_v37, %v2270_v47  ;;  %v2286_v15 = vld [vmem:[#allocation2 + $0x4a0] sm:$0xff] }
 0x354   : > { %2641 = vst [vmem:[%s3727_s14 + $0x330] sm:$0xff] %v2449_v51  ;;  %2642 = vst [vmem:[%s3727_s14 + $0x338] sm:$0xff] %v2450_v52  ;;  %v2478_v49 = vadd.f32 %v4167_v39, %v2269_v46  ;;  %v2480_v51 = vadd.f32 %v4165_v38, %v2271_v48  ;;  %v2272_v52 = vld [vmem:[#allocation2 + $0x430] sm:$0xff]  ;;  %v2285_v14 = vld [vmem:[#allocation2 + $0x498] sm:$0xff] }
 0x355   : > { %2643 = vst [vmem:[%s3727_s14 + $0x340] sm:$0xff] %v2451_v56  ;;  %2644 = vst [vmem:[%s3727_s14 + $0x348] sm:$0xff] %v2452_v57  ;;  %v2481_v55 = vadd.f32 %v4167_v39, %v2272_v52  ;;  %v2482_v56 = vadd.f32 %v4163_v37, %v2273_v53  ;;  %v2483_v57 = vadd.f32 %v4165_v38, %v2274_v54  ;;  %v2288_v20 = vld [vmem:[#allocation2 + $0x4b0] sm:$0xff]  ;;  %v2289_v21 = vld [vmem:[#allocation2 + $0x4b8] sm:$0xff] }
 0x356   : > { %2645 = vst [vmem:[%s3727_s14 + $0x350] sm:$0xff] %v2453_v58  ;;  %2646 = vst [vmem:[%s3727_s14 + $0x358] sm:$0xff] %v2454_v62  ;;  %v2275_v58 = vld [vmem:[#allocation2 + $0x448] sm:$0xff]  ;;  %v2485_v62 = vadd.f32 %v4163_v37, %v2276_v59  ;;  %v2292_v26 = vld [vmem:[#allocation2 + $0x4d0] sm:$0xff] }
 0x357   : > { %2647 = vst [vmem:[%s3727_s14 + $0x360] sm:$0xff] %v2455_v63  ;;  %2648 = vst [vmem:[%s3727_s14 + $0x368] sm:$0xff] %v2456_v0  ;;  %v2484_v61 = vadd.f32 %v4167_v39, %v2275_v58  ;;  %v2486_v63 = vadd.f32 %v4165_v38, %v2277_v60  ;;  %v2278_v0 = vld [vmem:[#allocation2 + $0x460] sm:$0xff]  ;;  %v2291_v25 = vld [vmem:[#allocation2 + $0x4c8] sm:$0xff] }
 0x358   : > { %2649 = vst [vmem:[%s3727_s14 + $0x370] sm:$0xff] %v2457_v4  ;;  %2650 = vst [vmem:[%s3727_s14 + $0x378] sm:$0xff] %v2458_v6  ;;  %v2487_v3 = vadd.f32 %v4167_v39, %v2278_v0  ;;  %v2488_v4 = vadd.f32 %v4163_v37, %v2279_v1  ;;  %v2489_v6 = vadd.f32 %v4165_v38, %v2280_v2  ;;  %v2294_v31 = vld [vmem:[#allocation2 + $0x4e0] sm:$0xff]  ;;  %v2295_v32 = vld [vmem:[#allocation2 + $0x4e8] sm:$0xff] }
 0x359   : > { %2651 = vst [vmem:[%s3727_s14 + $0x380] sm:$0xff] %v2459_v7  ;;  %2652 = vst [vmem:[%s3727_s14 + $0x388] sm:$0xff] %v2460_v11  ;;  %v2281_v7 = vld [vmem:[#allocation2 + $0x478] sm:$0xff]  ;;  %v2491_v11 = vadd.f32 %v4163_v37, %v2282_v8  ;;  %v2298_v41 = vld [vmem:[#allocation2 + $0x500] sm:$0xff] }
 0x35a   : > { %2653 = vst [vmem:[%s3727_s14 + $0x390] sm:$0xff] %v2461_v12  ;;  %2654 = vst [vmem:[%s3727_s14 + $0x398] sm:$0xff] %v2462_v13  ;;  %v2490_v10 = vadd.f32 %v4167_v39, %v2281_v7  ;;  %v2492_v12 = vadd.f32 %v4165_v38, %v2283_v9  ;;  %v2284_v13 = vld [vmem:[#allocation2 + $0x490] sm:$0xff]  ;;  %v2297_v40 = vld [vmem:[#allocation2 + $0x4f8] sm:$0xff] }
 0x35b   : > { %2655 = vst [vmem:[%s3727_s14 + $0x3a0] sm:$0xff] %v2463_v17  ;;  %2656 = vst [vmem:[%s3727_s14 + $0x3a8] sm:$0xff] %v2464_v18  ;;  %v2493_v16 = vadd.f32 %v4167_v39, %v2284_v13  ;;  %v2494_v17 = vadd.f32 %v4163_v37, %v2285_v14  ;;  %v2495_v18 = vadd.f32 %v4165_v38, %v2286_v15  ;;  %v2300_v46 = vld [vmem:[#allocation2 + $0x510] sm:$0xff]  ;;  %v2301_v47 = vld [vmem:[#allocation2 + $0x518] sm:$0xff] }
 0x35c   : > { %2657 = vst [vmem:[%s3727_s14 + $0x3b0] sm:$0xff] %v2465_v19  ;;  %2658 = vst [vmem:[%s3727_s14 + $0x3b8] sm:$0xff] %v2466_v23  ;;  %v2287_v19 = vld [vmem:[#allocation2 + $0x4a8] sm:$0xff]  ;;  %v2497_v23 = vadd.f32 %v4163_v37, %v2288_v20  ;;  %v2304_v53 = vld [vmem:[#allocation2 + $0x530] sm:$0xff] }
 0x35d   : > { %2659 = vst [vmem:[%s3727_s14 + $0x3c0] sm:$0xff] %v2467_v24  ;;  %2660 = vst [vmem:[%s3727_s14 + $0x3c8] sm:$0xff] %v2468_v5  ;;  %v2496_v22 = vadd.f32 %v4167_v39, %v2287_v19  ;;  %v2498_v24 = vadd.f32 %v4165_v38, %v2289_v21  ;;  %v2290_v5 = vld [vmem:[#allocation2 + $0x4c0] sm:$0xff]  ;;  %v2303_v52 = vld [vmem:[#allocation2 + $0x528] sm:$0xff] }
 0x35e   : > { %2661 = vst [vmem:[%s3727_s14 + $0x3d0] sm:$0xff] %v2469_v28  ;;  %2662 = vst [vmem:[%s3727_s14 + $0x3d8] sm:$0xff] %v2470_v29  ;;  %v2499_v27 = vadd.f32 %v4167_v39, %v2290_v5  ;;  %v2500_v28 = vadd.f32 %v4163_v37, %v2291_v25  ;;  %v2501_v29 = vadd.f32 %v4165_v38, %v2292_v26  ;;  %v2306_v58 = vld [vmem:[#allocation2 + $0x540] sm:$0xff]  ;;  %v2307_v59 = vld [vmem:[#allocation2 + $0x548] sm:$0xff] }
 0x35f   : > { %2663 = vst [vmem:[%s3727_s14 + $0x3e0] sm:$0xff] %v2471_v30  ;;  %2664 = vst [vmem:[%s3727_s14 + $0x3e8] sm:$0xff] %v2472_v34  ;;  %v2293_v30 = vld [vmem:[#allocation2 + $0x4d8] sm:$0xff]  ;;  %v2503_v34 = vadd.f32 %v4163_v37, %v2294_v31  ;;  %v2310_v1 = vld [vmem:[#allocation2 + $0x560] sm:$0xff] }
 0x360   : > { %2665 = vst [vmem:[%s3727_s14 + $0x3f0] sm:$0xff] %v2473_v35  ;;  %2666 = vst [vmem:[%s3727_s14 + $0x3f8] sm:$0xff] %v2474_v36  ;;  %v2502_v33 = vadd.f32 %v4167_v39, %v2293_v30  ;;  %v2504_v35 = vadd.f32 %v4165_v38, %v2295_v32  ;;  %v2296_v36 = vld [vmem:[#allocation2 + $0x4f0] sm:$0xff]  ;;  %v2309_v0 = vld [vmem:[#allocation2 + $0x558] sm:$0xff] }
 0x361   : > { %2667 = vst [vmem:[%s3727_s14 + $0x400] sm:$0xff] %v2475_v43  ;;  %2668 = vst [vmem:[%s3727_s14 + $0x408] sm:$0xff] %v2476_v44  ;;  %v2505_v42 = vadd.f32 %v4167_v39, %v2296_v36  ;;  %v2506_v43 = vadd.f32 %v4163_v37, %v2297_v40  ;;  %v2507_v44 = vadd.f32 %v4165_v38, %v2298_v41  ;;  %v2312_v7 = vld [vmem:[#allocation2 + $0x570] sm:$0xff]  ;;  %v2313_v8 = vld [vmem:[#allocation2 + $0x578] sm:$0xff] }
 0x362   : > { %2669 = vst [vmem:[%s3727_s14 + $0x410] sm:$0xff] %v2477_v45  ;;  %2670 = vst [vmem:[%s3727_s14 + $0x418] sm:$0xff] %v2478_v49  ;;  %v2299_v45 = vld [vmem:[#allocation2 + $0x508] sm:$0xff]  ;;  %v2509_v49 = vadd.f32 %v4163_v37, %v2300_v46  ;;  %v2316_v14 = vld [vmem:[#allocation2 + $0x590] sm:$0xff] }
 0x363   : > { %2671 = vst [vmem:[%s3727_s14 + $0x420] sm:$0xff] %v2479_v50  ;;  %2672 = vst [vmem:[%s3727_s14 + $0x428] sm:$0xff] %v2480_v51  ;;  %v2508_v48 = vadd.f32 %v4167_v39, %v2299_v45  ;;  %v2510_v50 = vadd.f32 %v4165_v38, %v2301_v47  ;;  %v2302_v51 = vld [vmem:[#allocation2 + $0x520] sm:$0xff]  ;;  %v2315_v13 = vld [vmem:[#allocation2 + $0x588] sm:$0xff] }
 0x364   : > { %2673 = vst [vmem:[%s3727_s14 + $0x430] sm:$0xff] %v2481_v55  ;;  %2674 = vst [vmem:[%s3727_s14 + $0x438] sm:$0xff] %v2482_v56  ;;  %v2511_v54 = vadd.f32 %v4167_v39, %v2302_v51  ;;  %v2512_v55 = vadd.f32 %v4163_v37, %v2303_v52  ;;  %v2513_v56 = vadd.f32 %v4165_v38, %v2304_v53  ;;  %v2318_v19 = vld [vmem:[#allocation2 + $0x5a0] sm:$0xff]  ;;  %v2319_v20 = vld [vmem:[#allocation2 + $0x5a8] sm:$0xff] }
 0x365   : > { %2675 = vst [vmem:[%s3727_s14 + $0x440] sm:$0xff] %v2483_v57  ;;  %2676 = vst [vmem:[%s3727_s14 + $0x448] sm:$0xff] %v2484_v61  ;;  %v2305_v57 = vld [vmem:[#allocation2 + $0x538] sm:$0xff]  ;;  %v2515_v61 = vadd.f32 %v4163_v37, %v2306_v58  ;;  %v2322_v25 = vld [vmem:[#allocation2 + $0x5c0] sm:$0xff] }
 0x366   : > { %2677 = vst [vmem:[%s3727_s14 + $0x450] sm:$0xff] %v2485_v62  ;;  %2678 = vst [vmem:[%s3727_s14 + $0x458] sm:$0xff] %v2486_v63  ;;  %v2514_v60 = vadd.f32 %v4167_v39, %v2305_v57  ;;  %v2516_v62 = vadd.f32 %v4165_v38, %v2307_v59  ;;  %v2308_v63 = vld [vmem:[#allocation2 + $0x550] sm:$0xff]  ;;  %v2321_v5 = vld [vmem:[#allocation2 + $0x5b8] sm:$0xff] }
 0x367   : > { %2679 = vst [vmem:[%s3727_s14 + $0x460] sm:$0xff] %v2487_v3  ;;  %2680 = vst [vmem:[%s3727_s14 + $0x468] sm:$0xff] %v2488_v4  ;;  %v2517_v2 = vadd.f32 %v4167_v39, %v2308_v63  ;;  %v2518_v3 = vadd.f32 %v4163_v37, %v2309_v0  ;;  %v2519_v4 = vadd.f32 %v4165_v38, %v2310_v1  ;;  %v2324_v30 = vld [vmem:[#allocation2 + $0x5d0] sm:$0xff]  ;;  %v2325_v31 = vld [vmem:[#allocation2 + $0x5d8] sm:$0xff] }
 0x368   : > { %2681 = vst [vmem:[%s3727_s14 + $0x470] sm:$0xff] %v2489_v6  ;;  %2682 = vst [vmem:[%s3727_s14 + $0x478] sm:$0xff] %v2490_v10  ;;  %v2311_v6 = vld [vmem:[#allocation2 + $0x568] sm:$0xff]  ;;  %v2521_v10 = vadd.f32 %v4163_v37, %v2312_v7  ;;  %v2328_v40 = vld [vmem:[#allocation2 + $0x5f0] sm:$0xff] }
 0x369   : > { %2683 = vst [vmem:[%s3727_s14 + $0x480] sm:$0xff] %v2491_v11  ;;  %2684 = vst [vmem:[%s3727_s14 + $0x488] sm:$0xff] %v2492_v12  ;;  %v2520_v9 = vadd.f32 %v4167_v39, %v2311_v6  ;;  %v2522_v11 = vadd.f32 %v4165_v38, %v2313_v8  ;;  %v2314_v12 = vld [vmem:[#allocation2 + $0x580] sm:$0xff]  ;;  %v2327_v36 = vld [vmem:[#allocation2 + $0x5e8] sm:$0xff] }
 0x36a   : > { %2685 = vst [vmem:[%s3727_s14 + $0x490] sm:$0xff] %v2493_v16  ;;  %2686 = vst [vmem:[%s3727_s14 + $0x498] sm:$0xff] %v2494_v17  ;;  %v2523_v15 = vadd.f32 %v4167_v39, %v2314_v12  ;;  %v2524_v16 = vadd.f32 %v4163_v37, %v2315_v13  ;;  %v2525_v17 = vadd.f32 %v4165_v38, %v2316_v14 }
 0x36b   : > { %2687 = vst [vmem:[%s3727_s14 + $0x4a0] sm:$0xff] %v2495_v18  ;;  %2688 = vst [vmem:[%s3727_s14 + $0x4a8] sm:$0xff] %v2496_v22  ;;  %v2317_v18 = vld [vmem:[#allocation2 + $0x598] sm:$0xff]  ;;  %v2527_v22 = vadd.f32 %v4163_v37, %v2318_v19 }
 0x36c   : > { %2689 = vst [vmem:[%s3727_s14 + $0x4b0] sm:$0xff] %v2497_v23  ;;  %2690 = vst [vmem:[%s3727_s14 + $0x4b8] sm:$0xff] %v2498_v24  ;;  %v2526_v21 = vadd.f32 %v4167_v39, %v2317_v18  ;;  %v2528_v23 = vadd.f32 %v4165_v38, %v2319_v20  ;;  %v2320_v24 = vld [vmem:[#allocation2 + $0x5b0] sm:$0xff] }
 0x36d   : > { %2691 = vst [vmem:[%s3727_s14 + $0x4c0] sm:$0xff] %v2499_v27  ;;  %2692 = vst [vmem:[%s3727_s14 + $0x4c8] sm:$0xff] %v2500_v28  ;;  %v2529_v26 = vadd.f32 %v4167_v39, %v2320_v24  ;;  %v2530_v27 = vadd.f32 %v4163_v37, %v2321_v5  ;;  %v2531_v28 = vadd.f32 %v4165_v38, %v2322_v25 }
 0x36e   : > { %2693 = vst [vmem:[%s3727_s14 + $0x4d0] sm:$0xff] %v2501_v29  ;;  %2694 = vst [vmem:[%s3727_s14 + $0x4d8] sm:$0xff] %v2502_v33  ;;  %v2323_v29 = vld [vmem:[#allocation2 + $0x5c8] sm:$0xff]  ;;  %v2533_v33 = vadd.f32 %v4163_v37, %v2324_v30 }
 0x36f   : > { %2695 = vst [vmem:[%s3727_s14 + $0x4e0] sm:$0xff] %v2503_v34  ;;  %2696 = vst [vmem:[%s3727_s14 + $0x4e8] sm:$0xff] %v2504_v35  ;;  %v2532_v32 = vadd.f32 %v4167_v39, %v2323_v29  ;;  %v2534_v34 = vadd.f32 %v4165_v38, %v2325_v31  ;;  %v2326_v35 = vld [vmem:[#allocation2 + $0x5e0] sm:$0xff] }
 0x370   : > { %2697 = vst [vmem:[%s3727_s14 + $0x4f0] sm:$0xff] %v2505_v42  ;;  %2698 = vst [vmem:[%s3727_s14 + $0x4f8] sm:$0xff] %v2506_v43  ;;  %v2535_v41 = vadd.f32 %v4167_v39, %v2326_v35  ;;  %v2536_v42 = vadd.f32 %v4163_v37, %v2327_v36  ;;  %v2537_v43 = vadd.f32 %v4165_v38, %v2328_v40 }
 0x371   : > { %2699 = vst [vmem:[%s3727_s14 + $0x500] sm:$0xff] %v2507_v44  ;;  %2700 = vst [vmem:[%s3727_s14 + $0x508] sm:$0xff] %v2508_v48  ;;  %v2329_v44 = vld [vmem:[#allocation2 + $0x5f8] sm:$0xff] }
 0x372   : > { %2701 = vst [vmem:[%s3727_s14 + $0x510] sm:$0xff] %v2509_v49  ;;  %2702 = vst [vmem:[%s3727_s14 + $0x518] sm:$0xff] %v2510_v50  ;;  %v2538_v45 = vadd.f32 %v4167_v39, %v2329_v44 }
 0x373   : > { %2703 = vst [vmem:[%s3727_s14 + $0x520] sm:$0xff] %v2511_v54  ;;  %2704 = vst [vmem:[%s3727_s14 + $0x528] sm:$0xff] %v2512_v55 }
 0x374   : > { %2705 = vst [vmem:[%s3727_s14 + $0x530] sm:$0xff] %v2513_v56  ;;  %2706 = vst [vmem:[%s3727_s14 + $0x538] sm:$0xff] %v2514_v60 }
 0x375   : > { %2707 = vst [vmem:[%s3727_s14 + $0x540] sm:$0xff] %v2515_v61  ;;  %2708 = vst [vmem:[%s3727_s14 + $0x548] sm:$0xff] %v2516_v62 }
 0x376   : > { %2709 = vst [vmem:[%s3727_s14 + $0x550] sm:$0xff] %v2517_v2  ;;  %2710 = vst [vmem:[%s3727_s14 + $0x558] sm:$0xff] %v2518_v3 }
 0x377   : > { %2711 = vst [vmem:[%s3727_s14 + $0x560] sm:$0xff] %v2519_v4  ;;  %2712 = vst [vmem:[%s3727_s14 + $0x568] sm:$0xff] %v2520_v9 }
 0x378   : > { %2713 = vst [vmem:[%s3727_s14 + $0x570] sm:$0xff] %v2521_v10  ;;  %2714 = vst [vmem:[%s3727_s14 + $0x578] sm:$0xff] %v2522_v11 }
 0x379   : > { %2715 = vst [vmem:[%s3727_s14 + $0x580] sm:$0xff] %v2523_v15  ;;  %2716 = vst [vmem:[%s3727_s14 + $0x588] sm:$0xff] %v2524_v16 }
 0x37a   : > { %2717 = vst [vmem:[%s3727_s14 + $0x590] sm:$0xff] %v2525_v17  ;;  %2718 = vst [vmem:[%s3727_s14 + $0x598] sm:$0xff] %v2526_v21 }
 0x37b   : > { %2719 = vst [vmem:[%s3727_s14 + $0x5a0] sm:$0xff] %v2527_v22  ;;  %2720 = vst [vmem:[%s3727_s14 + $0x5a8] sm:$0xff] %v2528_v23 }
 0x37c   : > { %2721 = vst [vmem:[%s3727_s14 + $0x5b0] sm:$0xff] %v2529_v26  ;;  %2722 = vst [vmem:[%s3727_s14 + $0x5b8] sm:$0xff] %v2530_v27 }
 0x37d   : > { %2723 = vst [vmem:[%s3727_s14 + $0x5c0] sm:$0xff] %v2531_v28  ;;  %2724 = vst [vmem:[%s3727_s14 + $0x5c8] sm:$0xff] %v2532_v32 }
 0x37e   : > { %2725 = vst [vmem:[%s3727_s14 + $0x5d0] sm:$0xff] %v2533_v33  ;;  %2726 = vst [vmem:[%s3727_s14 + $0x5d8] sm:$0xff] %v2534_v34 }
 0x37f   : > { %2727 = vst [vmem:[%s3727_s14 + $0x5e0] sm:$0xff] %v2535_v41  ;;  %2728 = vst [vmem:[%s3727_s14 + $0x5e8] sm:$0xff] %v2536_v42 }
 0x380   : > { %2729 = vst [vmem:[%s3727_s14 + $0x5f0] sm:$0xff] %v2537_v43  ;;  %2730 = vst [vmem:[%s3727_s14 + $0x5f8] sm:$0xff] %v2538_v45 }
 0x381 PF: > { %s4555_s21 = scalar_lea.sflag [#allocation5], %s284_s6  ;;  %p4698_p3 = scmp.ne.s32.totalorder %s4683_s7, 0 }
 0x382   : > { %s2908_s26 = sshll.u32 (%p4698_p3), %s3403_s22, 6 }
 0x383   : > { %2738 = sbr.rel (!%p4698_p3) target bundleno = 936 (0x3a8), region = 56  ;;  %s2741_s27 = ssub.s32 (%p4698_p3), 75, %s2908_s26 }
 0x384   : > { %p2742_p8 = scmp.lt.s32.totalorder (%p4698_p3), %s2741_s27, 64 }
 0x38a   : > { %s4733_s27 = smov (!%p2742_p8, %s2741_s27), 64 }
 0x38b   : > { %s4560_s0 = smul.u32 384, %s4733_s27 }
 0x38d   : > { %s2747_s29 = ssub.s32 24576, %s4560_s0 }
 0x38e   : > { %2748 = vsyncadd %s4555_s21, %s2747_s29  ;;  %p2911_p12 = scmp.ne.s32.totalorder %s4560_s0, 0  ;;  %s3035_s5 = smul.u32 24576, %s3403_s22 }
 0x38f   : > { %s2755_s7 = sshll.u32 %s3727_s14, 4  ;;  %s4699_s12 = sld [smem:[#allocation25_spill]]  ;;  %s4572_s7 = int_to_ptr.vmem [resolvable:$true] %s2755_s7 }
 0x390   : > { %s3261_s11 = scalar_lea.vmem %s4572_s7, %s4560_s0  ;;  %s3427_s15 = smov [#allocation9]  }
 0x391   : > { %p3262_p10 = scmp.ne.s32.totalorder %s4572_s7, %s3261_s11  ;;  %s3265_s10 = sshll.u32 %s3427_s15, 4  ;;  %s3266_s10 = int_to_ptr.vmem [resolvable:$false] %s3265_s10 }
 0x392   : > { %s3267_s22 = scalar_lea.vmem %s3266_s10, 49152  ;;  %p3268_p9 = scmp.lt.s32.totalorder %s4572_s7, %s3266_s10 }
 0x393   : > { %p3263_p6 = pnand %p3262_p10, %p2911_p12  ;;  %p3269_p2 = scmp.lt.s32.totalorder %s3267_s22, %s3261_s11 }
 0x395   : > { %s4700_s9 = smov %s4699_s12  ;;  %s4570_s28 = scalar_lea.hbm %s4699_s12, %s3035_s5 }
 0x396   : > { %p3264_p1 = pneg %p3263_p6  ;;  %p3270_p13 = por %p3269_p2, %p3268_p9 }
 0x398   : > { %p3271_p7 = pnand %p3270_p13, %p3264_p1 }
 0x39a   : > { %3274 = shalt.err (!%p3271_p7)
}
 0x39b   : > { %s3275_s4 = scalar_lea.hbm %s4570_s28, %s4560_s0  ;;  %s3279_s3 = scalar_lea.hbm %s4700_s9, 28800 }
 0x39c   : > { %p3276_p11 = scmp.ne.s32.totalorder %s4570_s28, %s3275_s4  ;;  %p3280_p5 = scmp.lt.u32.totalorder %s4570_s28, %s4700_s9 }
 0x39d   : > { %p3281_p3 = scmp.lt.u32.totalorder %s3279_s3, %s3275_s4  ;;  %p3283_p10 = scmp.lt.u32.totalorder %s3275_s4, %s4570_s28 }
 0x39e   : > { %p3277_p0 = pnand %p3276_p11, %p2911_p12 }
 0x39f   : > { %p3282_p8 = por %p3281_p3, %p3280_p5 }
 0x3a0   : > { %p3278_p4 = pneg %p3277_p0 }
 0x3a1   : > { %p3284_p6 = por %p3283_p10, %p3282_p8 }
 0x3a3   : > { %p3285_p1 = pnand %p3284_p6, %p3278_p4 }
 0x3a5   : > { %3288 = shalt.err (!%p3285_p1)
}
 0x3a6   : > { %s3428_s14 = smov 384   ;;  %s3429_s26 = smov 24  }
 0x3a7   : > { %2761 = dma.vmem_to_hbm [thread:$0]  (%p2911_p12), %s4572_s7, %s4560_s0, %s4570_s28, %s4555_s21, %s3428_s14, %s3428_s14, %s3429_s26  }
 0x3a8 PF: > { %s4701_s27 = sld [smem:[#allocation14_spill]]  ;;  %s4702_s29 = sld [smem:[#allocation22_spill]] }
 0x3a9   : > { %p3054_p9 = scmp.ge.s32.totalorder %s3415_s25, 2 }
 0x3ae   : > { %s2770_s5 = sand.u32 1, %s4701_s27   ;;  %p4703_p2 = scmp.ne.s32.totalorder %s4702_s29, 0 }
 0x3af   : > { %s2771_s20 = scalar_lea.sflag [#allocation5], %s2770_s5 }
 0x3b0   : > { %p3049_p13 = pnand %p3054_p9, %p4703_p2 }
 0x3b2   : > { %3358 = dma.done.wait (!%p3049_p13), %s2771_s20, 24576  }
 0x3b3   : > { %3360 = vsyncadd (!%p3049_p13), %s2771_s20, 4294942720  ;;  %s22_s25 = sadd.s32 1, %s3415_s25   ;;  %s4705_s21 = sld [smem:[#allocation15_spill]] }
 0x3b4   : > { %p4604_p7 = scmp.ge.s32.totalorder %s22_s25, 6   ;;  %s4706_s14 = sld [smem:[#allocation21_spill]] }
 0x3b5   : > { %s4707_s0 = sld [smem:[#allocation19_spill]]  ;;  %s4708_s7 = sld [smem:[#allocation16_spill]] }
 0x3b6   : > { %s4709_s20 = sld [smem:[#allocation20_spill]]  ;;  %s4710_s28 = sld [smem:[#allocation17_spill]] }
 0x3b7   : > { %s4711_s11 = sld [smem:[#allocation18_spill]]  ;;  %s4713_s12 = smov %s3367_s13 }
 0x3b8   : > { %s4715_s15 = smov %s3379_s16  ;;  %s4716_s16 = smov %s3383_s17 }
 0x3b9   : > { %s4714_s13 = smov %s4705_s21  ;;  %s4718_s18 = smov %s3391_s19 }
 0x3ba   : > { %s4720_s21 = smov %s3407_s23  ;;  %s4721_s22 = smov %s3411_s24 }
 0x3bb   : > { %s4717_s17 = smov %s4707_s0  ;;  %s4719_s19 = smov %s4708_s7 }
 0x3bc   : > { %s4722_s23 = smov %s4710_s28  ;;  %21 = sbr.rel (!%p4604_p7) target bundleno = 16 (0x10), region = 103 }
 0x3bd   : > { %s4723_s24 = smov %s4711_s11 }
 0x3c3   :  { %2776 = vsyncpa [#allocation4], 1 }
 0x3c4   :  { %2778 = vsyncpa [#allocation4 + $0x1], 1 }
 0x3c5   :  { %2779 = vsyncpa [#allocation7], 1 }
 0x3c6   :  { %2781 = vsyncpa [#allocation7 + $0x1], 1 }
 0x3c7   :  { %2782 = vsyncpa [#allocation5], 1 }
 0x3c8   :  { %2784 = vsyncpa [#allocation5 + $0x1], 1 }

</bundles_post_ra>
